<compile_context>
chip_gen: v7x
topology: tpu7x:2x2x1
jax: 0.10.0
libtpu: 0.0.40
codegen_flags: <defaults>
</compile_context>

<pallas_src>
import math

import jax
import jax.numpy as jnp
from jax import lax
from jax.experimental import pallas as pl
from jax.experimental.pallas import tpu as pltpu


def _sin_pos_emb_kernel(x_ref, w_ref, phase_ref, out_ref):
    # x_ref:     (1, TN, I)        coordinate tile
    # w_ref:     (I, out_dim)      freqs replicated into each coord's 2S lane band
    # phase_ref: (1, out_dim)      0 in the sin half, pi/2 in the cos half
    # out_ref:   (1, TN, out_dim)  final lane-dense output tile
    x = x_ref[0].astype(jnp.float32)                         # (TN, I)
    # Coordinate*frequency broadcast as one MXU matmul (MXU is otherwise idle).
    # HIGHEST precision keeps the argument f32-exact: W has a single nonzero
    # per column, so each output lane is exactly x[n, i] * freq.
    arg = jnp.dot(x, w_ref[...],
                  precision=lax.Precision.HIGHEST,
                  preferred_element_type=jnp.float32)        # (TN, out_dim)
    # cos(z) == sin(z + pi/2): one full-width sin, one unmasked lane-dense store.
    out_ref[0] = jnp.sin(arg + phase_ref[...]).astype(out_ref.dtype)


def _sublane_pack(itemsize):
    # Sub-32-bit dtypes pack along sublanes: (8,128) f32, (16,128) bf16, (32,128) int8/fp8.
    return max(8, 32 // itemsize)


def _default_tile_target_bytes():
    # Per-buffer output-tile budget; double-buffered, so keep it modest enough
    # for v7x's 64 MiB/TC while letting v5e/v6e (128 MiB) use larger tiles.
    try:
        cap = pltpu.get_tpu_info().vmem_capacity_bytes
    except Exception:
        cap = 64 << 20
    return max(4 << 20, min(12 << 20, cap // 8))


def _pick_tile_n(N, B, bytes_per_row, pack, target_bytes):
    """Largest N-tile whose double-buffered footprint stays under target_bytes.

    Rounds to the dtype's sublane-pack granularity.  Does NOT need to divide N
    (the grid uses cdiv and Pallas pads the final partial block).
    """
    tn = max(pack, target_bytes // (2 * bytes_per_row))
    if B == 1 and N > pack:
        # Guarantee >= 2 grid steps so both v7x TensorCores get work.
        tn = min(tn, pl.cdiv(N, 2))
    if tn >= N:
        return N
    tn = max(pack, (tn // pack) * pack)
    return N if tn >= N else tn


def sinusoidal_pos_emb_3d(x, dim, *, tile_n=None, out_dtype=None,
                          tile_target_bytes=None):
    """Pallas implementation of SinusoidalPosEmb3D.forward.

    x:   (B, N, I) float array (I is typically 3).
    dim: embedding dim, divisible by 6 and >= 12.
    out_dtype: defaults to x.dtype; pass jnp.bfloat16 for the HBM-writeback
               fast path when the consumer accepts bf16 embeddings.
    Returns (B, N, I * 2 * (dim // 6)); for I == 3 that is (B, N, dim).
    """
    assert dim % 6 == 0, "dim must be divisible by 6"
    S = dim // 6
    assert S > 1, "dim must be >= 12 (dim == 6 divides by zero in the reference)"
    B, N, num_coords = x.shape
    out_dim = num_coords * 2 * S
    out_dtype = x.dtype if out_dtype is None else jnp.dtype(out_dtype)
    out_itemsize = jnp.dtype(out_dtype).itemsize
    x_itemsize = jnp.dtype(x.dtype).itemsize

    # Constant tables at full out_dim lane width.
    scale = math.log(10000.0) / (S - 1)
    freqs = jnp.exp(jnp.arange(S, dtype=jnp.float32) * -scale)            # (S,)
    band = jnp.concatenate([freqs, freqs])                                # (2S,)
    eye = jnp.eye(num_coords, dtype=jnp.float32)                          # (I, I)
    w = (eye[:, :, None] * band[None, None, :]).reshape(num_coords, out_dim)
    phase_band = jnp.concatenate(
        [jnp.zeros((S,), jnp.float32),
         jnp.full((S,), jnp.float32(math.pi / 2.0), jnp.float32)])        # (2S,)
    phase = jnp.tile(phase_band, num_coords).reshape(1, out_dim)          # (1, out_dim)

    pack = _sublane_pack(out_itemsize)
    bytes_per_row = out_dim * out_itemsize + num_coords * x_itemsize
    if tile_target_bytes is None:
        tile_target_bytes = _default_tile_target_bytes()
    if tile_n is None:
        tile_n = _pick_tile_n(N, B, bytes_per_row, pack, tile_target_bytes)
    assert 0 < tile_n <= N
    assert tile_n == N or tile_n % 8 == 0, "tile_n must be a multiple of 8 or equal N"

    grid = (B, pl.cdiv(N, tile_n))

    # Double-buffered x + out tiles, plus the two small constant tables.
    footprint = (2 * tile_n * bytes_per_row
                 + 2 * (num_coords + 1) * out_dim * 4
                 + (2 << 20))
    vmem_limit = int(min(48 << 20, max(24 << 20, footprint)))

    return pl.pallas_call(
        _sin_pos_emb_kernel,
        out_shape=jax.ShapeDtypeStruct((B, N, out_dim), out_dtype),
        grid=grid,
        in_specs=[
            pl.BlockSpec((1, tile_n, num_coords), lambda b, n: (b, n, 0)),
            pl.BlockSpec((num_coords, out_dim), lambda b, n: (0, 0)),
            pl.BlockSpec((1, out_dim), lambda b, n: (0, 0)),
        ],
        out_specs=pl.BlockSpec((1, tile_n, out_dim), lambda b, n: (b, n, 0)),
        compiler_params=pltpu.CompilerParams(
            dimension_semantics=("parallel", "parallel"),
            vmem_limit_bytes=vmem_limit,
        ),
    )(x, w, phase)


def _reference(x, dim):
    # Pure-JAX reference mirroring the PyTorch forward, for sanity checks.
    S = dim // 6
    scale = math.log(10000.0) / (S - 1)
    freqs = jnp.exp(jnp.arange(S, dtype=jnp.float32) * -scale)
    emb = x.astype(jnp.float32)[..., None] * freqs.reshape(1, 1, 1, -1)
    emb = jnp.concatenate([jnp.sin(emb), jnp.cos(emb)], axis=-1)
    b, n = x.shape[0], x.shape[1]
    return emb.reshape(b, n, -1)


if __name__ == "__main__":
    key = jax.random.PRNGKey(0)

    # 3-D points, dim = 384 (S = 64, out_dim = 384).
    B, N, I = 2, 256, 3
    dim = 384
    x = jax.random.normal(key, (B, N, I), dtype=jnp.float32)
    ref = _reference(x, dim)

    # Explicit N-tiling path (grid = (2, 4)).
    out = jax.block_until_ready(sinusoidal_pos_emb_3d(x, dim, tile_n=64))
    assert out.shape == (B, N, dim), out.shape
    assert jnp.allclose(out, ref, atol=2e-5, rtol=2e-5), float(jnp.abs(out - ref).max())

    # Auto tile-size path (full-N tile, grid = (2, 1)).
    out2 = jax.block_until_ready(sinusoidal_pos_emb_3d(x, dim))
    assert jnp.allclose(out2, ref, atol=2e-5, rtol=2e-5)

    # bf16 writeback fast path (v5e/v6e are HBM-write-bound).
    out_bf16 = jax.block_until_ready(
        sinusoidal_pos_emb_3d(x, dim, out_dtype=jnp.bfloat16))
    assert out_bf16.dtype == jnp.bfloat16
    assert jnp.allclose(out_bf16.astype(jnp.float32), ref, atol=1e-2, rtol=1e-2)

    # Awkward N (B=1 -> tile capped for megacore, cdiv grid with a partial
    # last block) and small dim (full-extent lane dim).
    x3 = jax.random.normal(jax.random.PRNGKey(1), (1, 40, 3), dtype=jnp.float32)
    out3 = jax.block_until_ready(sinusoidal_pos_emb_3d(x3, 36))
    assert out3.shape == (1, 40, 36)
    assert jnp.allclose(out3, _reference(x3, 36), atol=2e-5, rtol=2e-5)

    print("KERNEL_OK")
</pallas_src>

<mosaic_0001>
module attributes {stable_mosaic.version = 11 : i64} {
  func.func @_sin_pos_emb_kernel(%arg0: i32, %arg1: i32, %arg2: memref<1x64x3xf32, #tpu.memory_space<vmem>>, %arg3: memref<3x384xf32, #tpu.memory_space<vmem>>, %arg4: memref<1x384xf32, #tpu.memory_space<vmem>>, %arg5: memref<1x64x384xf32, #tpu.memory_space<vmem>>) attributes {dimension_semantics = [#tpu.dimension_semantics<parallel>, #tpu.dimension_semantics<parallel>], iteration_bounds = array<i64: 2, 4>, scalar_prefetch = 0 : i64, scratch_operands = 0 : i64, tpu.core_type = #tpu.core_type<tc>, window_params = [{transform_indices = @transform_0, window_bounds = array<i64: 1, 64, 3>}, {pipeline_mode = #tpu.pipeline_mode<synchronous>, transform_indices = @transform_1, window_bounds = array<i64: 3, 384>}, {pipeline_mode = #tpu.pipeline_mode<synchronous>, transform_indices = @transform_2, window_bounds = array<i64: 1, 384>}, {transform_indices = @transform_3, window_bounds = array<i64: 1, 64, 384>}]} {
    %c0 = arith.constant 0 : index
    %c0_0 = arith.constant 0 : index
    %c0_1 = arith.constant 0 : index
    %0 = vector.load %arg2[%c0, %c0_0, %c0_1] : memref<1x64x3xf32, #tpu.memory_space<vmem>>, vector<1x64x3xf32>
    %1 = vector.shape_cast %0 : vector<1x64x3xf32> to vector<64x3xf32>
    %c0_2 = arith.constant 0 : index
    %c0_3 = arith.constant 0 : index
    %2 = vector.load %arg3[%c0_2, %c0_3] : memref<3x384xf32, #tpu.memory_space<vmem>>, vector<3x384xf32>
    %cst = arith.constant dense<0.000000e+00> : vector<64x384xf32>
    %3 = tpu.matmul %1, %2, %cst {dimension_numbers = #tpu.dot_dimension_numbers<[1], [0], [0], [1], [0, 0, 1, 1], [], []>, precision = #tpu.contract_precision<fp32>} : vector<64x3xf32>, vector<3x384xf32>, vector<64x384xf32> -> vector<64x384xf32>
    %c0_4 = arith.constant 0 : index
    %c0_5 = arith.constant 0 : index
    %4 = vector.load %arg4[%c0_4, %c0_5] : memref<1x384xf32, #tpu.memory_space<vmem>>, vector<1x384xf32>
    %5 = vector.broadcast %4 : vector<1x384xf32> to vector<64x384xf32>
    %6 = arith.addf %3, %5 : vector<64x384xf32>
    %7 = math.sin %6 : vector<64x384xf32>
    %c0_6 = arith.constant 0 : index
    %c0_7 = arith.constant 0 : index
    %c0_8 = arith.constant 0 : index
    %8 = vector.load %arg5[%c0_6, %c0_7, %c0_8] : memref<1x64x384xf32, #tpu.memory_space<vmem>>, vector<1x64x384xf32>
    %9 = vector.shape_cast %8 : vector<1x64x384xf32> to vector<64x384xf32>
    %10 = vector.shape_cast %7 : vector<64x384xf32> to vector<1x64x384xf32>
    tpu.vector_store %arg5[%c0_6, %c0_7, %c0_8], %10 {strides = array<i32>} : memref<1x64x384xf32, #tpu.memory_space<vmem>>, vector<1x64x384xf32>,
    return
  }
  func.func @transform_0(%arg0: i32, %arg1: i32) -> (i32, i32, i32) {
    %c0_i32 = arith.constant 0 : i32
    %c0_i32_0 = arith.constant 0 : i32
    return %arg0, %arg1, %c0_i32 : i32, i32, i32
  }
  func.func @transform_1(%arg0: i32, %arg1: i32) -> (i32, i32) {
    %c0_i32 = arith.constant 0 : i32
    %c0_i32_0 = arith.constant 0 : i32
    %c0_i32_1 = arith.constant 0 : i32
    return %c0_i32, %c0_i32_0 : i32, i32
  }
  func.func @transform_2(%arg0: i32, %arg1: i32) -> (i32, i32) {
    %c0_i32 = arith.constant 0 : i32
    %c0_i32_0 = arith.constant 0 : i32
    %c0_i32_1 = arith.constant 0 : i32
    return %c0_i32, %c0_i32_0 : i32, i32
  }
  func.func @transform_3(%arg0: i32, %arg1: i32) -> (i32, i32, i32) {
    %c0_i32 = arith.constant 0 : i32
    %c0_i32_0 = arith.constant 0 : i32
    return %arg0, %arg1, %c0_i32 : i32, i32, i32
  }
}

</mosaic_0001>

<bundles_post_ra>
// kernel: tpu_custom_call.1
= control target key start
LH: loop header
LB: loop body
LE: loop exit
PB: predicated region body
PF: predicated region fallthrough
CT: control target
= control target key end

     0   :  { %8 = vsyncpa [#allocation3], 0  ;;  %s7664_s0 = inlined_call_operand.vmem [shape: f32[2,256,3], index: 0, kind: input, shape index: {}]   ;;  %s7665_s1 = inlined_call_operand.vmem [shape: f32[3,384], index: 1, kind: input, shape index: {}]   ;;  %s7666_s2 = inlined_call_operand.vmem [shape: f32[1,384], index: 2, kind: input, shape index: {}]   ;;  %s7667_s3 = inlined_call_operand.hbm [shape: f32[2,256,384], index: 3, kind: output, shape index: {}]  }
   0x1   :  { %10 = vsyncpa [#allocation3 + $0x1], 0  ;;  %s5232_s12 = smov 0   ;;  %s5234_s13 = smov 0  }
   0x2   :  { %s5236_s14 = smov 0   ;;  %s5238_s15 = smov 0  }
   0x3   :  { %s5240_s16 = smov 0   ;;  %s5242_s17 = smov 0  }
   0x4   :  { %s5244_s18 = smov 0   ;;  %s5246_s19 = smov 0  }
   0x5 LB: > { %s4436_s20 = sadd.s32 4294967295, %s5200_s19   ;;  %s4437_s21 = sadd.s32 4294967294, %s5200_s19   ;;  %s5200_s19 = sphi %s5246_s19, %s16_s19   ;;  %s5196_s18 = sphi %s5244_s18, %s7725_s18   ;;  %s5192_s17 = sphi %s5242_s17, %s7724_s17   ;;  %s5188_s16 = sphi %s5240_s16, %s7723_s16   ;;  %s5184_s15 = sphi %s5238_s15, %s7722_s15   ;;  %s5180_s14 = sphi %s5236_s14, %s7721_s14   ;;  %s5176_s13 = sphi %s5234_s13, %s7720_s13   ;;  %s5172_s12 = sphi %s5232_s12, %s7719_s12  }
   0x6   : > { %s25_s22 = sadd.s32 1, %s5192_s17  ;;  %s28_s23 = sadd.s32 1, %s5196_s18 }
   0x7   : > { %p26_p0 = scmp.ge.s32.totalorder %s25_s22, 4  ;;  %p117_p1 = scmp.ne.s32.totalorder %s5180_s14, %s5176_s13 }
   0x8   : > { %p118_p2 = scmp.eq.s32.totalorder %s4436_s20, 7  ;;  %p123_p5 = scmp.ne.s32.totalorder %s5176_s13, %s5172_s12 }
   0x9   : > { %s7727_s22 = smov (%p26_p0, %s25_s22), 0  ;;  %s7729_s23 = smov (!%p26_p0, %s28_s23), %s5196_s18 }
   0xa   : > { %s103_s24 = ssub.s32 %s5192_s17, %s7727_s22  ;;  %p5283_p3 = por %p118_p2, %p117_p1 }
   0xb   : > { %p30_p4 = scmp.ge.s32.totalorder %s7729_s23, 2  ;;  %p124_p6 = scmp.eq.s32.totalorder %s4437_s21, 7 }
   0xc   : > { %p4440_p7 = scmp.ge.s32.totalorder %s5200_s19, 1  ;;  %p161_p9 = scmp.lt.s32.totalorder %s5200_s19, 9 }
   0xd   : > { %s7731_s23 = smov (%p30_p4, %s7729_s23), 0  ;;  %p5292_p8 = por %p124_p6, %p123_p5 }
   0xe   : > { %s102_s27 = ssub.s32 %s5196_s18, %s7731_s23  ;;  %s107_s28 = sadd.s32 1, %s5180_s14 }
   0xf   : > { %s104_s29 = sor.u32 %s103_s24, %s102_s27  ;;  %p162_p10 = pnand %p4440_p7, %p161_p9 }
  0x10   : > { %p105_p11 = scmp.eq.s32.totalorder %s104_s29, 0  ;;  %v208_v0 = vld [vmem:[%s7665_s1] sm:$0x77] (!%p162_p10)  ;;  %vm255_vm0 = vcmask (!%p162_p10), 1042432   ;;  %v5202_v3 = vmov (!%p162_p10), 0.0   ;;  %s4441_s6 = sshll.u32 (!%p162_p10), %s5184_s15, 3 }
  0x11   : > { %165 = sbr.rel (%p162_p10) target bundleno = 1006 (0x3ee), region = 32  ;;  %v229_v1 = vcombine.high (!%p162_p10), %v208_v0, %v208_v0  ;;  %v256_v2 = vsel (!%p162_p10), %vm255_vm0, %v208_v0, 0  ;;  %491 = vmatprep.mubr.f32.mxu0 (!%p162_p10), %v5202_v3  ;;  %p190_p12 = scmp.lt.s32.totalorder (!%p162_p10), %s5188_s16, 1  ;;  %328 = vmatprep.mubr.f32.mxu1 (!%p162_p10), %v5202_v3  ;;  %vm230_vm1 = vcmask (!%p162_p10), 23552   ;;  %v209_v27 = vld [vmem:[%s7665_s1 + $0x8] sm:$0x7] (!%p162_p10) }
  0x12   : > { %s5301_s30 = scalar_select %p105_p11, %s5180_s14, %s107_s28  }
  0x13   : > { %v5311_v4 = vand.u32 (!%p162_p10), 4294901760, %v256_v2  ;;  %p192_p13 = scmp.lt.s32.totalorder (!%p162_p10), %s4441_s6, 31  ;;  %v258_v5 = vsel (!%p162_p10), %vm255_vm0, %v229_v1, 0  ;;  %v5376_v36 = vsel (!%p162_p10), %vm255_vm0, %v209_v27, 0  ;;  %s186_s4 = sand.u32 (!%p162_p10), 1, %s5176_s13  }
  0x14   : > { %v5315_v6 = vand.u32 (!%p162_p10), 4294901760, %v258_v5  ;;  %v5398_v44 = vand.u32 (!%p162_p10), 4294901760, %v5376_v36  ;;  %s5907_s5 = smul.u32 (!%p162_p10), 192, %s186_s4  ;;  %s7612_s27 = scalar_lea.sflag (!%p162_p10), [#allocation3], %s186_s4 }
  0x15   : > { %v5318_v7 = vsub.f32 (!%p162_p10), %v256_v2, %v5311_v4  ;;  %s5209_s29 = smov (!%p162_p10), [#allocation2]  }
  0x16   : > { %v5321_v8 = vsub.f32 (!%p162_p10), %v258_v5, %v5315_v6  ;;  %263 = vmatprep.subr.mxu1 (!%p162_p10), %v5315_v6 }
  0x17   : > { %v425_v9 = vand.u32 (!%p162_p10), 4294901760, %v5318_v7  ;;  %265 = vmatpush1.msra.mxu1 (!%p162_p10), %v5311_v4 }
  0x18   : > { %s191_s7 = scalar_select %p190_p12, %s5188_s16, 1  ;;  %v419_v10 = vand.u32 4294901760, %v5321_v8 }
  0x19   : > { %s7733_s6 = smov (!%p192_p13, %s4441_s6), 31  ;;  %v426_v11 = vsub.f32 %v5318_v7, %v425_v9 }
  0x1a   : > { %s4442_s8 = sshll.u32 %s191_s7, 5  ;;  %v420_v15 = vsub.f32 %v5321_v8, %v419_v10 }
  0x1b   : > { %s195_s9 = sadd.s32 %s4442_s8, %s7733_s6  ;;  %v427_v16 = vand.u32 4294901760, %v426_v11  ;;  %s5946_s6 = scalar_lea.vmem [#allocation2], %s5907_s5 }
  0x1c   : > { %s4443_s10 = sshll.u32 %s195_s9, 3  ;;  %v421_v25 = vand.u32 4294901760, %v420_v15  ;;  %s4926_s9 = smul.u32 24, %s5184_s15 }
  0x1d   : > { %s5333_s21 = scalar_lea.vmem %s7664_s0, %s4443_s10  ;;  %s4927_s10 = smul.u32 96, %s5188_s16 }
  0x1e   : > { %v200_v12 = vld [vmem:[%s5333_s21] sm:$0xff]  ;;  %v201_v13 = vld [vmem:[%s5333_s21 + $0x8] sm:$0xff]  ;;  %v202_v14 = vld [vmem:[%s5333_s21 + $0x10] sm:$0xff]  ;;  %422 = vmatprep.subr.mxu0 %v421_v25  ;;  %4683 = vmatprep.subr.mxu1 %v421_v25  ;;  %s5110_s5 = sshll.u32 %s5209_s29, 4  ;;  %s5111_s5 = int_to_ptr.vmem [resolvable:$false] %s5110_s5 }
  0x1f   : > { %v232_v17 = vsel %vm230_vm1, %v200_v12, 0  ;;  %v235_v18 = vsel %vm230_vm1, %v201_v13, 0  ;;  %v203_v19 = vld [vmem:[%s5333_s21 + $0x18] sm:$0xff]  ;;  %v204_v20 = vld [vmem:[%s5333_s21 + $0x20] sm:$0xff]  ;;  %v238_v23 = vsel %vm230_vm1, %v202_v14, 0  ;;  %v205_v32 = vld [vmem:[%s5333_s21 + $0x28] sm:$0xff]  ;;  %428 = vmatpush1.msra.mxu0 %v427_v16  ;;  %v1218_v14 = vsub.f32 %v5376_v36, %v5398_v44  ;;  %s4351_s11 = sadd.s32 %s4927_s10, %s4926_s9 }
  0x20   : > { %v5345_v21 = vand.u32 4294901760, %v232_v17  ;;  %v5347_v22 = vand.u32 4294901760, %v235_v18  ;;  %v241_v24 = vsel %vm230_vm1, %v203_v19, 0  ;;  %v5351_v26 = vand.u32 4294901760, %v238_v23  ;;  %550 = vmatprep.subr.mxu0 %v5321_v8  ;;  %v206_v43 = vld [vmem:[%s5333_s21 + $0x30] sm:$0xff]  ;;  %v207_v52 = vld [vmem:[%s5333_s21 + $0x38] sm:$0xff] }
  0x21   : > { %v5362_v30 = vand.u32 4294901760, %v241_v24  ;;  %v244_v31 = vsel %vm230_vm1, %v204_v20, 0  ;;  %v247_v38 = vsel %vm230_vm1, %v205_v32, 0  ;;  %v250_v47 = vsel %vm230_vm1, %v206_v43, 0  ;;  %s4542_s20 = sshll.u32 %s4351_s11, 7  ;;  %s4354_s21 = sshll.u32 %s5946_s6, 4  ;;  %s7606_s21 = int_to_ptr.vmem [resolvable:$true] %s4354_s21 }
  0x22   : > { %v5357_v28 = vsub.f32 %v232_v17, %v5345_v21  ;;  %v5360_v29 = vsub.f32 %v235_v18, %v5347_v22  ;;  %v5367_v33 = vsub.f32 %v238_v23, %v5351_v26  ;;  %493 = vmatmul.mubr.f32.vlgmr.msra.gmra.mrb[0].mxu0 %v5345_v21  ;;  %v5380_v37 = vand.u32 4294901760, %v244_v31  ;;  %s7604_s16 = scalar_lea.hbm %s7667_s3, %s4542_s20  ;;  %s5106_s28 = scalar_lea.vmem %s7606_s21, 3072 }
  0x23   : > { %498 = vmatprep.mubr.f32.mxu0 %v5202_v3  ;;  %553 = vmatpush1.msra.mxu0 %v5318_v7  ;;  %v5393_v42 = vsub.f32 %v241_v24, %v5362_v30  ;;  %v5403_v46 = vand.u32 4294901760, %v247_v38  ;;  %v5422_v53 = vand.u32 4294901760, %v250_v47  ;;  %v253_v58 = vsel %vm230_vm1, %v207_v52, 0  ;;  %p5107_p0 = scmp.ne.s32.totalorder %s7606_s21, %s5106_s28  ;;  %s5112_s7 = scalar_lea.vmem %s5111_s5, 6144 }
  0x24   : > { %v5370_v34 = vand.u32 4294901760, %v5357_v28  ;;  %v5373_v35 = vand.u32 4294901760, %v5360_v29  ;;  %v5390_v41 = vand.u32 4294901760, %v5367_v33  ;;  %682 = vmatprep.subr.mxu0 %v5315_v6  ;;  %v5416_v51 = vsub.f32 %v244_v31, %v5380_v37  ;;  %p5113_p4 = scmp.lt.s32.totalorder %s7606_s21, %s5111_s5  ;;  %p5114_p5 = scmp.lt.s32.totalorder %s5112_s7, %s5106_s28 }
  0x25   : > { %v5413_v50 = vand.u32 4294901760, %v5393_v42  ;;  %v5434_v57 = vsub.f32 %v247_v38, %v5403_v46  ;;  %v5440_v59 = vsub.f32 %v250_v47, %v5422_v53  ;;  %v5451_v63 = vand.u32 4294901760, %v253_v58  ;;  %p5108_p1 = pnand %p5107_p0, %p5283_p3 }
  0x26   : > { %v332_v39 = vsub.f32 %v5357_v28, %v5370_v34  ;;  %v343_v40 = vsub.f32 %v5360_v29, %v5373_v35  ;;  %500 = vmatmul.mubr.f32.gmra.mrb[2].mxu0 %v5347_v22  ;;  %v354_v49 = vsub.f32 %v5367_v33, %v5390_v41  ;;  %v5431_v56 = vand.u32 4294901760, %v5416_v51  ;;  %p5115_p6 = por %p5114_p5, %p5113_p4 }
  0x27   : > { %505 = vmatprep.mubr.f32.mxu0 %v5202_v3  ;;  %v365_v55 = vsub.f32 %v5393_v42, %v5413_v50  ;;  %v5449_v62 = vand.u32 4294901760, %v5434_v57  ;;  %v5460_v2 = vand.u32 4294901760, %v5440_v59  ;;  %v5463_v5 = vsub.f32 %v253_v58, %v5451_v63  ;;  %p5109_p2 = pneg %p5108_p1 }
  0x28   : > { %v5400_v45 = vand.u32 4294901760, %v332_v39  ;;  %v5408_v48 = vand.u32 4294901760, %v343_v40  ;;  %v5426_v54 = vand.u32 4294901760, %v354_v49  ;;  %v376_v61 = vsub.f32 %v5416_v51, %v5431_v56 }
  0x29   : > { %v5444_v60 = vand.u32 4294901760, %v365_v55  ;;  %v387_v1 = vsub.f32 %v5434_v57, %v5449_v62  ;;  %v398_v12 = vsub.f32 %v5440_v59, %v5460_v2  ;;  %v5474_v13 = vand.u32 4294901760, %v5463_v5  ;;  %p5116_p7 = pnand %p5115_p6, %p5109_p2 }
  0x2a   : > { %334 = vmatmul.mubr.f32.vlgmr.msra.gmra.mrb[0].mxu1 %v5400_v45  ;;  %507 = vmatmul.mubr.f32.gmra.mrb[4].mxu0 %v5351_v26  ;;  %v377_v0 = vand.u32 4294901760, %v376_v61  ;;  %v5484_v15 = vand.u32 4294901760, %v1218_v14 }
  0x2b   : > { %4684 = vmatpush1.msra.mxu1 %v427_v16  ;;  %339 = vmatprep.mubr.f32.mxu1 %v5202_v3  ;;  %v388_v11 = vand.u32 4294901760, %v387_v1  ;;  %v399_v8 = vand.u32 4294901760, %v398_v12 }
  0x2c   : > { %4599 = vmatprep.subr.mxu1 %v5398_v44  ;;  %512 = vmatprep.mubr.f32.mxu0 %v5202_v3  ;;  %v1220_v17 = vsub.f32 %v1218_v14, %v5484_v15 }
  0x2e   : > { %345 = vmatmul.mubr.f32.gmra.mrb[2].mxu1 %v5408_v48  ;;  %514 = vmatmul.mubr.f32.gmra.mrb[6].mxu0 %v5362_v30  ;;  %v1221_v18 = vand.u32 4294901760, %v1220_v17 }
  0x2f   : > { %350 = vmatprep.mubr.f32.mxu1 %v5202_v3  ;;  %616 = vmatprep.mubr.f32.mxu0 %v5202_v3 }
  0x32   : > { %356 = vmatmul.mubr.f32.gmra.mrb[4].mxu1 %v5426_v54  ;;  %619 = vmatmul.mubr.f32.vlgmr.msra.gmra.mrb[0].mxu0 %v5357_v28 }
  0x33   : > { %361 = vmatprep.mubr.f32.mxu1 %v5202_v3  ;;  %624 = vmatprep.mubr.f32.mxu0 %v5202_v3 }
  0x34   : > { %684 = vmatpush1.msra.mxu0 %v5311_v4 }
  0x35   : > { %823 = vmatprep.subr.mxu0 %v419_v10  ;;  %v409_v10 = vsub.f32 %v5463_v5, %v5474_v13 }
  0x36   : > { %367 = vmatmul.mubr.f32.gmra.mrb[6].mxu1 %v5444_v60  ;;  %627 = vmatmul.mubr.f32.gmra.mrb[2].mxu0 %v5360_v29 }
  0x37   : > { %372 = vmatprep.mubr.f32.mxu1 %v5202_v3  ;;  %632 = vmatprep.mubr.f32.mxu0 %v5202_v3  ;;  %v410_v16 = vand.u32 4294901760, %v409_v10 }
  0x3a   : > { %378 = vmatmul.mubr.f32.gmra.mrb[8].mxu1 %v377_v0  ;;  %635 = vmatmul.mubr.f32.gmra.mrb[4].mxu0 %v5367_v33 }
  0x3b   : > { %383 = vmatprep.mubr.f32.mxu1 %v5202_v3  ;;  %640 = vmatprep.mubr.f32.mxu0 %v5202_v3 }
  0x3e   : > { %389 = vmatmul.mubr.f32.gmra.mrb[10].mxu1 %v388_v11  ;;  %643 = vmatmul.mubr.f32.gmra.mrb[6].mxu0 %v5393_v42 }
  0x3f   : > { %394 = vmatprep.mubr.f32.mxu1 %v5202_v3  ;;  %648 = vmatprep.mubr.f32.mxu0 %v5202_v3 }
  0x42   : > { %400 = vmatmul.mubr.f32.gmra.mrb[12].mxu1 %v399_v8  ;;  %651 = vmatmul.mubr.f32.gmra.mrb[8].mxu0 %v5416_v51 }
  0x43   : > { %405 = vmatprep.mubr.f32.mxu1 %v5202_v3  ;;  %656 = vmatprep.mubr.f32.mxu0 %v5202_v3 }
  0x46   : > { %411 = vmatmul.mubr.f32.gmra.mrb[14].mxu1 %v410_v16  ;;  %659 = vmatmul.mubr.f32.gmra.mrb[10].mxu0 %v5434_v57 }
  0x47   : > { %519 = vmatprep.mubr.f32.mxu1 %v5202_v3  ;;  %664 = vmatprep.mubr.f32.mxu0 %v5202_v3 }
  0x4a   : > { %521 = vmatmul.mubr.f32.vlgmr.msra.gmra.mrb[8].mxu1 %v5380_v37  ;;  %667 = vmatmul.mubr.f32.gmra.mrb[12].mxu0 %v5440_v59 }
  0x4b   : > { %4600 = vmatpush3.msra.mxu1 %v5398_v44  ;;  %526 = vmatprep.mubr.f32.mxu1 %v5202_v3 }
  0x4c   : > { %4613 = vmatprep.subr.mxu1 %v1221_v18  ;;  %672 = vmatprep.mubr.f32.mxu0 %v5202_v3 }
  0x4e   : > { %528 = vmatmul.mubr.f32.gmra.mrb[10].mxu1 %v5403_v46  ;;  %675 = vmatmul.mubr.f32.gmra.mrb[14].mxu0 %v5463_v5 }
  0x4f   : > { %533 = vmatprep.mubr.f32.mxu1 %v5202_v3  ;;  %747 = vmatprep.mubr.f32.mxu0 %v5202_v3 }
  0x52   : > { %535 = vmatmul.mubr.f32.gmra.mrb[12].mxu1 %v5422_v53  ;;  %751 = vmatmul.mubr.f32.vlgmr.msra.gmra.mrb[0].mxu0 %v5370_v34 }
  0x53   : > { %540 = vmatprep.mubr.f32.mxu1 %v5202_v3  ;;  %756 = vmatprep.mubr.f32.mxu0 %v5202_v3 }
  0x54   : > { %827 = vmatpush1.msra.mxu0 %v425_v9 }
  0x55   : > { %948 = vmatprep.subr.mxu0 %v5315_v6 }
  0x56   : > { %542 = vmatmul.mubr.f32.gmra.mrb[14].mxu1 %v5451_v63  ;;  %760 = vmatmul.mubr.f32.gmra.mrb[2].mxu0 %v5373_v35 }
  0x57   : > { %4601 = vmatprep.mubr.f32.mxu1 %v5400_v45  ;;  %765 = vmatprep.mubr.f32.mxu0 %v5202_v3 }
  0x5a   : > { %4602 = vmatmul.mubr.f32.vlgmr.msra.gmra.mrb[16].mxu1 %v5408_v48  ;;  %769 = vmatmul.mubr.f32.gmra.mrb[4].mxu0 %v5390_v41 }
  0x5b   : > { %4614 = vmatpush3.msra.mxu1 %v1221_v18  ;;  %4604 = vmatprep.mubr.f32.mxu1 %v5426_v54 }
  0x5c   : > { %4627 = vmatprep.subr.mxu1 %v1218_v14  ;;  %774 = vmatprep.mubr.f32.mxu0 %v5202_v3 }
  0x5e   : > { %4605 = vmatmul.mubr.f32.gmra.mrb[18].mxu1 %v5444_v60  ;;  %778 = vmatmul.mubr.f32.gmra.mrb[6].mxu0 %v5413_v50 }
  0x5f   : > { %4607 = vmatprep.mubr.f32.mxu1 %v377_v0  ;;  %783 = vmatprep.mubr.f32.mxu0 %v5202_v3 }
  0x62   : > { %4608 = vmatmul.mubr.f32.gmra.mrb[20].mxu1 %v388_v11  ;;  %787 = vmatmul.mubr.f32.gmra.mrb[8].mxu0 %v5431_v56 }
  0x63   : > { %4610 = vmatprep.mubr.f32.mxu1 %v399_v8  ;;  %792 = vmatprep.mubr.f32.mxu0 %v5202_v3 }
  0x66   : > { %4611 = vmatmul.mubr.f32.gmra.mrb[22].mxu1 %v410_v16  ;;  %796 = vmatmul.mubr.f32.gmra.mrb[10].mxu0 %v5449_v62 }
  0x67   : > { %4615 = vmatprep.mubr.f32.mxu1 %v5345_v21  ;;  %801 = vmatprep.mubr.f32.mxu0 %v5202_v3 }
  0x6a   : > { %4616 = vmatmul.mubr.f32.vlgmr.msra.gmra.mrb[16].mxu1 %v5347_v22  ;;  %805 = vmatmul.mubr.f32.gmra.mrb[12].mxu0 %v5460_v2 }
  0x6b   : > { %4628 = vmatpush3.msra.mxu1 %v1218_v14  ;;  %4618 = vmatprep.mubr.f32.mxu1 %v5351_v26 }
  0x6c   : > { %4641 = vmatprep.subr.mxu1 %v5398_v44  ;;  %810 = vmatprep.mubr.f32.mxu0 %v5202_v3 }
  0x6e   : > { %4619 = vmatmul.mubr.f32.gmra.mrb[18].mxu1 %v5362_v30  ;;  %814 = vmatmul.mubr.f32.gmra.mrb[14].mxu0 %v5474_v13 }
  0x6f   : > { %4621 = vmatprep.mubr.f32.mxu1 %v5380_v37  ;;  %890 = vmatprep.mubr.f32.mxu0 %v5202_v3 }
  0x72   : > { %4622 = vmatmul.mubr.f32.gmra.mrb[20].mxu1 %v5403_v46  ;;  %892 = vmatmul.mubr.f32.vlgmr.msra.gmra.mrb[0].mxu0 %v5345_v21 }
  0x73   : > { %4624 = vmatprep.mubr.f32.mxu1 %v5422_v53  ;;  %897 = vmatprep.mubr.f32.mxu0 %v5202_v3 }
  0x74   : > { %950 = vmatpush1.msra.mxu0 %v5311_v4  ;;  %v212_v4 = vlaneseq }
  0x76   : > { %4625 = vmatmul.mubr.f32.gmra.mrb[22].mxu1 %v5451_v63  ;;  %899 = vmatmul.mubr.f32.gmra.mrb[2].mxu0 %v5347_v22  ;;  %v5608_v6 = vshrl.u32 %v212_v4, 7 }
  0x77   : > { %4629 = vmatprep.mubr.f32.mxu1 %v5357_v28  ;;  %904 = vmatprep.mubr.f32.mxu0 %v5202_v3 }
  0x78   : > { %v214_v19 = vsub.s32 0, %v5608_v6  ;;  %v218_v20 = vsub.s32 1, %v5608_v6 }
  0x7a   : > { %4630 = vmatmul.mubr.f32.vlgmr.msra.gmra.mrb[16].mxu1 %v5360_v29  ;;  %906 = vmatmul.mubr.f32.gmra.mrb[4].mxu0 %v5351_v26 }
  0x7b   : > { %4642 = vmatpush3.msra.mxu1 %v5398_v44  ;;  %4632 = vmatprep.mubr.f32.mxu1 %v5367_v33 }
  0x7c   : > { %4655 = vmatprep.subr.mxu1 %v5484_v15  ;;  %911 = vmatprep.mubr.f32.mxu0 %v5202_v3 }
  0x7e   : > { %4633 = vmatmul.mubr.f32.gmra.mrb[18].mxu1 %v5393_v42  ;;  %913 = vmatmul.mubr.f32.gmra.mrb[6].mxu0 %v5362_v30 }
  0x7f   : > { %4635 = vmatprep.mubr.f32.mxu1 %v5416_v51  ;;  %918 = vmatprep.mubr.f32.mxu0 %v5202_v3 }
  0x82   : > { %4636 = vmatmul.mubr.f32.gmra.mrb[20].mxu1 %v5434_v57  ;;  %920 = vmatmul.mubr.f32.gmra.mrb[8].mxu0 %v5380_v37 }
  0x83   : > { %4638 = vmatprep.mubr.f32.mxu1 %v5440_v59  ;;  %925 = vmatprep.mubr.f32.mxu0 %v5202_v3 }
  0x86   : > { %4639 = vmatmul.mubr.f32.gmra.mrb[22].mxu1 %v5463_v5  ;;  %927 = vmatmul.mubr.f32.gmra.mrb[10].mxu0 %v5403_v46 }
  0x87   : > { %4643 = vmatprep.mubr.f32.mxu1 %v5370_v34  ;;  %932 = vmatprep.mubr.f32.mxu0 %v5202_v3 }
  0x8a   : > { %4644 = vmatmul.mubr.f32.vlgmr.msra.gmra.mrb[16].mxu1 %v5373_v35  ;;  %934 = vmatmul.mubr.f32.gmra.mrb[12].mxu0 %v5422_v53 }
  0x8b   : > { %4656 = vmatpush3.msra.mxu1 %v5484_v15  ;;  %4646 = vmatprep.mubr.f32.mxu1 %v5390_v41 }
  0x8c   : > { %4669 = vmatprep.subr.mxu1 %v5398_v44  ;;  %939 = vmatprep.mubr.f32.mxu0 %v5202_v3 }
  0x8e   : > { %4647 = vmatmul.mubr.f32.gmra.mrb[18].mxu1 %v5413_v50  ;;  %941 = vmatmul.mubr.f32.gmra.mrb[14].mxu0 %v5451_v63 }
  0x8f   : > { %4649 = vmatprep.mubr.f32.mxu1 %v5431_v56  ;;  %1013 = vmatprep.mubr.f32.mxu0 %v5202_v3 }
  0x92   : > { %4650 = vmatmul.mubr.f32.gmra.mrb[20].mxu1 %v5449_v62  ;;  %1015 = vmatmul.mubr.f32.vlgmr.msra.gmra.mrb[0].mxu0 %v5345_v21 }
  0x93   : > { %4652 = vmatprep.mubr.f32.mxu1 %v5460_v2  ;;  %1020 = vmatprep.mubr.f32.mxu0 %v5202_v3 }
  0x96   : > { %4653 = vmatmul.mubr.f32.gmra.mrb[22].mxu1 %v5474_v13  ;;  %1022 = vmatmul.mubr.f32.gmra.mrb[2].mxu0 %v5347_v22 }
  0x97   : > { %4657 = vmatprep.mubr.f32.mxu1 %v5345_v21  ;;  %1027 = vmatprep.mubr.f32.mxu0 %v5202_v3 }
  0x9a   : > { %4658 = vmatmul.mubr.f32.vlgmr.msra.gmra.mrb[16].mxu1 %v5347_v22  ;;  %1029 = vmatmul.mubr.f32.gmra.mrb[4].mxu0 %v5351_v26 }
  0x9b   : > { %4670 = vmatpush3.msra.mxu1 %v5398_v44  ;;  %4660 = vmatprep.mubr.f32.mxu1 %v5351_v26 }
  0x9c   : > { %1034 = vmatprep.mubr.f32.mxu0 %v5202_v3 }
  0x9e   : > { %4661 = vmatmul.mubr.f32.gmra.mrb[18].mxu1 %v5362_v30  ;;  %1036 = vmatmul.mubr.f32.gmra.mrb[6].mxu0 %v5362_v30 }
  0x9f   : > { %4663 = vmatprep.mubr.f32.mxu1 %v5380_v37  ;;  %1041 = vmatprep.mubr.f32.mxu0 %v5202_v3 }
  0xa2   : > { %4664 = vmatmul.mubr.f32.gmra.mrb[20].mxu1 %v5403_v46  ;;  %1043 = vmatmul.mubr.f32.gmra.mrb[8].mxu0 %v5380_v37 }
  0xa3   : > { %4666 = vmatprep.mubr.f32.mxu1 %v5422_v53  ;;  %1048 = vmatprep.mubr.f32.mxu0 %v5202_v3 }
  0xa6   : > { %4667 = vmatmul.mubr.f32.gmra.mrb[22].mxu1 %v5451_v63  ;;  %1050 = vmatmul.mubr.f32.gmra.mrb[10].mxu0 %v5403_v46 }
  0xa7   : > { %4671 = vmatprep.mubr.f32.mxu1 %v5345_v21  ;;  %1055 = vmatprep.mubr.f32.mxu0 %v5202_v3 }
  0xaa   : > { %4672 = vmatmul.mubr.f32.vlgmr.msra.gmra.mrb[16].mxu1 %v5347_v22  ;;  %1057 = vmatmul.mubr.f32.gmra.mrb[12].mxu0 %v5422_v53 }
  0xab   : > { %4674 = vmatprep.mubr.f32.mxu1 %v5351_v26  ;;  %1062 = vmatprep.mubr.f32.mxu0 %v5202_v3  ;;  %v210_v3 = vld [vmem:[%s7666_s2] sm:$0x7] }
  0xac   : > { %v215_v23 = vrot.slane %v210_v3, %v214_v19  ;;  %v219_v24 = vrot.slane %v210_v3, %v218_v20 }
  0xae   : > { %4675 = vmatmul.mubr.f32.gmra.mrb[18].mxu1 %v5362_v30  ;;  %1064 = vmatmul.mubr.f32.gmra.mrb[14].mxu0 %v5451_v63 }
  0xaf   : > { %4677 = vmatprep.mubr.f32.mxu1 %v5380_v37 }
  0xb2   : > { %4678 = vmatmul.mubr.f32.gmra.mrb[20].mxu1 %v5403_v46 }
  0xb3   : > { %4680 = vmatprep.mubr.f32.mxu1 %v5422_v53 }
  0xb6   : > { %4681 = vmatmul.mubr.f32.gmra.mrb[22].mxu1 %v5451_v63 }
  0xfd   : > { %v335_v7 = vpop.f32.mrb[0].mxu1 }
  0xfe   : > { %v337_v9 = vpop.f32.mrb[1].mxu1  ;;  %v336_v49 = vadd.f32 %v335_v7, %v215_v23 }
  0xff   : > { %v338_v50 = vadd.f32 %v337_v9, %v219_v24 }
 0x101   : > { %v346_v21 = vpop.f32.mrb[2].mxu1 }
 0x102   : > { %v348_v22 = vpop.f32.mrb[3].mxu1  ;;  %v347_v55 = vadd.f32 %v346_v21, %v215_v23 }
 0x103   : > { %v349_v58 = vadd.f32 %v348_v22, %v219_v24 }
 0x105   : > { %v357_v25 = vpop.f32.mrb[4].mxu1 }
 0x106   : > { %v5615_v26 = vadd.f32 %v357_v25, %v215_v23  ;;  %v359_v27 = vpop.f32.mrb[5].mxu1 }
 0x107   : > { %v5617_v28 = vadd.f32 %v359_v27, %v219_v24 }
 0x109   : > { %v368_v29 = vpop.f32.mrb[6].mxu1 }
 0x10a   : > { %v5619_v30 = vadd.f32 %v368_v29, %v215_v23  ;;  %v370_v31 = vpop.f32.mrb[7].mxu1 }
 0x10b   : > { %v5621_v32 = vadd.f32 %v370_v31, %v219_v24 }
 0x11d   : > { %v522_v33 = vpop.f32.mrb[8].mxu1 }
 0x11e   : > { %v5623_v34 = vadd.f32 %v522_v33, %v215_v23  ;;  %v524_v35 = vpop.f32.mrb[9].mxu1  ;;  %v5203_v33 = vmov 683565275  }
 0x11f   : > { %v5625_v36 = vadd.f32 %v524_v35, %v219_v24 }
 0x121   : > { %v529_v37 = vpop.f32.mrb[10].mxu1 }
 0x122   : > { %v5627_v38 = vadd.f32 %v529_v37, %v215_v23  ;;  %v531_v39 = vpop.f32.mrb[11].mxu1 }
 0x123   : > { %v5629_v40 = vadd.f32 %v531_v39, %v219_v24 }
 0x125   : > { %v536_v41 = vpop.f32.mrb[12].mxu1 }
 0x126   : > { %v5631_v42 = vadd.f32 %v536_v41, %v215_v23  ;;  %v538_v43 = vpop.f32.mrb[13].mxu1  ;;  %v5204_v41 = vmov 2475754826  }
 0x127   : > { %v5633_v44 = vadd.f32 %v538_v43, %v219_v24 }
 0x129   : > { %v543_v45 = vpop.f32.mrb[14].mxu1 }
 0x12a   : > { %v5635_v46 = vadd.f32 %v543_v45, %v215_v23  ;;  %v545_v47 = vpop.f32.mrb[15].mxu1  ;;  %v5205_v45 = vmov 2131351028  }
 0x12b   : > { %v5637_v48 = vadd.f32 %v545_v47, %v219_v24 }
 0x165   : > { %v1016_v51 = vpop.f32.mrb[0].mxu0 }
 0x166   : > { %v5639_v52 = vadd.f32 %v1016_v51, %v336_v49  ;;  %v1018_v53 = vpop.f32.mrb[1].mxu0  ;;  %v5206_v49 = vmov 2102212464   ;;  %v5207_v51 = vmov 920167782  }
 0x167   : > { %v5641_v54 = vadd.f32 %v1018_v53, %v338_v50 }
 0x168   : > { %v1817_v56 = vand.u32 2147483647, %v5639_v52  ;;  %v1820_v57 = vand.u32 2139095040, %v5639_v52  ;;  %vm1819_vm15 = vcmp.lt.s32.totalorder %v5639_v52, 0 }
 0x169   : > { %v1921_v59 = vand.u32 2147483647, %v5641_v54  ;;  %v1924_v60 = vand.u32 2139095040, %v5641_v54  ;;  %v1023_v61 = vpop.f32.mrb[2].mxu0  ;;  %vm1923_vm1 = vcmp.lt.s32.totalorder %v5641_v54, 0 }
 0x16a   : > { %v1821_v62 = vshrl.u32 %v1820_v57, 23  ;;  %v1824_v63 = vand.u32 8388607, %v1817_v56  ;;  %v5649_v0 = vadd.f32 %v1023_v61, %v347_v55  ;;  %v1025_v1 = vpop.f32.mrb[3].mxu0  ;;  %vm5780_vm0 = vcmp.le.f32.partialorder %v1817_v56, 0.7853982 }
 0x16b   : > { %v1925_v2 = vshrl.u32 %v1924_v60, 23  ;;  %v1928_v5 = vand.u32 8388607, %v1921_v59  ;;  %v5653_v11 = vadd.f32 %v1025_v1, %v349_v58 }
 0x16c   : > { %v4444_v12 = vadd.s32 4294967169, %v1821_v62  ;;  %v2132_v14 = vand.u32 2139095040, %v5649_v0  ;;  %v1825_v10 = vor.u32 8388608, %v1824_v63  ;;  %v2129_v18 = vand.u32 2147483647, %v5649_v0 }
 0x16d   : > { %v4448_v13 = vadd.s32 4294967169, %v1925_v2  ;;  %v5656_v8 = vpop.f32.mrb[4].mxu0  ;;  %v1929_v16 = vor.u32 8388608, %v1928_v5  ;;  %v7669_v62 = vmov 1326507024  }
 0x16e   : > { %v1827_v15 = vadd.s32 1, %v4444_v12  ;;  %v2133_v4 = vshrl.u32 %v2132_v14, 23  ;;  %v5659_v7 = vpop.f32.mrb[5].mxu0  ;;  %v5665_v24 = vshll.u32 %v1825_v10, 8  ;;  %v5673_v29 = vand.u32 8388607, %v2129_v18 }
 0x16f   : > { %v1931_v17 = vadd.s32 1, %v4448_v13  ;;  %v5669_v27 = vshll.u32 %v1929_v16, 8 }
 0x170   : > { %vm1828_vm2 = vcmp.gt.s32.totalorder %v1827_v15, 0  ;;  %v4456_v19 = vadd.s32 4294967169, %v2133_v4 }
 0x171   : > { %v1829_v9 = vsel %vm1828_vm2, %v1827_v15, 0  ;;  %vm1932_vm3 = vcmp.gt.s32.totalorder %v1931_v17, 0  ;;  %v5661_v3 = vpop.f32.mrb[6].mxu0 }
 0x172   : > { %v1830_v20 = vshrl.u32 %v1829_v9, 5  ;;  %v1831_v21 = vand.u32 31, %v1829_v9  ;;  %v1933_v22 = vsel %vm1932_vm3, %v1931_v17, 0  ;;  %v5663_v23 = vpop.f32.mrb[7].mxu0  ;;  %v5676_v39 = vadd.s32 1, %v4456_v19 }
 0x173   : > { %v5667_v25 = vshrl.u32 %v1933_v22, 5  ;;  %v1935_v37 = vand.u32 31, %v1933_v22 }
 0x174   : > { %v1832_v31 = vsub.s32 32, %v1831_v21  ;;  %v1834_v35 = vshll.u32 %v5203_v33, %v1831_v21  ;;  %v1837_v43 = vshll.u32 %v5204_v41, %v1831_v21  ;;  %v1840_v47 = vshll.u32 %v5205_v45, %v1831_v21 }
 0x175   : > { %v1843_v50 = vshll.u32 %v5206_v49, %v1831_v21  ;;  %v1846_v53 = vshll.u32 %v5207_v51, %v1831_v21  ;;  %vm1849_vm4 = vcmp.lt.s32.totalorder %v1830_v20, 1  ;;  %vm1850_vm5 = vcmp.lt.s32.totalorder %v1830_v20, 2 }
 0x176   : > { %v1835_v55 = vshrl.u32 %v5204_v41, %v1832_v31  ;;  %v1838_v57 = vshrl.u32 %v5205_v45, %v1832_v31  ;;  %v1841_v58 = vshrl.u32 %v5206_v49, %v1832_v31  ;;  %v1833_v60 = vshrl.u32 %v5203_v33, %v1832_v31 }
 0x177   : > { %v1844_v61 = vshrl.u32 %v5207_v51, %v1832_v31  ;;  %v1847_v63 = vshrl.u32 %v7669_v62, %v1832_v31  ;;  %v1936_v12 = vsub.s32 32, %v1935_v37  ;;  %vm1851_vm6 = vcmp.lt.s32.totalorder %v1830_v20, 3 }
 0x178   : > { %v1836_v1 = vor.u32 %v1835_v55, %v1834_v35  ;;  %v1839_v2 = vor.u32 %v1838_v57, %v1837_v43  ;;  %v1842_v5 = vor.u32 %v1841_v58, %v1840_v47  ;;  %vm1852_vm7 = vcmp.lt.s32.totalorder %v1830_v20, 4 }
 0x179   : > { %v1845_v13 = vor.u32 %v1844_v61, %v1843_v50  ;;  %v1848_v14 = vor.u32 %v1847_v63, %v1846_v53  ;;  %v1938_v21 = vshll.u32 %v5203_v33, %v1935_v37  ;;  %v1939_v35 = vshrl.u32 %v5204_v41, %v1936_v12 }
 0x17a   : > { %v1853_v10 = vsel %vm1849_vm4, %v1833_v60, %v1836_v1  ;;  %v1854_v15 = vsel %vm1852_vm7, %v1842_v5, 2102212464  ;;  %v1857_v16 = vsel %vm1849_vm4, %v1836_v1, %v1839_v2  ;;  %v1861_v17 = vsel %vm1849_vm4, %v1839_v2, %v1842_v5 }
 0x17b   : > { %v1855_v4 = vsel %vm1851_vm6, %v1839_v2, %v1854_v15  ;;  %v1858_v9 = vsel %vm1852_vm7, %v1845_v13, 920167782  ;;  %v1862_v19 = vsel %vm1852_vm7, %v1848_v14, 1326507024  ;;  %v1941_v43 = vshll.u32 %v5204_v41, %v1935_v37 }
 0x17c   : > { %v1859_v22 = vsel %vm1851_vm6, %v1842_v5, %v1858_v9  ;;  %v1863_v31 = vsel %vm1851_vm6, %v1845_v13, %v1862_v19  ;;  %v1856_v47 = vsel %vm1850_vm5, %v1853_v10, %v1855_v4  ;;  %v1942_v55 = vshrl.u32 %v5205_v45, %v1936_v12 }
 0x17d   : > { %v1860_v50 = vsel %vm1850_vm5, %v1857_v16, %v1859_v22  ;;  %v1864_v53 = vsel %vm1850_vm5, %v1861_v17, %v1863_v31  ;;  %v1940_v63 = vor.u32 %v1939_v35, %v1938_v21  ;;  %v1944_v2 = vshll.u32 %v5205_v45, %v1935_v37 }
 0x17e   : > { %v5699_v57 = vmul.u32.u64.low %v5665_v24, %v1864_v53  ;;  %v5700_v58 = vmul.u32.u64.high %v5665_v24, %v1864_v53, %v5699_v57  ;;  %v5703_v60 = vmul.u32.u64.low %v5665_v24, %v1860_v50  ;;  %v5704_v61 = vmul.u32.u64.high %v5665_v24, %v1860_v50, %v5703_v60 }
 0x17f   : > { %v1943_v1 = vor.u32 %v1942_v55, %v1941_v43  ;;  %v1945_v5 = vshrl.u32 %v5206_v49, %v1936_v12  ;;  %v1937_v13 = vshrl.u32 %v5203_v33, %v1936_v12  ;;  %v1947_v20 = vshll.u32 %v5206_v49, %v1935_v37 }
 0x180   : > { %v1948_v14 = vshrl.u32 %v5207_v51, %v1936_v12  ;;  %v1951_v10 = vshrl.u32 %v7669_v62, %v1936_v12  ;;  %v1872_v15 = vmul.u32 %v5665_v24, %v1856_v47  ;;  %v1950_v17 = vshll.u32 %v5207_v51, %v1935_v37 }
 0x181   : > { %v1946_v16 = vor.u32 %v1945_v5, %v1944_v2  ;;  %vm1953_vm8 = vcmp.lt.s32.totalorder %v5667_v25, 1  ;;  %vm1874_vm9 = vc.u32 %v5700_v58, %v5703_v60  ;;  %v1875_v4 = vadd.s32 1, %v5704_v61 }
 0x182   : > { %v1949_v9 = vor.u32 %v1948_v14, %v1947_v20  ;;  %vm1954_vm10 = vcmp.lt.s32.totalorder %v5667_v25, 2  ;;  %v1952_v19 = vor.u32 %v1951_v10, %v1950_v17  ;;  %vm1955_vm11 = vcmp.lt.s32.totalorder %v5667_v25, 3  ;;  %v5731_v20 = vpop.f32.mrb[8].mxu0 }
 0x183   : > { %vm1956_vm12 = vcmp.lt.s32.totalorder %v5667_v25, 4  ;;  %v1961_v12 = vsel %vm1953_vm8, %v1940_v63, %v1943_v1  ;;  %v1876_v24 = vsel %vm1874_vm9, %v1875_v4, %v5704_v61  ;;  %v1965_v37 = vsel %vm1953_vm8, %v1943_v1, %v1946_v16 }
 0x184   : > { %v1958_v21 = vsel %vm1956_vm12, %v1946_v16, 2102212464  ;;  %v1962_v22 = vsel %vm1956_vm12, %v1949_v9, 920167782  ;;  %v1877_v31 = vadd.s32 %v1876_v24, %v1872_v15  ;;  %v1957_v35 = vsel %vm1953_vm8, %v1937_v13, %v1940_v63 }
 0x185   : > { %v1963_v43 = vsel %vm1955_vm11, %v1946_v16, %v1962_v22  ;;  %v1966_v47 = vsel %vm1956_vm12, %v1952_v19, 1326507024  ;;  %v1959_v50 = vsel %vm1955_vm11, %v1943_v1, %v1958_v21  ;;  %vm2140_vm13 = vcmp.gt.s32.totalorder %v5676_v39, 0 }
 0x186   : > { %v1964_v53 = vsel %vm1954_vm10, %v1961_v12, %v1963_v43  ;;  %v1967_v55 = vsel %vm1955_vm11, %v1949_v9, %v1966_v47  ;;  %v1878_v57 = vadd.s32 536870912, %v1877_v31  ;;  %v2141_v13 = vsel %vm2140_vm13, %v5676_v39, 0 }
 0x187   : > { %v1968_v2 = vsel %vm1954_vm10, %v1965_v37, %v1967_v55  ;;  %v5727_v61 = vmul.u32.u64.low %v5669_v27, %v1964_v53  ;;  %v5728_v5 = vmul.u32.u64.high %v5669_v27, %v1964_v53, %v5727_v61  ;;  %v1960_v10 = vsel %vm1954_vm10, %v1957_v35, %v1959_v50 }
 0x188   : > { %v5734_v63 = vmul.u32.u64.low %v5669_v27, %v1968_v2  ;;  %v5735_v1 = vmul.u32.u64.high %v5669_v27, %v1968_v2, %v5734_v63  ;;  %v1879_v14 = vshrl.u32 %v1878_v57, 30  ;;  %v2143_v15 = vand.u32 31, %v2141_v13 }
 0x189   : > { %v2236_v16 = vand.u32 2139095040, %v5653_v11  ;;  %v5743_v17 = vadd.f32 %v5656_v8, %v5615_v26  ;;  %v5747_v4 = vadd.f32 %v5659_v7, %v5617_v28  ;;  %v1979_v19 = vadd.s32 1, %v5728_v5 }
 0x18a   : > { %v1880_v9 = vshll.u32 %v1879_v14, 30  ;;  %v2137_v39 = vor.u32 8388608, %v5673_v29  ;;  %v1976_v12 = vmul.u32 %v5669_v27, %v1960_v10  ;;  %vm1978_vm14 = vc.u32 %v5735_v1, %v5727_v61 }
 0x18b   : > { %v2144_v25 = vsub.s32 32, %v2143_v15  ;;  %v1980_v26 = vsel %vm1978_vm14, %v1979_v19, %v5728_v5  ;;  %v2237_v8 = vshrl.u32 %v2236_v16, 23  ;;  %v7668_v7 = vand.u32 2147483647, %v5653_v11 }
 0x18c   : > { %v5754_v24 = vsub.s32 %v1877_v31, %v1880_v9  ;;  %v1981_v28 = vadd.s32 %v1980_v26, %v1976_v12  ;;  %v1873_v21 = vadd.s32 %v5703_v60, %v5700_v58  ;;  %v5761_v22 = vshrl.u32 %v2141_v13, 5 }
 0x18d   : > { %v5763_v27 = vshll.u32 %v2137_v39, 8  ;;  %v1903_v37 = vsub.s32 4, %v1879_v14  ;;  %v2147_v31 = vshrl.u32 %v5204_v41, %v2144_v25  ;;  %v2150_v43 = vshrl.u32 %v5205_v45, %v2144_v25 }
 0x18e   : > { %v1883_v29 = vsub.s32 0, %v5754_v24  ;;  %v1982_v35 = vadd.s32 536870912, %v1981_v28  ;;  %v2153_v50 = vshrl.u32 %v5206_v49, %v2144_v25  ;;  %v2156_v53 = vshrl.u32 %v5207_v51, %v2144_v25 }
 0x18f   : > { %v5770_v55 = vadd.s32 4294967169, %v2237_v8  ;;  %v2146_v60 = vshll.u32 %v5203_v33, %v2143_v15  ;;  %v2149_v57 = vshll.u32 %v5204_v41, %v2143_v15  ;;  %v5776_v2 = vand.u32 8388607, %v7668_v7 }
 0x190   : > { %v4445_v47 = vmin.u32 %v1883_v29, %v5754_v24  ;;  %v1983_v58 = vshrl.u32 %v1982_v35, 30  ;;  %v2152_v13 = vshll.u32 %v5205_v45, %v2143_v15  ;;  %v2155_v10 = vshll.u32 %v5206_v49, %v2143_v15 }
 0x191   : > { %v2159_v16 = vshrl.u32 %v7669_v62, %v2144_v25  ;;  %v1904_v9 = vsel %vm1819_vm15, %v1903_v37, %v1879_v14  ;;  %v2148_v39 = vor.u32 %v2147_v31, %v2146_v60  ;;  %v2151_v12 = vor.u32 %v2150_v43, %v2149_v57 }
 0x192   : > { %v1885_v63 = vclz %v4445_v47  ;;  %v1984_v19 = vshll.u32 %v1983_v58, 30  ;;  %v2154_v56 = vor.u32 %v2153_v50, %v2152_v13  ;;  %v2157_v8 = vor.u32 %v2156_v53, %v2155_v10 }
 0x193   : > { %v2158_v29 = vshll.u32 %v5207_v51, %v2143_v15  ;;  %v2007_v47 = vsub.s32 4, %v1983_v58  ;;  %v2145_v7 = vshrl.u32 %v5203_v33, %v2144_v25  ;;  %vm2161_vm2 = vcmp.lt.s32.totalorder %v5761_v22, 1 }
 0x194   : > { %v4446_v26 = vadd.s32 4294967294, %v1885_v63  ;;  %v5791_v35 = vsub.s32 %v1981_v28, %v1984_v19  ;;  %vm2162_vm4 = vcmp.lt.s32.totalorder %v5761_v22, 2  ;;  %vm2163_vm5 = vcmp.lt.s32.totalorder %v5761_v22, 3 }
 0x195   : > { %v2160_v62 = vor.u32 %v2159_v16, %v2158_v29  ;;  %vm5799_vm6 = vcmp.le.f32.partialorder %v1921_v59, 0.7853982  ;;  %vm2164_vm7 = vcmp.lt.s32.totalorder %v5761_v22, 4  ;;  %v2169_v25 = vsel %vm2161_vm2, %v2148_v39, %v2151_v12 }
 0x196   : > { %vm4447_vm3 = vcmp.lt.s32.totalorder %v4446_v26, 0  ;;  %v1987_v15 = vsub.s32 0, %v5791_v35  ;;  %v2166_v43 = vsel %vm2164_vm7, %v2154_v56, 2102212464  ;;  %v2170_v50 = vsel %vm2164_vm7, %v2157_v8, 920167782 }
 0x197   : > { %v1888_v14 = vsel %vm4447_vm3, 0, %v4446_v26  ;;  %v2171_v59 = vsel %vm2163_vm5, %v2154_v56, %v2170_v50  ;;  %v2173_v57 = vsel %vm2161_vm2, %v2151_v12, %v2154_v56  ;;  %v2174_v16 = vsel %vm2164_vm7, %v2160_v62, 1326507024 }
 0x198   : > { %v1889_v28 = vsub.s32 32, %v1888_v14  ;;  %v1893_v31 = vsub.s32 4294967266, %v1888_v14  ;;  %v1890_v53 = vshll.u32 %v5754_v24, %v1888_v14  ;;  %v4449_v60 = vmin.u32 %v1987_v15, %v5791_v35 }
 0x199   : > { %v2172_v10 = vsel %vm2162_vm4, %v2169_v25, %v2171_v59  ;;  %v1906_v19 = vsel %vm5780_vm0, 0, %v1904_v9  ;;  %v2165_v24 = vsel %vm2161_vm2, %v2145_v7, %v2148_v39  ;;  %v2167_v29 = vsel %vm2163_vm5, %v2151_v12, %v2166_v43 }
 0x19a   : > { %v1891_v63 = vshrl.u32 %v1873_v21, %v1889_v28  ;;  %v1894_v13 = vadd.s32 127, %v1893_v31  ;;  %v1989_v26 = vclz %v4449_v60  ;;  %v2008_v21 = vsel %vm1923_vm1, %v2007_v47, %v1983_v58 }
 0x19b   : > { %v2175_v56 = vsel %vm2163_vm5, %v2157_v8, %v2174_v16  ;;  %v5828_v9 = vmul.u32.u64.low %v5763_v27, %v2172_v10  ;;  %v5829_v28 = vmul.u32.u64.high %v5763_v27, %v2172_v10, %v5828_v9  ;;  %v2168_v39 = vsel %vm2162_vm4, %v2165_v24, %v2167_v29 }
 0x19c   : > { %v1892_v14 = vor.u32 %v1891_v63, %v1890_v53  ;;  %v1895_v15 = vshll.u32 %v1894_v13, 23  ;;  %v4450_v25 = vadd.s32 4294967294, %v1989_v26  ;;  %v2176_v62 = vsel %vm2162_vm4, %v2173_v57, %v2175_v56 }
 0x19d   : > { %v5835_v12 = vmul.u32.u64.low %v5763_v27, %v2176_v62  ;;  %v5836_v31 = vmul.u32.u64.high %v5763_v27, %v2176_v62, %v5835_v12  ;;  %v1910_v58 = vadd.s32 3, %v1906_v19  ;;  %v1977_v8 = vadd.s32 %v5727_v61, %v5735_v1  ;;  %v5848_v61 = vpop.f32.mrb[9].mxu0 }
 0x19e   : > { %v1896_v7 = vor.u32 4788187, %v1895_v15  ;;  %vm4451_vm8 = vcmp.lt.s32.totalorder %v4450_v25, 0  ;;  %v2243_v47 = vadd.s32 1, %v5770_v55  ;;  %v1899_v50 = vcvt.s32.f32 %v1892_v14 }
 0x19f   : > { %v1992_v53 = vsel %vm4451_vm8, 0, %v4450_v25  ;;  %v2010_v60 = vsel %vm5799_vm6, 0, %v2008_v21  ;;  %v2184_v57 = vmul.u32 %v5763_v27, %v2168_v39  ;;  %v2187_v63 = vadd.s32 1, %v5829_v28 }
 0x1a0   : > { %v1897_v43 = vand.u32 2147483647, %v1896_v7  ;;  %v1993_v59 = vsub.s32 32, %v1992_v53  ;;  %v1997_v22 = vsub.s32 4294967266, %v1992_v53  ;;  %v1994_v10 = vshll.u32 %v5791_v35, %v1992_v53 }
 0x1a1   : > { %vm2186_vm9 = vc.u32 %v5836_v31, %v5828_v9  ;;  %vm2244_vm10 = vcmp.gt.s32.totalorder %v2243_v47, 0  ;;  %v2014_v24 = vadd.s32 3, %v2010_v60  ;;  %v5856_v62 = vand.u32 3, %v1910_v58 }
 0x1a2   : > { %v1900_v13 = vmul.f32 %v1899_v50, %v1897_v43  ;;  %v1995_v1 = vshrl.u32 %v1977_v8, %v1993_v59  ;;  %v1998_v55 = vadd.s32 127, %v1997_v22  ;;  %v2188_v16 = vsel %vm2186_vm9, %v2187_v63, %v5829_v28 }
 0x1a3   : > { %v2245_v19 = vsel %vm2244_vm10, %v2243_v47, 0  ;;  %v2189_v29 = vadd.s32 %v2188_v16, %v2184_v57  ;;  %vm2131_vm11 = vcmp.lt.s32.totalorder %v5649_v0, 0  ;;  %v5859_v28 = vand.u32 3, %v2014_v24 }
 0x1a4   : > { %v1901_v26 = vxor.u32 2147483648, %v1900_v13  ;;  %v2247_v27 = vand.u32 31, %v2245_v19  ;;  %v1996_v14 = vor.u32 %v1995_v1, %v1994_v10  ;;  %v1999_v15 = vshll.u32 %v1998_v55, 23 }
 0x1a5   : > { %v2190_v21 = vadd.s32 536870912, %v2189_v29  ;;  %v2241_v12 = vor.u32 8388608, %v5776_v2  ;;  %v2444_v43 = vand.u32 2139095040, %v5743_v17  ;;  %vm5865_vm12 = vcmp.le.f32.partialorder %v2129_v18, 0.7853982 }
 0x1a6   : > { %v1902_v35 = vsel %vm1819_vm15, %v1901_v26, %v1900_v13  ;;  %v2248_v56 = vsub.s32 32, %v2247_v27  ;;  %v2000_v7 = vor.u32 4788187, %v1999_v15  ;;  %v2003_v47 = vcvt.s32.f32 %v1996_v14 }
 0x1a7   : > { %v1905_v25 = vsel %vm5780_vm0, %v5639_v52, %v1902_v35  ;;  %v2191_v39 = vshrl.u32 %v2190_v21, 30  ;;  %v5869_v50 = vshrl.u32 %v2245_v19, 5  ;;  %v2259_v22 = vshll.u32 %v5206_v49, %v2247_v27 }
 0x1a8   : > { %5009 = vcosq.f32 %v1905_v25  ;;  %v2001_v8 = vand.u32 2147483647, %v2000_v7  ;;  %v2251_v53 = vshrl.u32 %v5204_v41, %v2248_v56  ;;  %v2254_v60 = vshrl.u32 %v5205_v45, %v2248_v56 }
 0x1a9   : > { %5011 = vsinq.f32 %v1905_v25  ;;  %v2192_v58 = vshll.u32 %v2191_v39, 30  ;;  %v2257_v2 = vshrl.u32 %v5206_v49, %v2248_v56  ;;  %v2260_v57 = vshrl.u32 %v5207_v51, %v2248_v56 }
 0x1aa   : > { %v2004_v59 = vmul.f32 %v2003_v47, %v2001_v8  ;;  %vm1916_vm13 = vcmp.eq.s32.totalorder %v5856_v62, 2  ;;  %v2215_v63 = vsub.s32 4, %v2191_v39  ;;  %v2250_v13 = vshll.u32 %v5203_v33, %v2247_v27 }
 0x1ab   : > { %v5877_v18 = vsub.s32 %v2189_v29, %v2192_v58  ;;  %v2253_v10 = vshll.u32 %v5204_v41, %v2247_v27  ;;  %vm1913_vm14 = vcmp.eq.s32.totalorder %v5856_v62, 0  ;;  %v2256_v55 = vshll.u32 %v5205_v45, %v2247_v27 }
 0x1ac   : > { %v2005_v1 = vxor.u32 2147483648, %v2004_v59  ;;  %v2261_v16 = vor.u32 %v2260_v57, %v2259_v22  ;;  %v7679_v19 = vmov 1326507024   ;;  %vm1912_vm15 = vcmp.lt.s32.totalorder %v5856_v62, 2 }
 0x1ad   : > { %v2263_v26 = vshrl.u32 %v7679_v19, %v2248_v56  ;;  %v2185_v24 = vadd.s32 %v5828_v9, %v5836_v31  ;;  %v2195_v29 = vsub.s32 0, %v5877_v18  ;;  %v2252_v14 = vor.u32 %v2251_v53, %v2250_v13 }
 0x1ae   : > { %v2255_v15 = vor.u32 %v2254_v60, %v2253_v10  ;;  %vm1909_vm0 = vweird.f32 %v5639_v52  ;;  %v2006_v35 = vsel %vm1923_vm1, %v2005_v1, %v2004_v59  ;;  %v2258_v21 = vor.u32 %v2257_v2, %v2256_v55 }
 0x1af   : > { %v2262_v25 = vshll.u32 %v5207_v51, %v2247_v27  ;;  %v5893_v7 = vshll.u32 %v2241_v12, 8  ;;  %v2009_v9 = vsel %vm5799_vm6, %v5641_v54, %v2006_v35  ;;  %v4457_v31 = vmin.u32 %v2195_v29, %v5877_v18 }
 0x1b0   : > { %v2216_v8 = vsel %vm2131_vm11, %v2215_v63, %v2191_v39  ;;  %vm2268_vm2 = vcmp.lt.s32.totalorder %v5869_v50, 4  ;;  %5013 = vcosq.f32 %v2009_v9  ;;  %vm2265_vm1 = vcmp.lt.s32.totalorder %v5869_v50, 1 }
 0x1b1   : > { %v2264_v47 = vor.u32 %v2263_v26, %v2262_v25  ;;  %v2274_v27 = vsel %vm2268_vm2, %v2261_v16, 920167782  ;;  %5015 = vsinq.f32 %v2009_v9  ;;  %v2197_v37 = vclz %v4457_v31 }
 0x1b2   : > { %v5010_v12 = vpop.eup %5009  ;;  %vm2267_vm3 = vcmp.lt.s32.totalorder %v5869_v50, 3  ;;  %v2273_v39 = vsel %vm2265_vm1, %v2252_v14, %v2255_v15  ;;  %v2218_v60 = vsel %vm5865_vm12, 0, %v2216_v8  ;;  %v2249_v59 = vshrl.u32 %v5203_v33, %v2248_v56 }
 0x1b3   : > { %v5012_v58 = vpop.eup %5011  ;;  %v1917_v53 = vxor.u32 2147483648, %v5010_v12  ;;  %v2275_v2 = vsel %vm2267_vm3, %v2258_v21, %v2274_v27  ;;  %v4458_v57 = vadd.s32 4294967294, %v2197_v37  ;;  %vm2266_vm4 = vcmp.lt.s32.totalorder %v5869_v50, 2 }
 0x1b4   : > { %v1914_v22 = vxor.u32 2147483648, %v5012_v58  ;;  %v2270_v63 = vsel %vm2268_vm2, %v2258_v21, 2102212464  ;;  %v2276_v10 = vsel %vm2266_vm4, %v2273_v39, %v2275_v2  ;;  %v2277_v1 = vsel %vm2265_vm1, %v2255_v15, %v2258_v21 }
 0x1b5   : > { %v1918_v13 = vsel %vm1916_vm13, %v1917_v53, %v5012_v58  ;;  %v2278_v56 = vsel %vm2268_vm2, %v2264_v47, 1326507024  ;;  %vm4459_vm5 = vcmp.lt.s32.totalorder %v4458_v57, 0  ;;  %v2445_v29 = vshrl.u32 %v2444_v43, 23 }
 0x1b6   : > { %v1915_v55 = vsel %vm1913_vm14, %v5010_v12, %v1914_v22  ;;  %v2279_v26 = vsel %vm2267_vm3, %v2261_v16, %v2278_v56  ;;  %v2200_v25 = vsel %vm4459_vm5, 0, %v4458_v57  ;;  %v2269_v9 = vsel %vm2265_vm1, %v2249_v59, %v2252_v14  ;;  %v5943_v16 = vpop.f32.mrb[10].mxu0 }
 0x1b7   : > { %v1919_v35 = vsel %vm1912_vm15, %v1915_v55, %v1918_v13  ;;  %v2280_v21 = vsel %vm2266_vm4, %v2277_v1, %v2279_v26  ;;  %vm2013_vm6 = vweird.f32 %v5641_v54  ;;  %v2201_v8 = vsub.s32 32, %v2200_v25 }
 0x1b8   : > { %v1920_v31 = vsel %vm1909_vm0, nan, %v1919_v35  ;;  %v2205_v47 = vsub.s32 4294967266, %v2200_v25  ;;  %v2271_v43 = vsel %vm2267_vm3, %v2255_v15, %v2270_v63  ;;  %v2202_v12 = vshll.u32 %v5877_v18, %v2200_v25 }
 0x1b9   : > { %4313 = vst [vmem:[%s5946_s6] sm:$0xff] %v1920_v31  ;;  %v5950_v62 = vmul.u32.u64.low %v5893_v7, %v2280_v21  ;;  %v5951_v14 = vmul.u32.u64.high %v5893_v7, %v2280_v21, %v5950_v62  ;;  %v5954_v52 = vmul.u32.u64.low %v5893_v7, %v2276_v10  ;;  %v5955_v27 = vmul.u32.u64.high %v5893_v7, %v2276_v10, %v5954_v52 }
 0x1ba   : > { %v2203_v37 = vshrl.u32 %v2185_v24, %v2201_v8  ;;  %v2206_v39 = vadd.s32 127, %v2205_v47  ;;  %v4468_v15 = vadd.s32 4294967169, %v2445_v29  ;;  %v5014_v58 = vpop.eup %5013  ;;  %vm2016_vm7 = vcmp.lt.s32.totalorder %v5859_v28, 2 }
 0x1bb   : > { %vm2017_vm8 = vcmp.eq.s32.totalorder %v5859_v28, 0  ;;  %vm2020_vm9 = vcmp.eq.s32.totalorder %v5859_v28, 2  ;;  %v2272_v53 = vsel %vm2266_vm4, %v2269_v9, %v2271_v43  ;;  %v5016_v59 = vpop.eup %5015  ;;  %v2021_v2 = vxor.u32 2147483648, %v5014_v58 }
 0x1bc   : > { %v2204_v22 = vor.u32 %v2203_v37, %v2202_v12  ;;  %v2207_v57 = vshll.u32 %v2206_v39, 23  ;;  %v2451_v63 = vadd.s32 1, %v4468_v15  ;;  %v2018_v13 = vxor.u32 2147483648, %v5016_v59 }
 0x1bd   : > { %v2222_v18 = vadd.s32 3, %v2218_v60  ;;  %vm2290_vm10 = vc.u32 %v5951_v14, %v5954_v52  ;;  %v2291_v24 = vadd.s32 1, %v5955_v27  ;;  %v2022_v10 = vsel %vm2020_vm9, %v2021_v2, %v5016_v59 }
 0x1be   : > { %v2208_v1 = vor.u32 4788187, %v2207_v57  ;;  %v2288_v56 = vmul.u32 %v5893_v7, %v2272_v53  ;;  %vm2452_vm13 = vcmp.gt.s32.totalorder %v2451_v63, 0  ;;  %v2019_v50 = vsel %vm2017_vm8, %v5014_v58, %v2018_v13 }
 0x1bf   : > { %v2292_v55 = vsel %vm2290_vm10, %v2291_v24, %v5955_v27  ;;  %v2441_v26 = vand.u32 2147483647, %v5743_v17  ;;  %v2453_v29 = vsel %vm2452_vm13, %v2451_v63, 0  ;;  %v2023_v60 = vsel %vm2016_vm7, %v2019_v50, %v2022_v10 }
 0x1c0   : > { %v2209_v35 = vand.u32 2147483647, %v2208_v1  ;;  %v2211_v25 = vcvt.s32.f32 %v2204_v22  ;;  %v2293_v9 = vadd.s32 %v2292_v55, %v2288_v56  ;;  %v2024_v21 = vsel %vm2013_vm6, nan, %v2023_v60 }
 0x1c1   : > { %v2455_v31 = vand.u32 31, %v2453_v29  ;;  %4314 = vst [vmem:[%s5946_s6 + $0x8] sm:$0xff] %v2024_v21  ;;  %v5977_v8 = vand.u32 3, %v2222_v18  ;;  %v2448_v43 = vand.u32 8388607, %v2441_v26  ;;  %v2454_v62 = vshrl.u32 %v2453_v29, 5 }
 0x1c2   : > { %v2212_v7 = vmul.f32 %v2211_v25, %v2209_v35  ;;  %v2294_v47 = vadd.s32 536870912, %v2293_v9  ;;  %v2548_v28 = vand.u32 2139095040, %v5747_v4  ;;  %vm2221_vm4 = vweird.f32 %v5649_v0 }
 0x1c3   : > { %v2456_v27 = vsub.s32 32, %v2455_v31  ;;  %v2458_v39 = vshll.u32 %v5203_v33, %v2455_v31  ;;  %v2461_v54 = vshll.u32 %v5204_v41, %v2455_v31  ;;  %v2464_v53 = vshll.u32 %v5205_v45, %v2455_v31 }
 0x1c4   : > { %v2213_v12 = vxor.u32 2147483648, %v2212_v7  ;;  %v5982_v37 = vshrl.u32 %v2294_v47, 30  ;;  %v2467_v57 = vshll.u32 %v5206_v49, %v2455_v31  ;;  %v2449_v56 = vor.u32 8388608, %v2448_v43 }
 0x1c5   : > { %v2459_v15 = vshrl.u32 %v5204_v41, %v2456_v27  ;;  %v2462_v58 = vshrl.u32 %v5205_v45, %v2456_v27  ;;  %v2465_v59 = vshrl.u32 %v5206_v49, %v2456_v27  ;;  %v2468_v63 = vshrl.u32 %v5207_v51, %v2456_v27 }
 0x1c6   : > { %v2214_v2 = vsel %vm2131_vm11, %v2213_v12, %v2212_v7  ;;  %v2296_v22 = vshll.u32 %v5982_v37, 30  ;;  %v2470_v55 = vshll.u32 %v5207_v51, %v2455_v31  ;;  %v2471_v29 = vshrl.u32 %v7679_v19, %v2456_v27 }
 0x1c7   : > { %v2217_v13 = vsel %vm5865_vm12, %v5649_v0, %v2214_v2  ;;  %v2460_v18 = vor.u32 %v2459_v15, %v2458_v39  ;;  %v2463_v24 = vor.u32 %v2462_v58, %v2461_v54  ;;  %v2466_v10 = vor.u32 %v2465_v59, %v2464_v53 }
 0x1c8   : > { %5017 = vcosq.f32 %v2217_v13  ;;  %v5998_v1 = vsub.s32 %v2293_v9, %v2296_v22  ;;  %v2469_v50 = vor.u32 %v2468_v63, %v2467_v57  ;;  %v2549_v60 = vshrl.u32 %v2548_v28, 23 }
 0x1c9   : > { %5019 = vsinq.f32 %v2217_v13  ;;  %vm2235_vm11 = vcmp.lt.s32.totalorder %v5653_v11, 0  ;;  %vm2473_vm14 = vcmp.lt.s32.totalorder %v2454_v62, 1  ;;  %vm2475_vm12 = vcmp.lt.s32.totalorder %v2454_v62, 3 }
 0x1ca   : > { %v2299_v35 = vsub.s32 0, %v5998_v1  ;;  %vm2476_vm15 = vcmp.lt.s32.totalorder %v2454_v62, 4  ;;  %v2472_v5 = vor.u32 %v2471_v29, %v2470_v55  ;;  %v2481_v9 = vsel %vm2473_vm14, %v2460_v18, %v2463_v24 }
 0x1cb   : > { %v2478_v25 = vsel %vm2476_vm15, %v2466_v10, 2102212464  ;;  %v2482_v21 = vsel %vm2476_vm15, %v2469_v50, 920167782  ;;  %v2457_v47 = vshrl.u32 %v5203_v33, %v2456_v27  ;;  %vm2474_vm0 = vcmp.lt.s32.totalorder %v2454_v62, 2 }
 0x1cc   : > { %v4461_v7 = vmin.u32 %v2299_v35, %v5998_v1  ;;  %v2483_v31 = vsel %vm2475_vm12, %v2466_v10, %v2482_v21  ;;  %vm2225_vm2 = vcmp.eq.s32.totalorder %v5977_v8, 0  ;;  %v2485_v28 = vsel %vm2473_vm14, %v2463_v24, %v2466_v10 }
 0x1cd   : > { %v2484_v43 = vsel %vm2474_vm0, %v2481_v9, %v2483_v31  ;;  %v2486_v12 = vsel %vm2476_vm15, %v2472_v5, 1326507024  ;;  %v2489_v39 = vshll.u32 %v2449_v56, 8  ;;  %vm2224_vm1 = vcmp.lt.s32.totalorder %v5977_v8, 2 }
 0x1ce   : > { %vm2228_vm3 = vcmp.eq.s32.totalorder %v5977_v8, 2  ;;  %v2301_v54 = vclz %v4461_v7  ;;  %v2477_v15 = vsel %vm2473_vm14, %v2457_v47, %v2460_v18  ;;  %v2479_v27 = vsel %vm2475_vm12, %v2463_v24, %v2478_v25 }
 0x1cf   : > { %v7680_v58 = vand.u32 2147483647, %v5653_v11  ;;  %v2319_v59 = vsub.s32 4, %v5982_v37  ;;  %v2487_v2 = vsel %vm2475_vm12, %v2469_v50, %v2486_v12  ;;  %v2545_v18 = vand.u32 2147483647, %v5747_v4  ;;  %v6038_v50 = vpop.f32.mrb[16].mxu1 }
 0x1d0   : > { %v6024_v22 = vmul.u32.u64.low %v2489_v39, %v2484_v43  ;;  %v6025_v57 = vmul.u32.u64.high %v2489_v39, %v2484_v43, %v6024_v22  ;;  %v4462_v63 = vadd.s32 4294967294, %v2301_v54  ;;  %v2488_v13 = vsel %vm2474_vm0, %v2485_v28, %v2487_v2 }
 0x1d1   : > { %vm6018_vm5 = vcmp.le.f32.partialorder %v7680_v58, 0.7853982  ;;  %v4472_v24 = vadd.s32 4294967169, %v2549_v60  ;;  %v2480_v10 = vsel %vm2474_vm0, %v2477_v15, %v2479_v27  ;;  %v6036_v29 = vadd.f32 %v5661_v3, %v5619_v30 }
 0x1d2   : > { %v6031_v56 = vmul.u32.u64.low %v2489_v39, %v2488_v13  ;;  %v6032_v55 = vmul.u32.u64.high %v2489_v39, %v2488_v13, %v6031_v56  ;;  %v5018_v35 = vpop.eup %5017  ;;  %v2289_v5 = vadd.s32 %v5954_v52, %v5951_v14  ;;  %vm4463_vm6 = vcmp.lt.s32.totalorder %v4462_v63, 0 }
 0x1d3   : > { %v2555_v25 = vadd.s32 1, %v4472_v24  ;;  %v6044_v60 = vadd.f32 %v5663_v23, %v5621_v32  ;;  %v5020_v62 = vpop.eup %5019  ;;  %v2229_v9 = vxor.u32 2147483648, %v5018_v35  ;;  %v2304_v21 = vsel %vm4463_vm6, 0, %v4462_v63 }
 0x1d4   : > { %v2320_v30 = vsel %vm2235_vm11, %v2319_v59, %v5982_v37  ;;  %v2499_v3 = vadd.s32 1, %v6025_v57  ;;  %v2226_v7 = vxor.u32 2147483648, %v5020_v62  ;;  %v2305_v47 = vsub.s32 32, %v2304_v21 }
 0x1d5   : > { %v2309_v31 = vsub.s32 4294967266, %v2304_v21  ;;  %v2496_v43 = vmul.u32 %v2489_v39, %v2480_v10  ;;  %v2230_v14 = vsel %vm2228_vm3, %v2229_v9, %v5020_v62  ;;  %v2306_v32 = vshll.u32 %v5998_v1, %v2304_v21 }
 0x1d6   : > { %vm2498_vm7 = vc.u32 %v6032_v55, %v6024_v22  ;;  %vm2556_vm8 = vcmp.gt.s32.totalorder %v2555_v25, 0  ;;  %v2227_v23 = vsel %vm2225_vm2, %v5018_v35, %v2226_v7  ;;  %v2307_v52 = vshrl.u32 %v2289_v5, %v2305_v47 }
 0x1d7   : > { %v2310_v37 = vadd.s32 127, %v2309_v31  ;;  %v2500_v28 = vsel %vm2498_vm7, %v2499_v3, %v6025_v57  ;;  %v2231_v12 = vsel %vm2224_vm1, %v2227_v23, %v2230_v14  ;;  %v2552_v54 = vand.u32 8388607, %v2545_v18 }
 0x1d8   : > { %v2501_v39 = vadd.s32 %v2500_v28, %v2496_v43  ;;  %v2557_v15 = vsel %vm2556_vm8, %v2555_v25, 0  ;;  %v2232_v1 = vsel %vm2221_vm4, nan, %v2231_v12  ;;  %v2308_v27 = vor.u32 %v2307_v52, %v2306_v32 }
 0x1d9   : > { %v2311_v58 = vshll.u32 %v2310_v37, 23  ;;  %v2322_v59 = vsel %vm6018_vm5, 0, %v2320_v30  ;;  %4316 = vst [vmem:[%s5946_s6 + $0x18] sm:$0xff] %v2232_v1  ;;  %v2559_v63 = vand.u32 31, %v2557_v15  ;;  %v2553_v24 = vor.u32 8388608, %v2552_v54 }
 0x1da   : > { %v2502_v2 = vadd.s32 536870912, %v2501_v39  ;;  %v2326_v13 = vadd.s32 3, %v2322_v59  ;;  %v2315_v35 = vcvt.s32.f32 %v2308_v27  ;;  %v2558_v5 = vshrl.u32 %v2557_v15, 5 }
 0x1db   : > { %v2312_v57 = vor.u32 4788187, %v2311_v58  ;;  %v2560_v10 = vsub.s32 32, %v2559_v63  ;;  %v2562_v0 = vshll.u32 %v5203_v33, %v2559_v63  ;;  %v2565_v9 = vshll.u32 %v5204_v41, %v2559_v63 }
 0x1dc   : > { %v6067_v8 = vshrl.u32 %v2502_v2, 30  ;;  %v2568_v21 = vshll.u32 %v5205_v45, %v2559_v63  ;;  %v2571_v43 = vshll.u32 %v5206_v49, %v2559_v63  ;;  %v6081_v28 = vand.u32 3, %v2326_v13 }
 0x1dd   : > { %v2313_v56 = vand.u32 2147483647, %v2312_v57  ;;  %v2563_v62 = vshrl.u32 %v5204_v41, %v2560_v10  ;;  %v2566_v3 = vshrl.u32 %v5205_v45, %v2560_v10  ;;  %v2569_v7 = vshrl.u32 %v5206_v49, %v2560_v10 }
 0x1de   : > { %v2504_v25 = vshll.u32 %v6067_v8, 30  ;;  %v2572_v47 = vshrl.u32 %v5207_v51, %v2560_v10  ;;  %v2575_v14 = vshrl.u32 %v7679_v19, %v2560_v10  ;;  %v2574_v15 = vshll.u32 %v5207_v51, %v2559_v63 }
 0x1df   : > { %v2316_v30 = vmul.f32 %v2315_v35, %v2313_v56  ;;  %v2564_v23 = vor.u32 %v2563_v62, %v2562_v0  ;;  %v2567_v52 = vor.u32 %v2566_v3, %v2565_v9  ;;  %v2570_v37 = vor.u32 %v2569_v7, %v2568_v21 }
 0x1e0   : > { %v6077_v31 = vsub.s32 %v2501_v39, %v2504_v25  ;;  %v2573_v54 = vor.u32 %v2572_v47, %v2571_v43  ;;  %vm2443_vm9 = vcmp.lt.s32.totalorder %v5743_v17, 0  ;;  %v2561_v39 = vshrl.u32 %v5203_v33, %v2560_v10 }
 0x1e1   : > { %v2317_v32 = vxor.u32 2147483648, %v2316_v30  ;;  %vm2577_vm10 = vcmp.lt.s32.totalorder %v2558_v5, 1  ;;  %v2593_v27 = vshll.u32 %v2553_v24, 8  ;;  %v2576_v2 = vor.u32 %v2575_v14, %v2574_v15 }
 0x1e2   : > { %v2507_v12 = vsub.s32 0, %v6077_v31  ;;  %vm2580_vm13 = vcmp.lt.s32.totalorder %v2558_v5, 4  ;;  %v2585_v57 = vsel %vm2577_vm10, %v2564_v23, %v2567_v52  ;;  %vm2579_vm14 = vcmp.lt.s32.totalorder %v2558_v5, 3 }
 0x1e3   : > { %v2318_v1 = vsel %vm2235_vm11, %v2317_v32, %v2316_v30  ;;  %v2582_v63 = vsel %vm2580_vm13, %v2570_v37, 2102212464  ;;  %v2586_v13 = vsel %vm2580_vm13, %v2573_v54, 920167782  ;;  %vm2578_vm11 = vcmp.lt.s32.totalorder %v2558_v5, 2 }
 0x1e4   : > { %v2321_v58 = vsel %vm6018_vm5, %v5653_v11, %v2318_v1  ;;  %v4469_v59 = vmin.u32 %v2507_v12, %v6077_v31  ;;  %v2527_v24 = vsub.s32 4, %v6067_v8  ;;  %v2581_v53 = vsel %vm2577_vm10, %v2561_v39, %v2564_v23  ;;  %v6125_v1 = vpop.f32.mrb[11].mxu0 }
 0x1e5   : > { %5021 = vcosq.f32 %v2321_v58  ;;  %v2587_v10 = vsel %vm2579_vm14, %v2570_v37, %v2586_v13  ;;  %v2589_v35 = vsel %vm2577_vm10, %v2567_v52, %v2570_v37  ;;  %v2583_v25 = vsel %vm2579_vm14, %v2567_v52, %v2582_v63 }
 0x1e6   : > { %5023 = vsinq.f32 %v2321_v58  ;;  %v2509_v56 = vclz %v4469_v59  ;;  %v2588_v62 = vsel %vm2578_vm11, %v2585_v57, %v2587_v10  ;;  %v2590_v9 = vsel %vm2580_vm13, %v2576_v2, 1326507024 }
 0x1e7   : > { %v2591_v21 = vsel %vm2579_vm14, %v2573_v54, %v2590_v9  ;;  %v6101_v30 = vmul.u32.u64.low %v2593_v27, %v2588_v62  ;;  %v6102_v3 = vmul.u32.u64.high %v2593_v27, %v2588_v62, %v6101_v30  ;;  %v2756_v7 = vand.u32 2139095040, %v6036_v29 }
 0x1e8   : > { %v4470_v0 = vadd.s32 4294967294, %v2509_v56  ;;  %vm6108_vm12 = vcmp.le.f32.partialorder %v2441_v26, 0.7853982  ;;  %v2497_v43 = vadd.s32 %v6024_v22, %v6032_v55  ;;  %v2592_v14 = vsel %vm2578_vm11, %v2589_v35, %v2591_v21 }
 0x1e9   : > { %v6115_v23 = vmul.u32.u64.low %v2593_v27, %v2592_v14  ;;  %v6116_v52 = vmul.u32.u64.high %v2593_v27, %v2592_v14, %v6115_v23  ;;  %v2757_v37 = vshrl.u32 %v2756_v7, 23  ;;  %v2528_v26 = vsel %vm2443_vm9, %v2527_v24, %v6067_v8 }
 0x1ea   : > { %vm4471_vm15 = vcmp.lt.s32.totalorder %v4470_v0, 0  ;;  %v2584_v15 = vsel %vm2578_vm11, %v2581_v53, %v2583_v25  ;;  %vm2328_vm0 = vcmp.lt.s32.totalorder %v6081_v28, 2  ;;  %vm2329_vm2 = vcmp.eq.s32.totalorder %v6081_v28, 0 }
 0x1eb   : > { %v2512_v32 = vsel %vm4471_vm15, 0, %v4470_v0  ;;  %v2603_v22 = vadd.s32 1, %v6102_v3  ;;  %v4480_v55 = vadd.s32 4294967169, %v2757_v37  ;;  %v2753_v2 = vand.u32 2147483647, %v6036_v29 }
 0x1ec   : > { %v2513_v12 = vsub.s32 32, %v2512_v32  ;;  %v2517_v54 = vsub.s32 4294967266, %v2512_v32  ;;  %v2514_v39 = vshll.u32 %v6077_v31, %v2512_v32  ;;  %v2530_v8 = vsel %vm6108_vm12, 0, %v2528_v26 }
 0x1ed   : > { %v2600_v5 = vmul.u32 %v2593_v27, %v2584_v15  ;;  %vm2602_vm1 = vc.u32 %v6116_v52, %v6101_v30  ;;  %v2763_v57 = vadd.s32 1, %v4480_v55  ;;  %vm2332_vm3 = vcmp.eq.s32.totalorder %v6081_v28, 2 }
 0x1ee   : > { %v2515_v58 = vshrl.u32 %v2497_v43, %v2513_v12  ;;  %v2518_v59 = vadd.s32 127, %v2517_v54  ;;  %v2604_v10 = vsel %vm2602_vm1, %v2603_v22, %v6102_v3  ;;  %v2534_v62 = vadd.s32 3, %v2530_v8 }
 0x1ef   : > { %v5022_v63 = vpop.eup %5021  ;;  %v2605_v35 = vadd.s32 %v2604_v10, %v2600_v5  ;;  %vm2764_vm4 = vcmp.gt.s32.totalorder %v2763_v57, 0  ;;  %v2760_v7 = vand.u32 8388607, %v2753_v2  ;;  %vm2325_vm5 = vweird.f32 %v5653_v11 }
 0x1f0   : > { %v5024_v13 = vpop.eup %5023  ;;  %v2333_v56 = vxor.u32 2147483648, %v5022_v63  ;;  %v2516_v24 = vor.u32 %v2515_v58, %v2514_v39  ;;  %v2519_v53 = vshll.u32 %v2518_v59, 23  ;;  %v2765_v27 = vsel %vm2764_vm4, %v2763_v57, 0 }
 0x1f1   : > { %v2330_v31 = vxor.u32 2147483648, %v5024_v13  ;;  %v2606_v21 = vadd.s32 536870912, %v2605_v35  ;;  %v2767_v43 = vand.u32 31, %v2765_v27  ;;  %v2860_v54 = vand.u32 2139095040, %v6044_v60 }
 0x1f2   : > { %v2334_v0 = vsel %vm2332_vm3, %v2333_v56, %v5024_v13  ;;  %v2520_v25 = vor.u32 4788187, %v2519_v53  ;;  %v2523_v32 = vcvt.s32.f32 %v2516_v24  ;;  %v6146_v15 = vand.u32 3, %v2534_v62 }
 0x1f3   : > { %v2331_v9 = vsel %vm2329_vm2, %v5022_v63, %v2330_v31  ;;  %v6142_v37 = vshrl.u32 %v2606_v21, 30  ;;  %v2768_v12 = vsub.s32 32, %v2767_v43  ;;  %v2761_v55 = vor.u32 8388608, %v2760_v7 }
 0x1f4   : > { %v2335_v3 = vsel %vm2328_vm0, %v2331_v9, %v2334_v0  ;;  %v2521_v14 = vand.u32 2147483647, %v2520_v25  ;;  %v2770_v11 = vshll.u32 %v5203_v33, %v2767_v43  ;;  %v2766_v5 = vshrl.u32 %v2765_v27, 5 }
 0x1f5   : > { %v2336_v23 = vsel %vm2325_vm5, nan, %v2335_v3  ;;  %v2608_v22 = vshll.u32 %v6142_v37, 30  ;;  %v2771_v28 = vshrl.u32 %v5204_v41, %v2768_v12  ;;  %v2774_v58 = vshrl.u32 %v5205_v45, %v2768_v12 }
 0x1f6   : > { %4317 = vst [vmem:[%s5946_s6 + $0x20] sm:$0xff] %v2336_v23  ;;  %v2524_v26 = vmul.f32 %v2523_v32, %v2521_v14  ;;  %v2777_v59 = vshrl.u32 %v5206_v49, %v2768_v12  ;;  %v2780_v63 = vshrl.u32 %v5207_v51, %v2768_v12  ;;  %v2773_v57 = vshll.u32 %v5204_v41, %v2767_v43 }
 0x1f7   : > { %v6154_v8 = vsub.s32 %v2605_v35, %v2608_v22  ;;  %v2861_v13 = vshrl.u32 %v2860_v54, 23  ;;  %v2772_v24 = vor.u32 %v2771_v28, %v2770_v11  ;;  %v2776_v53 = vshll.u32 %v5205_v45, %v2767_v43  ;;  %v6178_v28 = vpop.f32.mrb[17].mxu1 }
 0x1f8   : > { %v2525_v39 = vxor.u32 2147483648, %v2524_v26  ;;  %v2779_v10 = vshll.u32 %v5206_v49, %v2767_v43  ;;  %v2775_v35 = vor.u32 %v2774_v58, %v2773_v57  ;;  %v2782_v25 = vshll.u32 %v5207_v51, %v2767_v43 }
 0x1f9   : > { %v2611_v0 = vsub.s32 0, %v6154_v8  ;;  %v2778_v62 = vor.u32 %v2777_v59, %v2776_v53  ;;  %v2783_v9 = vshrl.u32 %v7679_v19, %v2768_v12  ;;  %v6168_v7 = vshll.u32 %v2761_v55, 8 }
 0x1fa   : > { %v2526_v56 = vsel %vm2443_vm9, %v2525_v39, %v2524_v26  ;;  %v2781_v27 = vor.u32 %v2780_v63, %v2779_v10  ;;  %v2769_v3 = vshrl.u32 %v5203_v33, %v2768_v12  ;;  %vm2785_vm6 = vcmp.lt.s32.totalorder %v2766_v5, 1 }
 0x1fb   : > { %v2529_v31 = vsel %vm6108_vm12, %v5743_v17, %v2526_v56  ;;  %v4473_v21 = vmin.u32 %v2611_v0, %v6154_v8  ;;  %v2784_v14 = vor.u32 %v2783_v9, %v2782_v25  ;;  %v4484_v47 = vadd.s32 4294967169, %v2861_v13 }
 0x1fc   : > { %5025 = vcosq.f32 %v2529_v31  ;;  %vm2787_vm7 = vcmp.lt.s32.totalorder %v2766_v5, 3  ;;  %vm2788_vm8 = vcmp.lt.s32.totalorder %v2766_v5, 4  ;;  %v2793_v43 = vsel %vm2785_vm6, %v2772_v24, %v2775_v35 }
 0x1fd   : > { %5027 = vsinq.f32 %v2529_v31  ;;  %v2613_v32 = vclz %v4473_v21  ;;  %vm2540_vm9 = vcmp.eq.s32.totalorder %v6146_v15, 2  ;;  %v2790_v23 = vsel %vm2788_vm8, %v2778_v62, 2102212464 }
 0x1fe   : > { %v2794_v54 = vsel %vm2788_vm8, %v2781_v27, 920167782  ;;  %v2797_v26 = vsel %vm2785_vm6, %v2775_v35, %v2778_v62  ;;  %v2798_v22 = vsel %vm2788_vm8, %v2784_v14, 1326507024  ;;  %vm2537_vm10 = vcmp.eq.s32.totalorder %v6146_v15, 0 }
 0x1ff   : > { %vm2547_vm13 = vcmp.lt.s32.totalorder %v5747_v4, 0  ;;  %v4474_v12 = vadd.s32 4294967294, %v2613_v32  ;;  %vm2786_vm11 = vcmp.lt.s32.totalorder %v2766_v5, 2  ;;  %v2795_v55 = vsel %vm2787_vm7, %v2778_v62, %v2794_v54 }
 0x200   : > { %v2799_v11 = vsel %vm2787_vm7, %v2781_v27, %v2798_v22  ;;  %vm2536_vm14 = vcmp.lt.s32.totalorder %v6146_v15, 2  ;;  %v2789_v39 = vsel %vm2785_vm6, %v2769_v3, %v2772_v24  ;;  %v2796_v58 = vsel %vm2786_vm11, %v2793_v43, %v2795_v55 }
 0x201   : > { %v2800_v59 = vsel %vm2786_vm11, %v2797_v26, %v2799_v11  ;;  %v2857_v63 = vand.u32 2147483647, %v6044_v60  ;;  %vm4475_vm12 = vcmp.lt.s32.totalorder %v4474_v12, 0  ;;  %v2791_v57 = vsel %vm2787_vm7, %v2775_v35, %v2790_v23 }
 0x202   : > { %v6187_v13 = vmul.u32.u64.low %v6168_v7, %v2800_v59  ;;  %v6188_v56 = vmul.u32.u64.high %v6168_v7, %v2800_v59, %v6187_v13  ;;  %v2616_v53 = vsel %vm4475_vm12, 0, %v4474_v12  ;;  %v2867_v24 = vadd.s32 1, %v4484_v47 }
 0x203   : > { %v6191_v10 = vmul.u32.u64.low %v6168_v7, %v2796_v58  ;;  %v6192_v31 = vmul.u32.u64.high %v6168_v7, %v2796_v58, %v6191_v10  ;;  %v2601_v0 = vadd.s32 %v6101_v30, %v6116_v52  ;;  %v2617_v25 = vsub.s32 32, %v2616_v53 }
 0x204   : > { %v2621_v62 = vsub.s32 4294967266, %v2616_v53  ;;  %v2631_v27 = vsub.s32 4, %v6142_v37  ;;  %v2792_v35 = vsel %vm2786_vm11, %v2789_v39, %v2791_v57  ;;  %vm2868_vm15 = vcmp.gt.s32.totalorder %v2867_v24, 0 }
 0x205   : > { %v6201_v21 = vadd.f32 %v5623_v34, %v5731_v20  ;;  %v6205_v3 = vadd.f32 %v5625_v36, %v5848_v61  ;;  %v2618_v30 = vshll.u32 %v6154_v8, %v2616_v53  ;;  %v2619_v52 = vshrl.u32 %v2601_v0, %v2617_v25 }
 0x206   : > { %v5026_v9 = vpop.eup %5025  ;;  %v2622_v32 = vadd.s32 127, %v2621_v62  ;;  %vm2810_vm0 = vc.u32 %v6188_v56, %v6191_v10  ;;  %v2811_v5 = vadd.s32 1, %v6192_v31  ;;  %v2869_v23 = vsel %vm2868_vm15, %v2867_v24, 0 }
 0x207   : > { %v5028_v14 = vpop.eup %5027  ;;  %v2541_v47 = vxor.u32 2147483648, %v5026_v9  ;;  %v2620_v20 = vor.u32 %v2619_v52, %v2618_v30  ;;  %v2808_v61 = vmul.u32 %v6168_v7, %v2792_v35  ;;  %v2632_v54 = vsel %vm2547_vm13, %v2631_v27, %v6142_v37 }
 0x208   : > { %v2538_v43 = vxor.u32 2147483648, %v5028_v14  ;;  %v2623_v36 = vshll.u32 %v2622_v32, 23  ;;  %v2812_v26 = vsel %vm2810_vm0, %v2811_v5, %v6192_v31  ;;  %v2871_v22 = vand.u32 31, %v2869_v23 }
 0x209   : > { %v2542_v34 = vsel %vm2540_vm9, %v2541_v47, %v5028_v14  ;;  %vm2533_vm2 = vweird.f32 %v5743_v17  ;;  %v2813_v11 = vadd.s32 %v2812_v26, %v2808_v61  ;;  %vm6225_vm1 = vcmp.le.f32.partialorder %v2545_v18, 0.7853982 }
 0x20a   : > { %v2539_v8 = vsel %vm2537_vm10, %v5026_v9, %v2538_v43  ;;  %v2624_v55 = vor.u32 4788187, %v2623_v36  ;;  %v2864_v37 = vand.u32 8388607, %v2857_v63  ;;  %v2872_v58 = vsub.s32 32, %v2871_v22 }
 0x20b   : > { %v2543_v12 = vsel %vm2536_vm14, %v2539_v8, %v2542_v34  ;;  %v2627_v57 = vcvt.s32.f32 %v2620_v20  ;;  %v2634_v17 = vsel %vm6225_vm1, 0, %v2632_v54  ;;  %v2814_v15 = vadd.s32 536870912, %v2813_v11 }
 0x20c   : > { %v2544_v39 = vsel %vm2533_vm2, nan, %v2543_v12  ;;  %v2625_v59 = vand.u32 2147483647, %v2624_v55  ;;  %v2870_v13 = vshrl.u32 %v2869_v23, 5  ;;  %v2875_v53 = vshrl.u32 %v5204_v41, %v2872_v58 }
 0x20d   : > { %4319 = vst [vmem:[%s5946_s6 + $0x30] sm:$0xff] %v2544_v39  ;;  %v2878_v31 = vshrl.u32 %v5205_v45, %v2872_v58  ;;  %v2881_v18 = vshrl.u32 %v5206_v49, %v2872_v58  ;;  %v2815_v0 = vshrl.u32 %v2814_v15, 30  ;;  %v2874_v25 = vshll.u32 %v5203_v33, %v2871_v22 }
 0x20e   : > { %v2628_v24 = vmul.f32 %v2627_v57, %v2625_v59  ;;  %v2884_v62 = vshrl.u32 %v5207_v51, %v2872_v58  ;;  %v2877_v27 = vshll.u32 %v5204_v41, %v2871_v22  ;;  %v2880_v9 = vshll.u32 %v5205_v45, %v2871_v22 }
 0x20f   : > { %v2883_v35 = vshll.u32 %v5206_v49, %v2871_v22  ;;  %v2887_v14 = vshrl.u32 %v7679_v19, %v2872_v58  ;;  %v2816_v30 = vshll.u32 %v2815_v0, 30  ;;  %v2886_v52 = vshll.u32 %v5207_v51, %v2871_v22 }
 0x210   : > { %v2629_v47 = vxor.u32 2147483648, %v2628_v24  ;;  %v2876_v32 = vor.u32 %v2875_v53, %v2874_v25  ;;  %v2879_v43 = vor.u32 %v2878_v31, %v2877_v27  ;;  %v2882_v5 = vor.u32 %v2881_v18, %v2880_v9 }
 0x211   : > { %v2885_v23 = vor.u32 %v2884_v62, %v2883_v35  ;;  %v2638_v20 = vadd.s32 3, %v2634_v17  ;;  %v6246_v36 = vsub.s32 %v2813_v11, %v2816_v30  ;;  %v2865_v61 = vor.u32 8388608, %v2864_v37 }
 0x212   : > { %v2630_v34 = vsel %vm2547_vm13, %v2629_v47, %v2628_v24  ;;  %v2873_v54 = vshrl.u32 %v5203_v33, %v2872_v58  ;;  %v2888_v26 = vor.u32 %v2887_v14, %v2886_v52  ;;  %vm2889_vm3 = vcmp.lt.s32.totalorder %v2870_v13, 1 }
 0x213   : > { %v2633_v8 = vsel %vm6225_vm1, %v5747_v4, %v2630_v34  ;;  %vm6254_vm4 = vcmp.le.f32.partialorder %v2753_v2, 0.7853982  ;;  %v2819_v12 = vsub.s32 0, %v6246_v36  ;;  %vm2891_vm5 = vcmp.lt.s32.totalorder %v2870_v13, 3 }
 0x214   : > { %5029 = vcosq.f32 %v2633_v8  ;;  %vm2892_vm6 = vcmp.lt.s32.totalorder %v2870_v13, 4  ;;  %v2897_v11 = vsel %vm2889_vm3, %v2876_v32, %v2879_v43  ;;  %v2839_v37 = vsub.s32 4, %v2815_v0 }
 0x215   : > { %5031 = vsinq.f32 %v2633_v8  ;;  %v2894_v55 = vsel %vm2892_vm6, %v2882_v5, 2102212464  ;;  %v2898_v39 = vsel %vm2892_vm6, %v2885_v23, 920167782  ;;  %v4481_v7 = vmin.u32 %v2819_v12, %v6246_v36 }
 0x216   : > { %vm2890_vm7 = vcmp.lt.s32.totalorder %v2870_v13, 2  ;;  %v2899_v58 = vsel %vm2891_vm5, %v2882_v5, %v2898_v39  ;;  %v2901_v59 = vsel %vm2889_vm3, %v2879_v43, %v2882_v5  ;;  %v2902_v57 = vsel %vm2892_vm6, %v2888_v26, 1326507024 }
 0x217   : > { %v2900_v2 = vsel %vm2890_vm7, %v2897_v11, %v2899_v58  ;;  %v2905_v17 = vshll.u32 %v2865_v61, 8  ;;  %v2639_v15 = vand.u32 3, %v2638_v20  ;;  %v2821_v53 = vclz %v4481_v7 }
 0x218   : > { %v2893_v31 = vsel %vm2889_vm3, %v2873_v54, %v2876_v32  ;;  %v2895_v18 = vsel %vm2891_vm5, %v2879_v43, %v2894_v55  ;;  %vm2755_vm8 = vcmp.lt.s32.totalorder %v6036_v29, 0  ;;  %v2903_v24 = vsel %vm2891_vm5, %v2885_v23, %v2902_v57  ;;  %v6293_v57 = vpop.f32.mrb[12].mxu0 }
 0x219   : > { %v6268_v25 = vmul.u32.u64.low %v2905_v17, %v2900_v2  ;;  %v6269_v62 = vmul.u32.u64.high %v2905_v17, %v2900_v2, %v6268_v25  ;;  %v4482_v27 = vadd.s32 4294967294, %v2821_v53  ;;  %v2840_v9 = vsel %vm2755_vm8, %v2839_v37, %v2815_v0 }
 0x21a   : > { %v2904_v35 = vsel %vm2890_vm7, %v2901_v59, %v2903_v24  ;;  %v3068_v14 = vand.u32 2139095040, %v6201_v21  ;;  %vm2637_vm9 = vweird.f32 %v5747_v4  ;;  %v2896_v47 = vsel %vm2890_vm7, %v2893_v31, %v2895_v18 }
 0x21b   : > { %v6277_v30 = vmul.u32.u64.low %v2905_v17, %v2904_v35  ;;  %v6278_v52 = vmul.u32.u64.high %v2905_v17, %v2904_v35, %v6277_v30  ;;  %v3065_v32 = vand.u32 2147483647, %v6201_v21  ;;  %vm2641_vm10 = vcmp.eq.s32.totalorder %v2639_v15, 0 }
 0x21c   : > { %vm2644_vm13 = vcmp.eq.s32.totalorder %v2639_v15, 2  ;;  %vm4483_vm11 = vcmp.lt.s32.totalorder %v4482_v27, 0  ;;  %v3069_v43 = vshrl.u32 %v3068_v14, 23  ;;  %v2809_v0 = vadd.s32 %v6191_v10, %v6188_v56 }
 0x21d   : > { %v2824_v5 = vsel %vm4483_vm11, 0, %v4482_v27  ;;  %v2842_v23 = vsel %vm6254_vm4, 0, %v2840_v9  ;;  %v2915_v34 = vadd.s32 1, %v6269_v62  ;;  %v2912_v8 = vmul.u32 %v2905_v17, %v2896_v47 }
 0x21e   : > { %v5030_v13 = vpop.eup %5029  ;;  %v2825_v20 = vsub.s32 32, %v2824_v5  ;;  %v2829_v61 = vsub.s32 4294967266, %v2824_v5  ;;  %v4492_v54 = vadd.s32 4294967169, %v3069_v43  ;;  %v2826_v55 = vshll.u32 %v6246_v36, %v2824_v5 }
 0x21f   : > { %v5032_v26 = vpop.eup %5031  ;;  %v2645_v12 = vxor.u32 2147483648, %v5030_v13  ;;  %vm2914_vm14 = vc.u32 %v6278_v52, %v6268_v25  ;;  %v3072_v56 = vand.u32 8388607, %v3065_v32  ;;  %v3172_v59 = vand.u32 2139095040, %v6205_v3 }
 0x220   : > { %v2642_v10 = vxor.u32 2147483648, %v5032_v26  ;;  %v2827_v11 = vshrl.u32 %v2809_v0, %v2825_v20  ;;  %v2830_v39 = vadd.s32 127, %v2829_v61  ;;  %v2916_v7 = vsel %vm2914_vm14, %v2915_v34, %v6269_v62 }
 0x221   : > { %v2646_v37 = vsel %vm2644_vm13, %v2645_v12, %v5032_v26  ;;  %v2917_v58 = vadd.s32 %v2916_v7, %v2912_v8  ;;  %v3075_v2 = vadd.s32 1, %v4492_v54  ;;  %vm2640_vm12 = vcmp.lt.s32.totalorder %v2639_v15, 2 }
 0x222   : > { %v2643_v36 = vsel %vm2641_vm10, %v5030_v13, %v2642_v10  ;;  %v2828_v17 = vor.u32 %v2827_v11, %v2826_v55  ;;  %v2831_v53 = vshll.u32 %v2830_v39, 23  ;;  %v2846_v18 = vadd.s32 3, %v2842_v23 }
 0x223   : > { %v2647_v31 = vsel %vm2640_vm12, %v2643_v36, %v2646_v37  ;;  %v2918_v24 = vadd.s32 536870912, %v2917_v58  ;;  %vm3076_vm15 = vcmp.gt.s32.totalorder %v3075_v2, 0  ;;  %v3073_v9 = vor.u32 8388608, %v3072_v56 }
 0x224   : > { %v2648_v62 = vsel %vm2637_vm9, nan, %v2647_v31  ;;  %v2832_v27 = vor.u32 4788187, %v2831_v53  ;;  %v3077_v35 = vsel %vm3076_vm15, %v3075_v2, 0  ;;  %v3173_v30 = vshrl.u32 %v3172_v59, 23 }
 0x225   : > { %4320 = vst [vmem:[%s5946_s6 + $0x38] sm:$0xff] %v2648_v62  ;;  %v2919_v14 = vshrl.u32 %v2918_v24, 30  ;;  %v3079_v47 = vand.u32 31, %v3077_v35  ;;  %v2835_v0 = vcvt.s32.f32 %v2828_v17  ;;  %v6301_v15 = vadd.f32 %v5627_v38, %v5943_v16 }
 0x226   : > { %v2833_v43 = vand.u32 2147483647, %v2832_v27  ;;  %v6303_v5 = vand.u32 3, %v2846_v18  ;;  %vm2859_vm0 = vcmp.lt.s32.totalorder %v6044_v60, 0  ;;  %v2913_v13 = vadd.s32 %v6268_v25, %v6278_v52 }
 0x227   : > { %v2920_v23 = vshll.u32 %v2919_v14, 30  ;;  %v3080_v4 = vsub.s32 32, %v3079_v47  ;;  %v6307_v20 = vshll.u32 %v3073_v9, 8  ;;  %v3169_v61 = vand.u32 2147483647, %v6205_v3  ;;  %v6335_v9 = vpop.f32.mrb[18].mxu1 }
 0x228   : > { %v2836_v34 = vmul.f32 %v2835_v0, %v2833_v43  ;;  %v6312_v54 = vshrl.u32 %v3077_v35, 5  ;;  %v4496_v16 = vadd.s32 4294967169, %v3173_v30  ;;  %v3082_v12 = vshll.u32 %v5203_v33, %v3079_v47 }
 0x229   : > { %v6310_v8 = vsub.s32 %v2917_v58, %v2920_v23  ;;  %v3083_v38 = vshrl.u32 %v5204_v41, %v3080_v4  ;;  %v3086_v55 = vshrl.u32 %v5205_v45, %v3080_v4  ;;  %v3089_v56 = vshrl.u32 %v5206_v49, %v3080_v4 }
 0x22a   : > { %v2837_v26 = vxor.u32 2147483648, %v2836_v34  ;;  %v3085_v52 = vshll.u32 %v5204_v41, %v3079_v47  ;;  %v3088_v10 = vshll.u32 %v5205_v45, %v3079_v47  ;;  %v3092_v11 = vshrl.u32 %v5207_v51, %v3080_v4 }
 0x22b   : > { %v2923_v25 = vsub.s32 0, %v6310_v8  ;;  %v2943_v7 = vsub.s32 4, %v2919_v14  ;;  %v3084_v37 = vor.u32 %v3083_v38, %v3082_v12  ;;  %v3091_v58 = vshll.u32 %v5206_v49, %v3079_v47 }
 0x22c   : > { %v2838_v39 = vsel %vm2755_vm8, %v2837_v26, %v2836_v34  ;;  %v3087_v36 = vor.u32 %v3086_v55, %v3085_v52  ;;  %v3090_v17 = vor.u32 %v3089_v56, %v3088_v10  ;;  %v3094_v31 = vshll.u32 %v5207_v51, %v3079_v47 }
 0x22d   : > { %v2841_v2 = vsel %vm6254_vm4, %v6036_v29, %v2838_v39  ;;  %v4485_v59 = vmin.u32 %v2923_v25, %v6310_v8  ;;  %v3093_v53 = vor.u32 %v3092_v11, %v3091_v58  ;;  %v3095_v18 = vshrl.u32 %v7679_v19, %v3080_v4 }
 0x22e   : > { %5033 = vcosq.f32 %v2841_v2  ;;  %v6333_v62 = vand.u32 8388607, %v3169_v61  ;;  %v3179_v27 = vadd.s32 1, %v4496_v16  ;;  %vm6339_vm2 = vcmp.le.f32.partialorder %v2857_v63, 0.7853982 }
 0x22f   : > { %5035 = vsinq.f32 %v2841_v2  ;;  %v2925_v24 = vclz %v4485_v59  ;;  %v2944_v35 = vsel %vm2859_vm0, %v2943_v7, %v2919_v14  ;;  %v3081_v47 = vshrl.u32 %v5203_v33, %v3080_v4 }
 0x230   : > { %v3096_v30 = vor.u32 %v3095_v18, %v3094_v31  ;;  %vm3097_vm1 = vcmp.lt.s32.totalorder %v6312_v54, 1  ;;  %vm3099_vm3 = vcmp.lt.s32.totalorder %v6312_v54, 3  ;;  %vm3100_vm4 = vcmp.lt.s32.totalorder %v6312_v54, 4 }
 0x231   : > { %v4486_v43 = vadd.s32 4294967294, %v2925_v24  ;;  %v3105_v0 = vsel %vm3097_vm1, %v3084_v37, %v3087_v36  ;;  %v3102_v23 = vsel %vm3100_vm4, %v3090_v17, 2102212464  ;;  %v3106_v34 = vsel %vm3100_vm4, %v3093_v53, 920167782 }
 0x232   : > { %v3109_v63 = vsel %vm3097_vm1, %v3087_v36, %v3090_v17  ;;  %v3110_v38 = vsel %vm3100_vm4, %v3096_v30, 1326507024  ;;  %vm3098_vm6 = vcmp.lt.s32.totalorder %v6312_v54, 2  ;;  %v3107_v14 = vsel %vm3099_vm3, %v3090_v17, %v3106_v34 }
 0x233   : > { %vm4487_vm5 = vcmp.lt.s32.totalorder %v4486_v43, 0  ;;  %v3111_v4 = vsel %vm3099_vm3, %v3093_v53, %v3110_v38  ;;  %vm2848_vm7 = vcmp.lt.s32.totalorder %v6303_v5, 2  ;;  %v3101_v26 = vsel %vm3097_vm1, %v3081_v47, %v3084_v37 }
 0x234   : > { %v2928_v16 = vsel %vm4487_vm5, 0, %v4486_v43  ;;  %v3108_v12 = vsel %vm3098_vm6, %v3105_v0, %v3107_v14  ;;  %v3112_v55 = vsel %vm3098_vm6, %v3109_v63, %v3111_v4  ;;  %vm2845_vm8 = vweird.f32 %v6036_v29 }
 0x235   : > { %v2929_v56 = vsub.s32 32, %v2928_v16  ;;  %v2933_v25 = vsub.s32 4294967266, %v2928_v16  ;;  %v3103_v52 = vsel %vm3099_vm3, %v3087_v36, %v3102_v23  ;;  %vm3180_vm9 = vcmp.gt.s32.totalorder %v3179_v27, 0 }
 0x236   : > { %v6363_v10 = vmul.u32.u64.low %v6307_v20, %v3112_v55  ;;  %v6364_v11 = vmul.u32.u64.high %v6307_v20, %v3112_v55, %v6363_v10  ;;  %v6367_v39 = vmul.u32.u64.low %v6307_v20, %v3108_v12  ;;  %v6368_v7 = vmul.u32.u64.high %v6307_v20, %v3108_v12, %v6367_v39 }
 0x237   : > { %v2930_v37 = vshll.u32 %v6310_v8, %v2928_v16  ;;  %v2931_v58 = vshrl.u32 %v2913_v13, %v2929_v56  ;;  %v2934_v2 = vadd.s32 127, %v2933_v25  ;;  %v3181_v59 = vsel %vm3180_vm9, %v3179_v27, 0 }
 0x238   : > { %v5034_v17 = vpop.eup %5033  ;;  %vm2849_vm10 = vcmp.eq.s32.totalorder %v6303_v5, 0  ;;  %vm2852_vm13 = vcmp.eq.s32.totalorder %v6303_v5, 2  ;;  %v3104_v36 = vsel %vm3098_vm6, %v3101_v26, %v3103_v52  ;;  %v3183_v53 = vand.u32 31, %v3181_v59 }
 0x239   : > { %v5036_v31 = vpop.eup %5035  ;;  %v2853_v18 = vxor.u32 2147483648, %v5034_v17  ;;  %v2932_v24 = vor.u32 %v2931_v58, %v2930_v37  ;;  %v2935_v47 = vshll.u32 %v2934_v2, 23  ;;  %v2946_v30 = vsel %vm6339_vm2, 0, %v2944_v35 }
 0x23a   : > { %v2850_v8 = vxor.u32 2147483648, %v5036_v31  ;;  %vm3122_vm11 = vc.u32 %v6364_v11, %v6367_v39  ;;  %v3123_v13 = vadd.s32 1, %v6368_v7  ;;  %v3177_v27 = vor.u32 8388608, %v6333_v62 }
 0x23b   : > { %v2854_v43 = vsel %vm2852_vm13, %v2853_v18, %v5036_v31  ;;  %v2936_v54 = vor.u32 4788187, %v2935_v47  ;;  %v3120_v0 = vmul.u32 %v6307_v20, %v3104_v36  ;;  %v3184_v23 = vsub.s32 32, %v3183_v53 }
 0x23c   : > { %v2851_v34 = vsel %vm2849_vm10, %v5034_v17, %v2850_v8  ;;  %v2950_v63 = vadd.s32 3, %v2946_v30  ;;  %v3124_v35 = vsel %vm3122_vm11, %v3123_v13, %v6368_v7  ;;  %v6386_v38 = vshrl.u32 %v3181_v59, 5 }
 0x23d   : > { %v2855_v14 = vsel %vm2848_vm7, %v2851_v34, %v2854_v43  ;;  %v2937_v4 = vand.u32 2147483647, %v2936_v54  ;;  %v2939_v16 = vcvt.s32.f32 %v2932_v24  ;;  %v3125_v62 = vadd.s32 %v3124_v35, %v3120_v0 }
 0x23e   : > { %v2856_v26 = vsel %vm2845_vm8, nan, %v2855_v14  ;;  %v3186_v20 = vshll.u32 %v5203_v33, %v3183_v53  ;;  %v3187_v12 = vshrl.u32 %v5204_v41, %v3184_v23  ;;  %v3190_v55 = vshrl.u32 %v5205_v45, %v3184_v23 }
 0x23f   : > { %4322 = vst [vmem:[%s5946_s6 + $0x48] sm:$0xff] %v2856_v26  ;;  %v2940_v56 = vmul.f32 %v2939_v16, %v2937_v4  ;;  %v3126_v25 = vadd.s32 536870912, %v3125_v62  ;;  %v3189_v52 = vshll.u32 %v5204_v41, %v3183_v53  ;;  %v3193_v5 = vshrl.u32 %v5206_v49, %v3184_v23 }
 0x240   : > { %v3188_v10 = vor.u32 %v3187_v12, %v3186_v20  ;;  %v3192_v7 = vshll.u32 %v5205_v45, %v3183_v53  ;;  %v3195_v37 = vshll.u32 %v5206_v49, %v3183_v53  ;;  %v3196_v29 = vshrl.u32 %v5207_v51, %v3184_v23 }
 0x241   : > { %v2941_v58 = vxor.u32 2147483648, %v2940_v56  ;;  %v3127_v2 = vshrl.u32 %v3126_v25, 30  ;;  %v3191_v59 = vor.u32 %v3190_v55, %v3189_v52  ;;  %v3199_v17 = vshrl.u32 %v7679_v19, %v3184_v23 }
 0x242   : > { %v3194_v36 = vor.u32 %v3193_v5, %v3192_v7  ;;  %v3197_v31 = vor.u32 %v3196_v29, %v3195_v37  ;;  %v3198_v18 = vshll.u32 %v5207_v51, %v3183_v53  ;;  %v6405_v47 = vand.u32 3, %v2950_v63 }
 0x243   : > { %v2942_v24 = vsel %vm2859_vm0, %v2941_v58, %v2940_v56  ;;  %v3128_v30 = vshll.u32 %v3127_v2, 30  ;;  %v6407_v8 = vshll.u32 %v3177_v27, 8  ;;  %vm3201_vm14 = vcmp.lt.s32.totalorder %v6386_v38, 1 }
 0x244   : > { %v2945_v13 = vsel %vm6339_vm2, %v6044_v60, %v2942_v24  ;;  %v3200_v43 = vor.u32 %v3199_v17, %v3198_v18  ;;  %v3380_v54 = vand.u32 2139095040, %v6301_v15  ;;  %vm3204_vm12 = vcmp.lt.s32.totalorder %v6386_v38, 4 }
 0x245   : > { %5037 = vcosq.f32 %v2945_v13  ;;  %v6414_v0 = vsub.s32 %v3125_v62, %v3128_v30  ;;  %v3209_v53 = vsel %vm3201_vm14, %v3188_v10, %v3191_v59  ;;  %vm3203_vm15 = vcmp.lt.s32.totalorder %v6386_v38, 3 }
 0x246   : > { %5039 = vsinq.f32 %v2945_v13  ;;  %v3206_v27 = vsel %vm3204_vm12, %v3194_v36, 2102212464  ;;  %v3210_v34 = vsel %vm3204_vm12, %v3197_v31, 920167782  ;;  %v3185_v63 = vshrl.u32 %v5203_v33, %v3184_v23 }
 0x247   : > { %v3131_v22 = vsub.s32 0, %v6414_v0  ;;  %vm3202_vm0 = vcmp.lt.s32.totalorder %v6386_v38, 2  ;;  %v3211_v35 = vsel %vm3203_vm15, %v3194_v36, %v3210_v34  ;;  %v3151_v14 = vsub.s32 4, %v3127_v2 }
 0x248   : > { %v3212_v4 = vsel %vm3202_vm0, %v3209_v53, %v3211_v35  ;;  %v3213_v16 = vsel %vm3201_vm14, %v3191_v59, %v3194_v36  ;;  %v3214_v62 = vsel %vm3204_vm12, %v3200_v43, 1326507024  ;;  %v3205_v20 = vsel %vm3201_vm14, %v3185_v63, %v3188_v10 }
 0x249   : > { %v4493_v26 = vmin.u32 %v3131_v22, %v6414_v0  ;;  %v3207_v12 = vsel %vm3203_vm15, %v3191_v59, %v3206_v27  ;;  %v3215_v55 = vsel %vm3203_vm15, %v3197_v31, %v3214_v62  ;;  %v3381_v52 = vshrl.u32 %v3380_v54, 23 }
 0x24a   : > { %v3216_v23 = vsel %vm3202_vm0, %v3213_v16, %v3215_v55  ;;  %v6433_v56 = vmul.u32.u64.low %v6407_v8, %v3212_v4  ;;  %v6434_v25 = vmul.u32.u64.high %v6407_v8, %v3212_v4, %v6433_v56  ;;  %vm2952_vm2 = vcmp.lt.s32.totalorder %v6405_v47, 2  ;;  %v5105_v55 = vld [vmem:[%s7666_s2] sm:$0x7] }
 0x24b   : > { %vm6440_vm1 = vcmp.le.f32.partialorder %v3065_v32, 0.7853982  ;;  %vm3067_vm3 = vcmp.lt.s32.totalorder %v6201_v21, 0  ;;  %v3133_v10 = vclz %v4493_v26  ;;  %vm2949_vm4 = vweird.f32 %v6044_v60 }
 0x24c   : > { %v3152_v7 = vsel %vm3067_vm3, %v3151_v14, %v3127_v2  ;;  %v6449_v37 = vmul.u32.u64.low %v6407_v8, %v3216_v23  ;;  %v6450_v29 = vmul.u32.u64.high %v6407_v8, %v3216_v23, %v6449_v37  ;;  %v4504_v58 = vadd.s32 4294967169, %v3381_v52 }
 0x24d   : > { %vm2953_vm5 = vcmp.eq.s32.totalorder %v6405_v47, 0  ;;  %v4494_v59 = vadd.s32 4294967294, %v3133_v10  ;;  %v3208_v32 = vsel %vm3202_vm0, %v3205_v20, %v3207_v12  ;;  %v6457_v17 = vadd.f32 %v5629_v40, %v6125_v1 }
 0x24e   : > { %vm2956_vm6 = vcmp.eq.s32.totalorder %v6405_v47, 2  ;;  %v3227_v36 = vadd.s32 1, %v6434_v25  ;;  %v3387_v2 = vadd.s32 1, %v4504_v58  ;;  %v6463_v31 = vadd.f32 %v5631_v42, %v6293_v57  ;;  %v6473_v42 = vpop.f32.mrb[13].mxu0 }
 0x24f   : > { %v5038_v18 = vpop.eup %5037  ;;  %v3121_v24 = vadd.s32 %v6367_v39, %v6364_v11  ;;  %vm4495_vm7 = vcmp.lt.s32.totalorder %v4494_v59, 0  ;;  %v3154_v38 = vsel %vm6440_vm1, 0, %v3152_v7  ;;  %v3377_v40 = vand.u32 2147483647, %v6301_v15 }
 0x250   : > { %v5040_v1 = vpop.eup %5039  ;;  %v2957_v30 = vxor.u32 2147483648, %v5038_v18  ;;  %v3136_v13 = vsel %vm4495_vm7, 0, %v4494_v59  ;;  %v3224_v43 = vmul.u32 %v6407_v8, %v3208_v32  ;;  %vm3226_vm8 = vc.u32 %v6450_v29, %v6433_v56 }
 0x251   : > { %v2954_v57 = vxor.u32 2147483648, %v5040_v1  ;;  %v3137_v54 = vsub.s32 32, %v3136_v13  ;;  %v3141_v53 = vsub.s32 4294967266, %v3136_v13  ;;  %v222_v11 = vsub.s32 2, %v5608_v6 }
 0x252   : > { %v2958_v39 = vsel %vm2956_vm6, %v2957_v30, %v5040_v1  ;;  %v3138_v27 = vshll.u32 %v6414_v0, %v3136_v13  ;;  %v3228_v34 = vsel %vm3226_vm8, %v3227_v36, %v6434_v25  ;;  %vm3388_vm9 = vcmp.gt.s32.totalorder %v3387_v2, 0 }
 0x253   : > { %v2955_v8 = vsel %vm2953_vm5, %v5038_v18, %v2954_v57  ;;  %v3139_v22 = vshrl.u32 %v3121_v24, %v3137_v54  ;;  %v3142_v63 = vadd.s32 127, %v3141_v53  ;;  %v3229_v35 = vadd.s32 %v3228_v34, %v3224_v43 }
 0x254   : > { %v2959_v14 = vsel %vm2952_vm2, %v2955_v8, %v2958_v39  ;;  %v3158_v4 = vadd.s32 3, %v3154_v38  ;;  %v3384_v6 = vand.u32 8388607, %v3377_v40  ;;  %v3389_v16 = vsel %vm3388_vm9, %v3387_v2, 0 }
 0x255   : > { %v2960_v0 = vsel %vm2949_vm4, nan, %v2959_v14  ;;  %v3140_v62 = vor.u32 %v3139_v22, %v3138_v27  ;;  %v3143_v26 = vshll.u32 %v3142_v63, 23  ;;  %v3230_v20 = vadd.s32 536870912, %v3229_v35 }
 0x256   : > { %4323 = vst [vmem:[%s5946_s6 + $0x50] sm:$0xff] %v2960_v0  ;;  %v3391_v12 = vand.u32 31, %v3389_v16  ;;  %v6492_v23 = vrot.slane %v5105_v55, %v222_v11  ;;  %v6494_v52 = vand.u32 3, %v3158_v4  ;;  %v3385_v10 = vor.u32 8388608, %v3384_v6 }
 0x257   : > { %v3144_v47 = vor.u32 4788187, %v3143_v26  ;;  %v3231_v25 = vshrl.u32 %v3230_v20, 30  ;;  %v3147_v60 = vcvt.s32.f32 %v3140_v62  ;;  %vm3171_vm10 = vcmp.lt.s32.totalorder %v6205_v3, 0 }
 0x258   : > { %v3392_v7 = vsub.s32 32, %v3391_v12  ;;  %v6499_v58 = vadd.s32 %v6433_v56, %v6450_v29  ;;  %v6506_v18 = vadd.f32 %v6038_v50, %v6492_v23  ;;  %v3394_v1 = vshll.u32 %v5203_v33, %v3391_v12 }
 0x259   : > { %v3145_v37 = vand.u32 2147483647, %v3144_v47  ;;  %v3232_v59 = vshll.u32 %v3231_v25, 30  ;;  %v3255_v56 = vsub.s32 4, %v3231_v25  ;;  %v3390_v29 = vshrl.u32 %v3389_v16, 5  ;;  %v6534_v47 = vpop.f32.mrb[19].mxu1 }
 0x25a   : > { %v3395_v32 = vshrl.u32 %v5204_v41, %v3392_v7  ;;  %v3398_v36 = vshrl.u32 %v5205_v45, %v3392_v7  ;;  %v3401_v2 = vshrl.u32 %v5206_v49, %v3392_v7  ;;  %v3404_v30 = vshrl.u32 %v5207_v51, %v3392_v7 }
 0x25b   : > { %v3148_v24 = vmul.f32 %v3147_v60, %v3145_v37  ;;  %v6508_v38 = vsub.s32 %v3229_v35, %v3232_v59  ;;  %v3397_v13 = vshll.u32 %v5204_v41, %v3391_v12  ;;  %v3400_v43 = vshll.u32 %v5205_v45, %v3391_v12 }
 0x25c   : > { %v3396_v53 = vor.u32 %v3395_v32, %v3394_v1  ;;  %v3403_v50 = vshll.u32 %v5206_v49, %v3391_v12  ;;  %v3406_v27 = vshll.u32 %v5207_v51, %v3391_v12  ;;  %v3407_v34 = vshrl.u32 %v7679_v19, %v3392_v7 }
 0x25d   : > { %v3149_v57 = vxor.u32 2147483648, %v3148_v24  ;;  %v3235_v54 = vsub.s32 0, %v6508_v38  ;;  %v3399_v11 = vor.u32 %v3398_v36, %v3397_v13  ;;  %v3402_v39 = vor.u32 %v3401_v2, %v3400_v43 }
 0x25e   : > { %vm6522_vm13 = vcmp.le.f32.partialorder %v3169_v61, 0.7853982  ;;  %v3405_v35 = vor.u32 %v3404_v30, %v3403_v50  ;;  %v3425_v14 = vshll.u32 %v3385_v10, 8  ;;  %v3393_v6 = vshrl.u32 %v5203_v33, %v3392_v7 }
 0x25f   : > { %v3150_v8 = vsel %vm3067_vm3, %v3149_v57, %v3148_v24  ;;  %v4497_v63 = vmin.u32 %v3235_v54, %v6508_v38  ;;  %v3408_v16 = vor.u32 %v3407_v34, %v3406_v27  ;;  %v2340_v0 = vand.u32 2139095040, %v6506_v18 }
 0x260   : > { %v3153_v4 = vsel %vm6440_vm1, %v6201_v21, %v3150_v8  ;;  %vm3409_vm11 = vcmp.lt.s32.totalorder %v3390_v29, 1  ;;  %vm3412_vm14 = vcmp.lt.s32.totalorder %v3390_v29, 4  ;;  %v3256_v61 = vsel %vm3171_vm10, %v3255_v56, %v3231_v25 }
 0x261   : > { %5041 = vcosq.f32 %v3153_v4  ;;  %v3237_v62 = vclz %v4497_v63  ;;  %v3414_v26 = vsel %vm3412_vm14, %v3402_v39, 2102212464  ;;  %v3417_v20 = vsel %vm3409_vm11, %v3396_v53, %v3399_v11 }
 0x262   : > { %5043 = vsinq.f32 %v3153_v4  ;;  %vm3411_vm12 = vcmp.lt.s32.totalorder %v3390_v29, 3  ;;  %v3418_v55 = vsel %vm3412_vm14, %v3405_v35, 920167782  ;;  %v3421_v5 = vsel %vm3409_vm11, %v3399_v11, %v3402_v39 }
 0x263   : > { %v4498_v12 = vadd.s32 4294967294, %v3237_v62  ;;  %vm3410_vm15 = vcmp.lt.s32.totalorder %v3390_v29, 2  ;;  %v3413_v10 = vsel %vm3409_vm11, %v3393_v6, %v3396_v53  ;;  %v3419_v7 = vsel %vm3411_vm12, %v3402_v39, %v3418_v55 }
 0x264   : > { %v3422_v37 = vsel %vm3412_vm14, %v3408_v16, 1326507024  ;;  %v3415_v60 = vsel %vm3411_vm12, %v3399_v11, %v3414_v26  ;;  %v3420_v59 = vsel %vm3410_vm15, %v3417_v20, %v3419_v7  ;;  %v2337_v56 = vand.u32 2147483647, %v6506_v18 }
 0x265   : > { %vm4499_vm0 = vcmp.lt.s32.totalorder %v4498_v12, 0  ;;  %v3423_v32 = vsel %vm3411_vm12, %v3405_v35, %v3422_v37  ;;  %v6538_v2 = vmul.u32.u64.low %v3425_v14, %v3420_v59  ;;  %v6539_v24 = vmul.u32.u64.high %v3425_v14, %v3420_v59, %v6538_v2 }
 0x266   : > { %v3240_v36 = vsel %vm4499_vm0, 0, %v4498_v12  ;;  %v3424_v25 = vsel %vm3410_vm15, %v3421_v5, %v3423_v32  ;;  %v2341_v13 = vshrl.u32 %v2340_v0, 23  ;;  %v3258_v43 = vsel %vm6522_vm13, 0, %v3256_v61 }
 0x267   : > { %v3241_v1 = vsub.s32 32, %v3240_v36  ;;  %v3245_v30 = vsub.s32 4294967266, %v3240_v36  ;;  %v3416_v57 = vsel %vm3410_vm15, %v3413_v10, %v3415_v60  ;;  %v3242_v50 = vshll.u32 %v6508_v38, %v3240_v36 }
 0x268   : > { %v6546_v54 = vmul.u32.u64.low %v3425_v14, %v3424_v25  ;;  %v6547_v53 = vmul.u32.u64.high %v3425_v14, %v3424_v25, %v6546_v54  ;;  %v4464_v27 = vadd.s32 4294967169, %v2341_v13  ;;  %vm3160_vm2 = vcmp.lt.s32.totalorder %v6494_v52, 2 }
 0x269   : > { %v3243_v11 = vshrl.u32 %v6499_v58, %v3241_v1  ;;  %v3246_v39 = vadd.s32 127, %v3245_v30  ;;  %vm3161_vm1 = vcmp.eq.s32.totalorder %v6494_v52, 0  ;;  %v3435_v34 = vadd.s32 1, %v6539_v24 }
 0x26a   : > { %v3484_v8 = vand.u32 2139095040, %v6457_v17  ;;  %vm3164_vm3 = vcmp.eq.s32.totalorder %v6494_v52, 2  ;;  %v2347_v4 = vadd.s32 1, %v4464_v27  ;;  %v3262_v16 = vadd.s32 3, %v3258_v43 }
 0x26b   : > { %v5042_v63 = vpop.eup %5041  ;;  %v3244_v29 = vor.u32 %v3243_v11, %v3242_v50  ;;  %v3247_v35 = vshll.u32 %v3246_v39, 23  ;;  %v3432_v58 = vmul.u32 %v3425_v14, %v3416_v57  ;;  %vm3434_vm4 = vc.u32 %v6547_v53, %v6538_v2 }
 0x26c   : > { %v5044_v6 = vpop.eup %5043  ;;  %v3165_v38 = vxor.u32 2147483648, %v5042_v63  ;;  %v3436_v61 = vsel %vm3434_vm4, %v3435_v34, %v6539_v24  ;;  %v2344_v26 = vand.u32 8388607, %v2337_v56  ;;  %vm2348_vm5 = vcmp.gt.s32.totalorder %v2347_v4, 0 }
 0x26d   : > { %v3162_v0 = vxor.u32 2147483648, %v5044_v6  ;;  %v3248_v62 = vor.u32 4788187, %v3247_v35  ;;  %v3437_v12 = vadd.s32 %v3436_v61, %v3432_v58  ;;  %v3485_v55 = vshrl.u32 %v3484_v8, 23 }
 0x26e   : > { %v3166_v20 = vsel %vm3164_vm3, %v3165_v38, %v5044_v6  ;;  %v3251_v14 = vcvt.s32.f32 %v3244_v29  ;;  %v2349_v7 = vsel %vm2348_vm5, %v2347_v4, 0  ;;  %vm3157_vm6 = vweird.f32 %v6201_v21 }
 0x26f   : > { %v3163_v5 = vsel %vm3161_vm1, %v5042_v63, %v3162_v0  ;;  %v3249_v10 = vand.u32 2147483647, %v3248_v62  ;;  %v3438_v60 = vadd.s32 536870912, %v3437_v12  ;;  %v2351_v59 = vand.u32 31, %v2349_v7 }
 0x270   : > { %v3167_v37 = vsel %vm3160_vm2, %v3163_v5, %v3166_v20  ;;  %v6567_v25 = vand.u32 3, %v3262_v16  ;;  %v3481_v30 = vand.u32 2147483647, %v6457_v17  ;;  %vm3379_vm7 = vcmp.lt.s32.totalorder %v6301_v15, 0 }
 0x271   : > { %v3168_v32 = vsel %vm3157_vm6, nan, %v3167_v37  ;;  %v3252_v36 = vmul.f32 %v3251_v14, %v3249_v10  ;;  %v3439_v24 = vshrl.u32 %v3438_v60, 30  ;;  %v2352_v1 = vsub.s32 32, %v2351_v59 }
 0x272   : > { %4325 = vst [vmem:[%s5946_s6 + $0x60] sm:$0xff] %v3168_v32  ;;  %v2345_v43 = vor.u32 8388608, %v2344_v26  ;;  %v6571_v57 = vshrl.u32 %v2349_v7, 5  ;;  %v4508_v21 = vadd.s32 4294967169, %v3485_v55  ;;  %v2354_v54 = vshll.u32 %v5203_v33, %v2351_v59 }
 0x273   : > { %v3253_v13 = vxor.u32 2147483648, %v3252_v36  ;;  %v3440_v52 = vshll.u32 %v3439_v24, 30  ;;  %v2355_v50 = vshrl.u32 %v5204_v41, %v2352_v1  ;;  %v2357_v11 = vshll.u32 %v5204_v41, %v2351_v59 }
 0x274   : > { %v2358_v27 = vshrl.u32 %v5205_v45, %v2352_v1  ;;  %v2361_v34 = vshrl.u32 %v5206_v49, %v2352_v1  ;;  %v2364_v8 = vshrl.u32 %v5207_v51, %v2352_v1  ;;  %v2360_v35 = vshll.u32 %v5205_v45, %v2351_v59 }
 0x275   : > { %v3254_v39 = vsel %vm3171_vm10, %v3253_v13, %v3252_v36  ;;  %v6584_v29 = vsub.s32 %v3437_v12, %v3440_v52  ;;  %v2363_v4 = vshll.u32 %v5206_v49, %v2351_v59  ;;  %v3463_v6 = vsub.s32 4, %v3439_v24 }
 0x276   : > { %v3257_v63 = vsel %vm6522_vm13, %v6205_v3, %v3254_v39  ;;  %v2356_v38 = vor.u32 %v2355_v50, %v2354_v54  ;;  %v2359_v16 = vor.u32 %v2358_v27, %v2357_v11  ;;  %v2362_v0 = vor.u32 %v2361_v34, %v2360_v35 }
 0x277   : > { %5045 = vcosq.f32 %v3257_v63  ;;  %v3443_v58 = vsub.s32 0, %v6584_v29  ;;  %v2365_v62 = vor.u32 %v2364_v8, %v2363_v4  ;;  %v2366_v61 = vshll.u32 %v5207_v51, %v2351_v59 }
 0x278   : > { %5047 = vsinq.f32 %v3257_v63  ;;  %v2367_v22 = vshrl.u32 %v7679_v19, %v2352_v1  ;;  %v6591_v26 = vshll.u32 %v2345_v43, 8  ;;  %v6595_v20 = vand.u32 8388607, %v3481_v30 }
 0x279   : > { %vm6599_vm8 = vcmp.le.f32.partialorder %v3377_v40, 0.7853982  ;;  %v4505_v55 = vmin.u32 %v3443_v58, %v6584_v29  ;;  %vm2369_vm9 = vcmp.lt.s32.totalorder %v6571_v57, 1  ;;  %vm2372_vm10 = vcmp.lt.s32.totalorder %v6571_v57, 4 }
 0x27a   : > { %v3491_v5 = vadd.s32 1, %v4508_v21  ;;  %vm3268_vm13 = vcmp.eq.s32.totalorder %v6567_v25, 2  ;;  %v2353_v10 = vshrl.u32 %v5203_v33, %v2352_v1  ;;  %v2368_v14 = vor.u32 %v2367_v22, %v2366_v61 }
 0x27b   : > { %v2377_v7 = vsel %vm2369_vm9, %v2356_v38, %v2359_v16  ;;  %v2378_v40 = vsel %vm2372_vm10, %v2365_v62, 920167782  ;;  %vm3265_vm11 = vcmp.eq.s32.totalorder %v6567_v25, 0  ;;  %v3445_v37 = vclz %v4505_v55 }
 0x27c   : > { %v3464_v60 = vsel %vm3379_vm7, %v3463_v6, %v3439_v24  ;;  %vm2371_vm14 = vcmp.lt.s32.totalorder %v6571_v57, 3  ;;  %v2374_v59 = vsel %vm2372_vm10, %v2362_v0, 2102212464  ;;  %vm3264_vm12 = vcmp.lt.s32.totalorder %v6567_v25, 2  ;;  %v6643_v6 = vpop.f32.mrb[14].mxu0 }
 0x27d   : > { %vm2370_vm15 = vcmp.lt.s32.totalorder %v6571_v57, 2  ;;  %v2379_v32 = vsel %vm2371_vm14, %v2362_v0, %v2378_v40  ;;  %v2381_v36 = vsel %vm2369_vm9, %v2359_v16, %v2362_v0  ;;  %v2382_v1 = vsel %vm2372_vm10, %v2368_v14, 1326507024 }
 0x27e   : > { %vm3261_vm0 = vweird.f32 %v6205_v3  ;;  %v4506_v13 = vadd.s32 4294967294, %v3445_v37  ;;  %v2373_v24 = vsel %vm2369_vm9, %v2353_v10, %v2356_v38  ;;  %v2380_v43 = vsel %vm2370_vm15, %v2377_v7, %v2379_v32 }
 0x27f   : > { %v2383_v21 = vsel %vm2371_vm14, %v2365_v62, %v2382_v1  ;;  %v2375_v52 = vsel %vm2371_vm14, %v2359_v16, %v2374_v59  ;;  %v6632_v50 = vmul.u32.u64.low %v6591_v26, %v2380_v43  ;;  %v6633_v11 = vmul.u32.u64.high %v6591_v26, %v2380_v43, %v6632_v50 }
 0x280   : > { %v2384_v54 = vsel %vm2370_vm15, %v2381_v36, %v2383_v21  ;;  %vm4507_vm2 = vcmp.lt.s32.totalorder %v4506_v13, 0  ;;  %vm3492_vm1 = vcmp.gt.s32.totalorder %v3491_v5, 0  ;;  %v3433_v8 = vadd.s32 %v6538_v2, %v6547_v53 }
 0x281   : > { %v6637_v39 = vmul.u32.u64.low %v6591_v26, %v2384_v54  ;;  %v6638_v27 = vmul.u32.u64.high %v6591_v26, %v2384_v54, %v6637_v39  ;;  %v5046_v34 = vpop.eup %5045  ;;  %v3448_v63 = vsel %vm4507_vm2, 0, %v4506_v13  ;;  %v3489_v35 = vor.u32 8388608, %v6595_v20 }
 0x282   : > { %v3493_v4 = vsel %vm3492_vm1, %v3491_v5, 0  ;;  %v5048_v38 = vpop.eup %5047  ;;  %v3269_v16 = vxor.u32 2147483648, %v5046_v34  ;;  %v3449_v58 = vsub.s32 32, %v3448_v63  ;;  %v3453_v0 = vsub.s32 4294967266, %v3448_v63 }
 0x283   : > { %v2376_v62 = vsel %vm2370_vm15, %v2373_v24, %v2375_v52  ;;  %v3266_v61 = vxor.u32 2147483648, %v5048_v38  ;;  %v3466_v22 = vsel %vm6599_vm8, 0, %v3464_v60  ;;  %v2395_v55 = vadd.s32 1, %v6633_v11 }
 0x284   : > { %v3495_v2 = vand.u32 31, %v3493_v4  ;;  %v3270_v53 = vsel %vm3268_vm13, %v3269_v16, %v5048_v38  ;;  %v3450_v20 = vshll.u32 %v6584_v29, %v3448_v63  ;;  %v3451_v5 = vshrl.u32 %v3433_v8, %v3449_v58 }
 0x285   : > { %v3454_v10 = vadd.s32 127, %v3453_v0  ;;  %v3267_v14 = vsel %vm3265_vm11, %v5046_v34, %v3266_v61  ;;  %v2392_v57 = vmul.u32 %v6591_v26, %v2376_v62  ;;  %vm2394_vm3 = vc.u32 %v6638_v27, %v6632_v50 }
 0x286   : > { %v3496_v7 = vsub.s32 32, %v3495_v2  ;;  %v3271_v40 = vsel %vm3264_vm12, %v3267_v14, %v3270_v53  ;;  %v3452_v37 = vor.u32 %v3451_v5, %v3450_v20  ;;  %v2396_v59 = vsel %vm2394_vm3, %v2395_v55, %v6633_v11 }
 0x287   : > { %v3455_v60 = vshll.u32 %v3454_v10, 23  ;;  %v3272_v29 = vsel %vm3261_vm0, nan, %v3271_v40  ;;  %v3470_v32 = vadd.s32 3, %v3466_v22  ;;  %v2397_v36 = vadd.s32 %v2396_v59, %v2392_v57 }
 0x288   : > { %v3499_v1 = vshrl.u32 %v5204_v41, %v3496_v7  ;;  %4326 = vst [vmem:[%s5946_s6 + $0x68] sm:$0xff] %v3272_v29  ;;  %v3494_v13 = vshrl.u32 %v3493_v4, 5  ;;  %v3498_v24 = vshll.u32 %v5203_v33, %v3495_v2  ;;  %v3502_v43 = vshrl.u32 %v5205_v45, %v3496_v7 }
 0x289   : > { %v3456_v26 = vor.u32 4788187, %v3455_v60  ;;  %v3459_v25 = vcvt.s32.f32 %v3452_v37  ;;  %v2398_v21 = vadd.s32 536870912, %v2397_v36  ;;  %v3501_v52 = vshll.u32 %v5204_v41, %v3495_v2 }
 0x28a   : > { %v3505_v54 = vshrl.u32 %v5206_v49, %v3496_v7  ;;  %v3504_v3 = vshll.u32 %v5205_v45, %v3495_v2  ;;  %v3507_v39 = vshll.u32 %v5206_v49, %v3495_v2  ;;  %v3508_v34 = vshrl.u32 %v5207_v51, %v3496_v7 }
 0x28b   : > { %v3457_v11 = vand.u32 2147483647, %v3456_v26  ;;  %v2399_v8 = vshrl.u32 %v2398_v21, 30  ;;  %v3500_v63 = vor.u32 %v3499_v1, %v3498_v24  ;;  %v3503_v4 = vor.u32 %v3502_v43, %v3501_v52 }
 0x28c   : > { %v3511_v38 = vshrl.u32 %v7679_v19, %v3496_v7  ;;  %v3506_v58 = vor.u32 %v3505_v54, %v3504_v3  ;;  %v3509_v0 = vor.u32 %v3508_v34, %v3507_v39  ;;  %v3510_v62 = vshll.u32 %v5207_v51, %v3495_v2  ;;  %v6715_v3 = vpop.f32.mrb[20].mxu1 }
 0x28d   : > { %v3460_v16 = vmul.f32 %v3459_v25, %v3457_v11  ;;  %v6674_v61 = vand.u32 3, %v3470_v32  ;;  %v2400_v22 = vshll.u32 %v2399_v8, 30  ;;  %v3529_v55 = vshll.u32 %v3489_v35, 8 }
 0x28e   : > { %v6678_v53 = vadd.f32 %v6178_v28, %v6492_v23  ;;  %v3512_v5 = vor.u32 %v3511_v38, %v3510_v62  ;;  %vm3513_vm4 = vcmp.lt.s32.totalorder %v3494_v13, 1  ;;  %vm3516_vm5 = vcmp.lt.s32.totalorder %v3494_v13, 4 }
 0x28f   : > { %v3461_v20 = vxor.u32 2147483648, %v3460_v16  ;;  %v6680_v10 = vsub.s32 %v2397_v36, %v2400_v22  ;;  %vm3515_vm6 = vcmp.lt.s32.totalorder %v3494_v13, 3  ;;  %v3521_v14 = vsel %vm3513_vm4, %v3500_v63, %v3503_v4 }
 0x290   : > { %v3522_v57 = vsel %vm3516_vm5, %v3509_v0, 920167782  ;;  %v3497_v35 = vshrl.u32 %v5203_v33, %v3496_v7  ;;  %vm3514_vm9 = vcmp.lt.s32.totalorder %v3494_v13, 2  ;;  %v2423_v60 = vsub.s32 4, %v2399_v8 }
 0x291   : > { %v3462_v2 = vsel %vm3379_vm7, %v3461_v20, %v3460_v16  ;;  %v3523_v28 = vsel %vm3515_vm6, %v3506_v58, %v3522_v57  ;;  %v2403_v37 = vsub.s32 0, %v6680_v10  ;;  %v3518_v59 = vsel %vm3516_vm5, %v3506_v58, 2102212464 }
 0x292   : > { %v3465_v40 = vsel %vm6599_vm8, %v6301_v15, %v3462_v2  ;;  %v3524_v29 = vsel %vm3514_vm9, %v3521_v14, %v3523_v28  ;;  %v3525_v32 = vsel %vm3513_vm4, %v3503_v4, %v3506_v58  ;;  %v3526_v36 = vsel %vm3516_vm5, %v3512_v5, 1326507024 }
 0x293   : > { %5049 = vcosq.f32 %v3465_v40  ;;  %v4465_v7 = vmin.u32 %v2403_v37, %v6680_v10  ;;  %v3517_v1 = vsel %vm3513_vm4, %v3497_v35, %v3500_v63  ;;  %v3527_v12 = vsel %vm3515_vm6, %v3509_v0, %v3526_v36 }
 0x294   : > { %5051 = vsinq.f32 %v3465_v40  ;;  %v3519_v26 = vsel %vm3515_vm6, %v3503_v4, %v3518_v59  ;;  %v3528_v24 = vsel %vm3514_vm9, %v3525_v32, %v3527_v12  ;;  %vm6707_vm7 = vcmp.le.f32.partialorder %v2337_v56, 0.7853982 }
 0x295   : > { %v6701_v43 = vmul.u32.u64.low %v3529_v55, %v3524_v29  ;;  %v6702_v25 = vmul.u32.u64.high %v3529_v55, %v3524_v29, %v6701_v43  ;;  %v2405_v21 = vclz %v4465_v7  ;;  %vm2339_vm8 = vcmp.lt.s32.totalorder %v6506_v18, 0 }
 0x296   : > { %v6712_v54 = vmul.u32.u64.low %v3529_v55, %v3528_v24  ;;  %v6713_v11 = vmul.u32.u64.high %v3529_v55, %v3528_v24, %v6712_v54  ;;  %vm3473_vm10 = vcmp.eq.s32.totalorder %v6674_v61, 0  ;;  %v3520_v34 = vsel %vm3514_vm9, %v3517_v1, %v3519_v26 }
 0x297   : > { %v4466_v39 = vadd.s32 4294967294, %v2405_v21  ;;  %v2028_v63 = vand.u32 2139095040, %v6678_v53  ;;  %vm3472_vm13 = vcmp.lt.s32.totalorder %v6674_v61, 2  ;;  %vm3476_vm11 = vcmp.eq.s32.totalorder %v6674_v61, 2 }
 0x298   : > { %v2424_v56 = vsel %vm2339_vm8, %v2423_v60, %v2399_v8  ;;  %v3539_v4 = vadd.s32 1, %v6702_v25  ;;  %v2025_v38 = vand.u32 2147483647, %v6678_v53  ;;  %vm3469_vm14 = vweird.f32 %v6301_v15 }
 0x299   : > { %vm4467_vm12 = vcmp.lt.s32.totalorder %v4466_v39, 0  ;;  %v2029_v16 = vshrl.u32 %v2028_v63, 23  ;;  %v3689_v13 = vand.u32 2147483647, %v6463_v31  ;;  %v3692_v58 = vand.u32 2139095040, %v6463_v31 }
 0x29a   : > { %v2393_v0 = vadd.s32 %v6632_v50, %v6638_v27  ;;  %v2408_v62 = vsel %vm4467_vm12, 0, %v4466_v39  ;;  %v3536_v22 = vmul.u32 %v3529_v55, %v3520_v34  ;;  %vm3538_vm15 = vc.u32 %v6713_v11, %v6701_v43 }
 0x29b   : > { %v2409_v8 = vsub.s32 32, %v2408_v62  ;;  %v2413_v20 = vsub.s32 4294967266, %v2408_v62  ;;  %v2426_v5 = vsel %vm6707_vm7, 0, %v2424_v56  ;;  %v3540_v14 = vsel %vm3538_vm15, %v3539_v4, %v6702_v25 }
 0x29c   : > { %v2410_v2 = vshll.u32 %v6680_v10, %v2408_v62  ;;  %v3541_v35 = vadd.s32 %v3540_v14, %v3536_v22  ;;  %v4452_v28 = vadd.s32 4294967169, %v2029_v16  ;;  %v2032_v50 = vand.u32 8388607, %v2025_v38 }
 0x29d   : > { %v5050_v57 = vpop.eup %5049  ;;  %v2411_v40 = vshrl.u32 %v2393_v0, %v2409_v8  ;;  %v2414_v37 = vadd.s32 127, %v2413_v20  ;;  %v3693_v60 = vshrl.u32 %v3692_v58, 23  ;;  %v2430_v29 = vadd.s32 3, %v2426_v5 }
 0x29e   : > { %v5052_v27 = vpop.eup %5051  ;;  %v3477_v55 = vxor.u32 2147483648, %v5050_v57  ;;  %v3542_v32 = vadd.s32 536870912, %v3541_v35  ;;  %v2035_v36 = vadd.s32 1, %v4452_v28  ;;  %v6743_v12 = vand.u32 8388607, %v3689_v13 }
 0x29f   : > { %v3474_v59 = vxor.u32 2147483648, %v5052_v27  ;;  %v2412_v1 = vor.u32 %v2411_v40, %v2410_v2  ;;  %v2415_v10 = vshll.u32 %v2414_v37, 23  ;;  %v2033_v25 = vor.u32 8388608, %v2032_v50 }
 0x2a0   : > { %v3478_v7 = vsel %vm3476_vm11, %v3477_v55, %v5052_v27  ;;  %v3543_v24 = vshrl.u32 %v3542_v32, 30  ;;  %vm2036_vm0 = vcmp.gt.s32.totalorder %v2035_v36, 0  ;;  %v4516_v34 = vadd.s32 4294967169, %v3693_v60 }
 0x2a1   : > { %v3475_v26 = vsel %vm3473_vm10, %v5050_v57, %v3474_v59  ;;  %v2416_v54 = vor.u32 4788187, %v2415_v10  ;;  %v2037_v39 = vsel %vm2036_vm0, %v2035_v36, 0  ;;  %v2419_v16 = vcvt.s32.f32 %v2412_v1 }
 0x2a2   : > { %v3479_v21 = vsel %vm3472_vm13, %v3475_v26, %v3478_v7  ;;  %v3544_v56 = vshll.u32 %v3543_v24, 30  ;;  %vm3483_vm2 = vcmp.lt.s32.totalorder %v6457_v17, 0  ;;  %v2039_v58 = vand.u32 31, %v2037_v39 }
 0x2a3   : > { %v3480_v63 = vsel %vm3469_vm14, nan, %v3479_v21  ;;  %v2417_v4 = vand.u32 2147483647, %v2416_v54  ;;  %v6753_v0 = vand.u32 3, %v2430_v29  ;;  %v3537_v62 = vadd.s32 %v6701_v43, %v6713_v11 }
 0x2a4   : > { %4328 = vst [vmem:[%s5946_s6 + $0x78] sm:$0xff] %v3480_v63  ;;  %v6757_v61 = vsub.s32 %v3541_v35, %v3544_v56  ;;  %v6759_v22 = vshll.u32 %v2033_v25, 8  ;;  %v2040_v20 = vsub.s32 32, %v2039_v58  ;;  %v3697_v15 = vor.u32 8388608, %v6743_v12  ;;  %v6793_v56 = vpop.f32.mrb[15].mxu0 }
 0x2a5   : > { %v2420_v8 = vmul.f32 %v2419_v16, %v2417_v4  ;;  %v3699_v5 = vadd.s32 1, %v4516_v34  ;;  %v3567_v57 = vsub.s32 4, %v3543_v24  ;;  %v2038_v2 = vshrl.u32 %v2037_v39, 5 }
 0x2a6   : > { %v3547_v14 = vsub.s32 0, %v6757_v61  ;;  %v2042_v28 = vshll.u32 %v5203_v33, %v2039_v58  ;;  %v2043_v27 = vshrl.u32 %v5204_v41, %v2040_v20  ;;  %v2045_v43 = vshll.u32 %v5204_v41, %v2039_v58 }
 0x2a7   : > { %v2421_v50 = vxor.u32 2147483648, %v2420_v8  ;;  %v2046_v11 = vshrl.u32 %v5205_v45, %v2040_v20  ;;  %v2048_v55 = vshll.u32 %v5205_v45, %v2039_v58  ;;  %v2049_v40 = vshrl.u32 %v5206_v49, %v2040_v20 }
 0x2a8   : > { %v4509_v35 = vmin.u32 %v3547_v14, %v6757_v61  ;;  %v2051_v37 = vshll.u32 %v5206_v49, %v2039_v58  ;;  %v2044_v59 = vor.u32 %v2043_v27, %v2042_v28  ;;  %v2052_v32 = vshrl.u32 %v5207_v51, %v2040_v20 }
 0x2a9   : > { %v2422_v60 = vsel %vm2339_vm8, %v2421_v50, %v2420_v8  ;;  %v2047_v29 = vor.u32 %v2046_v11, %v2045_v43  ;;  %v6779_v1 = vsel %vm3483_vm2, %v3567_v57, %v3543_v24  ;;  %vm3700_vm1 = vcmp.gt.s32.totalorder %v3699_v5, 0 }
 0x2aa   : > { %v2425_v36 = vsel %vm6707_vm7, %v6506_v18, %v2422_v60  ;;  %v3549_v7 = vclz %v4509_v35  ;;  %v2050_v10 = vor.u32 %v2049_v40, %v2048_v55  ;;  %v2053_v26 = vor.u32 %v2052_v32, %v2051_v37 }
 0x2ab   : > { %5053 = vcosq.f32 %v2425_v36  ;;  %vm2057_vm3 = vcmp.lt.s32.totalorder %v2038_v2, 1  ;;  %vm6783_vm4 = vcmp.le.f32.partialorder %v3481_v30, 0.7853982  ;;  %v2054_v52 = vshll.u32 %v5207_v51, %v2039_v58 }
 0x2ac   : > { %5055 = vsinq.f32 %v2425_v36  ;;  %v4510_v21 = vadd.s32 4294967294, %v3549_v7  ;;  %v2055_v54 = vshrl.u32 %v7679_v19, %v2040_v20  ;;  %v2041_v24 = vshrl.u32 %v5203_v33, %v2040_v20 }
 0x2ad   : > { %vm2059_vm5 = vcmp.lt.s32.totalorder %v2038_v2, 3  ;;  %vm2060_vm6 = vcmp.lt.s32.totalorder %v2038_v2, 4  ;;  %v2065_v39 = vsel %vm2057_vm3, %v2044_v59, %v2047_v29  ;;  %vm2436_vm7 = vcmp.eq.s32.totalorder %v6753_v0, 2 }
 0x2ae   : > { %vm4511_vm9 = vcmp.lt.s32.totalorder %v4510_v21, 0  ;;  %v2056_v34 = vor.u32 %v2055_v54, %v2054_v52  ;;  %v2062_v63 = vsel %vm2060_vm6, %v2050_v10, 2102212464  ;;  %v2066_v30 = vsel %vm2060_vm6, %v2053_v26, 920167782 }
 0x2af   : > { %v3552_v4 = vsel %vm4511_vm9, 0, %v4510_v21  ;;  %v2061_v16 = vsel %vm2057_vm3, %v2041_v24, %v2044_v59  ;;  %v2063_v58 = vsel %vm2059_vm5, %v2047_v29, %v2062_v63  ;;  %v2067_v8 = vsel %vm2059_vm5, %v2050_v10, %v2066_v30 }
 0x2b0   : > { %vm2433_vm8 = vcmp.eq.s32.totalorder %v6753_v0, 0  ;;  %v3553_v20 = vsub.s32 32, %v3552_v4  ;;  %v3557_v14 = vsub.s32 4294967266, %v3552_v4  ;;  %vm2058_vm10 = vcmp.lt.s32.totalorder %v2038_v2, 2 }
 0x2b1   : > { %v2069_v57 = vsel %vm2057_vm3, %v2047_v29, %v2050_v10  ;;  %vm2432_vm13 = vcmp.lt.s32.totalorder %v6753_v0, 2  ;;  %v3554_v28 = vshll.u32 %v6757_v61, %v3552_v4  ;;  %v2068_v50 = vsel %vm2058_vm10, %v2065_v39, %v2067_v8 }
 0x2b2   : > { %v2070_v27 = vsel %vm2060_vm6, %v2056_v34, 1326507024  ;;  %v3701_v43 = vsel %vm3700_vm1, %v3699_v5, 0  ;;  %vm2429_vm11 = vweird.f32 %v6506_v18  ;;  %v3555_v11 = vshrl.u32 %v3537_v62, %v3553_v20 }
 0x2b3   : > { %v3558_v35 = vadd.s32 127, %v3557_v14  ;;  %v2064_v55 = vsel %vm2058_vm10, %v2061_v16, %v2063_v58  ;;  %v2071_v40 = vsel %vm2059_vm5, %v2053_v26, %v2070_v27  ;;  %v3703_v29 = vand.u32 31, %v3701_v43 }
 0x2b4   : > { %v2072_v37 = vsel %vm2058_vm10, %v2069_v57, %v2071_v40  ;;  %v6808_v60 = vmul.u32.u64.low %v6759_v22, %v2068_v50  ;;  %v6809_v59 = vmul.u32.u64.high %v6759_v22, %v2068_v50, %v6808_v60  ;;  %v3556_v61 = vor.u32 %v3555_v11, %v3554_v28 }
 0x2b5   : > { %v3559_v32 = vshll.u32 %v3558_v35, 23  ;;  %v6813_v36 = vmul.u32.u64.low %v6759_v22, %v2072_v37  ;;  %v6814_v7 = vmul.u32.u64.high %v6759_v22, %v2072_v37, %v6813_v36  ;;  %v5054_v5 = vpop.eup %5053  ;;  %v3570_v62 = vsel %vm6783_vm4, 0, %v6779_v1 }
 0x2b6   : > { %v2080_v2 = vmul.u32 %v6759_v22, %v2064_v55  ;;  %v6820_v10 = vshrl.u32 %v3701_v43, 5  ;;  %v3704_v26 = vsub.s32 32, %v3703_v29  ;;  %v5056_v21 = vpop.eup %5055  ;;  %v2437_v52 = vxor.u32 2147483648, %v5054_v5 }
 0x2b7   : > { %v3560_v54 = vor.u32 4788187, %v3559_v32  ;;  %v3706_v24 = vshll.u32 %v5203_v33, %v3703_v29  ;;  %v3709_v39 = vshll.u32 %v5204_v41, %v3703_v29  ;;  %v2434_v34 = vxor.u32 2147483648, %v5056_v21 }
 0x2b8   : > { %v2083_v63 = vadd.s32 1, %v6809_v59  ;;  %v3707_v30 = vshrl.u32 %v5204_v41, %v3704_v26  ;;  %v3712_v4 = vshll.u32 %v5205_v45, %v3703_v29  ;;  %v2438_v22 = vsel %vm2436_vm7, %v2437_v52, %v5056_v21 }
 0x2b9   : > { %v3561_v1 = vand.u32 2147483647, %v3560_v54  ;;  %v3563_v16 = vcvt.s32.f32 %v3556_v61  ;;  %vm2082_vm14 = vc.u32 %v6814_v7, %v6808_v60  ;;  %v2435_v58 = vsel %vm2433_vm8, %v5054_v5, %v2434_v34 }
 0x2ba   : > { %v2084_v8 = vsel %vm2082_vm14, %v2083_v63, %v6809_v59  ;;  %v3710_v20 = vshrl.u32 %v5205_v45, %v3704_v26  ;;  %v3715_v14 = vshll.u32 %v5206_v49, %v3703_v29  ;;  %v2439_v57 = vsel %vm2432_vm13, %v2435_v58, %v2438_v22 }
 0x2bb   : > { %v3564_v28 = vmul.f32 %v3563_v16, %v3561_v1  ;;  %v2085_v50 = vadd.s32 %v2084_v8, %v2080_v2  ;;  %v3713_v27 = vshrl.u32 %v5206_v49, %v3704_v26  ;;  %v2440_v43 = vsel %vm2429_vm11, nan, %v2439_v57 }
 0x2bc   : > { %v3708_v11 = vor.u32 %v3707_v30, %v3706_v24  ;;  %v3711_v35 = vor.u32 %v3710_v20, %v3709_v39  ;;  %v3716_v55 = vshrl.u32 %v5207_v51, %v3704_v26  ;;  %4318 = vst [vmem:[%s5946_s6 + $0x28] sm:$0xff] %v2440_v43  ;;  %v3718_v59 = vshll.u32 %v5207_v51, %v3703_v29 }
 0x2bd   : > { %v3565_v40 = vxor.u32 2147483648, %v3564_v28  ;;  %v2086_v37 = vadd.s32 536870912, %v2085_v50  ;;  %v3719_v61 = vshrl.u32 %v7679_v19, %v3704_v26  ;;  %v3574_v0 = vadd.s32 3, %v3570_v62 }
 0x2be   : > { %vm2027_vm12 = vcmp.lt.s32.totalorder %v6678_v53, 0  ;;  %v3714_v32 = vor.u32 %v3713_v27, %v3712_v4  ;;  %v3717_v36 = vor.u32 %v3716_v55, %v3715_v14  ;;  %v3737_v18 = vshll.u32 %v3697_v15, 8 }
 0x2bf   : > { %v3566_v5 = vsel %vm3483_vm2, %v3565_v40, %v3564_v28  ;;  %v2087_v2 = vshrl.u32 %v2086_v37, 30  ;;  %v3705_v21 = vshrl.u32 %v5203_v33, %v3704_v26  ;;  %v3720_v52 = vor.u32 %v3719_v61, %v3718_v59  ;;  %v6904_v40 = vpop.f32.mrb[21].mxu1 }
 0x2c0   : > { %v3569_v29 = vsel %vm6783_vm4, %v6457_v17, %v3566_v5  ;;  %vm3721_vm15 = vcmp.lt.s32.totalorder %v6820_v10, 1  ;;  %vm3722_vm0 = vcmp.lt.s32.totalorder %v6820_v10, 2  ;;  %vm3723_vm1 = vcmp.lt.s32.totalorder %v6820_v10, 3 }
 0x2c1   : > { %5057 = vcosq.f32 %v3569_v29  ;;  %v2088_v12 = vshll.u32 %v2087_v2, 30  ;;  %vm3724_vm3 = vcmp.lt.s32.totalorder %v6820_v10, 4  ;;  %v3729_v15 = vsel %vm3721_vm15, %v3708_v11, %v3711_v35 }
 0x2c2   : > { %5059 = vsinq.f32 %v3569_v29  ;;  %v3726_v62 = vsel %vm3724_vm3, %v3714_v32, 2102212464  ;;  %v3730_v26 = vsel %vm3724_vm3, %v3717_v36, 920167782  ;;  %v3733_v25 = vsel %vm3721_vm15, %v3711_v35, %v3714_v32 }
 0x2c3   : > { %v6862_v54 = vsub.s32 %v2085_v50, %v2088_v12  ;;  %v2111_v24 = vsub.s32 4, %v2087_v2  ;;  %v3731_v39 = vsel %vm3723_vm1, %v3714_v32, %v3730_v26  ;;  %v3734_v34 = vsel %vm3724_vm3, %v3720_v52, 1326507024 }
 0x2c4   : > { %v3575_v63 = vand.u32 3, %v3574_v0  ;;  %v3725_v30 = vsel %vm3721_vm15, %v3705_v21, %v3708_v11  ;;  %v3732_v4 = vsel %vm3722_vm0, %v3729_v15, %v3731_v39  ;;  %v3735_v22 = vsel %vm3723_vm1, %v3717_v36, %v3734_v34 }
 0x2c5   : > { %v2091_v1 = vsub.s32 0, %v6862_v54  ;;  %v3727_v16 = vsel %vm3723_vm1, %v3711_v35, %v3726_v62  ;;  %v3736_v58 = vsel %vm3722_vm0, %v3733_v25, %v3735_v22  ;;  %v6879_v8 = vadd.f32 %v6335_v9, %v6492_v23 }
 0x2c6   : > { %v6881_v20 = vmul.u32.u64.low %v3737_v18, %v3736_v58  ;;  %v6882_v14 = vmul.u32.u64.high %v3737_v18, %v3736_v58, %v6881_v20  ;;  %v6884_v57 = vmul.u32.u64.low %v3737_v18, %v3732_v4  ;;  %v6885_v28 = vmul.u32.u64.high %v3737_v18, %v3732_v4, %v6884_v57 }
 0x2c7   : > { %v4453_v50 = vmin.u32 %v2091_v1, %v6862_v54  ;;  %v2112_v27 = vsel %vm2027_vm12, %v2111_v24, %v2087_v2  ;;  %v3728_v43 = vsel %vm3722_vm0, %v3725_v30, %v3727_v16  ;;  %v2964_v11 = vand.u32 2139095040, %v6879_v8 }
 0x2c8   : > { %v6895_v9 = vadd.f32 %v5633_v44, %v6473_v42  ;;  %vm3573_vm2 = vweird.f32 %v6457_v17  ;;  %vm3576_vm4 = vcmp.lt.s32.totalorder %v3575_v63, 2  ;;  %vm6900_vm5 = vcmp.le.f32.partialorder %v2025_v38, 0.7853982 }
 0x2c9   : > { %v2093_v55 = vclz %v4453_v50  ;;  %vm3577_vm6 = vcmp.eq.s32.totalorder %v3575_v63, 0  ;;  %v2114_v10 = vsel %vm6900_vm5, 0, %v2112_v27  ;;  %vm3746_vm9 = vc.u32 %v6882_v14, %v6884_v57 }
 0x2ca   : > { %v3747_v44 = vadd.s32 1, %v6885_v28  ;;  %v3744_v59 = vmul.u32 %v3737_v18, %v3728_v43  ;;  %v2961_v61 = vand.u32 2147483647, %v6879_v8  ;;  %v2965_v38 = vshrl.u32 %v2964_v11, 23 }
 0x2cb   : > { %v5058_v42 = vpop.eup %5057  ;;  %v4454_v37 = vadd.s32 4294967294, %v2093_v55  ;;  %vm3580_vm7 = vcmp.eq.s32.totalorder %v3575_v63, 2  ;;  %v3796_v5 = vand.u32 2139095040, %v6895_v9  ;;  %v2081_v12 = vadd.s32 %v6808_v60, %v6814_v7 }
 0x2cc   : > { %v5060_v0 = vpop.eup %5059  ;;  %v3581_v32 = vxor.u32 2147483648, %v5058_v42  ;;  %v3748_v36 = vsel %vm3746_vm9, %v3747_v44, %v6885_v28  ;;  %v4488_v52 = vadd.s32 4294967169, %v2965_v38  ;;  %v2118_v15 = vadd.s32 3, %v2114_v10 }
 0x2cd   : > { %v3578_v2 = vxor.u32 2147483648, %v5060_v0  ;;  %vm4455_vm8 = vcmp.lt.s32.totalorder %v4454_v37, 0  ;;  %v3749_v21 = vadd.s32 %v3748_v36, %v3744_v59  ;;  %v2968_v24 = vand.u32 8388607, %v2961_v61 }
 0x2ce   : > { %v3582_v29 = vsel %vm3580_vm7, %v3581_v32, %v5060_v0  ;;  %v2096_v18 = vsel %vm4455_vm8, 0, %v4454_v37  ;;  %v2971_v4 = vadd.s32 1, %v4488_v52  ;;  %v3797_v7 = vshrl.u32 %v3796_v5, 23 }
 0x2cf   : > { %v3579_v62 = vsel %vm3577_vm6, %v5058_v42, %v3578_v2  ;;  %v2097_v26 = vsub.s32 32, %v2096_v18  ;;  %v2101_v25 = vsub.s32 4294967266, %v2096_v18  ;;  %v2098_v34 = vshll.u32 %v6862_v54, %v2096_v18 }
 0x2d0   : > { %v3583_v39 = vsel %vm3576_vm4, %v3579_v62, %v3582_v29  ;;  %v3750_v30 = vadd.s32 536870912, %v3749_v21  ;;  %vm2972_vm10 = vcmp.gt.s32.totalorder %v2971_v4, 0  ;;  %v2969_v28 = vor.u32 8388608, %v2968_v24 }
 0x2d1   : > { %v3584_v22 = vsel %vm3573_vm2, nan, %v3583_v39  ;;  %v2099_v1 = vshrl.u32 %v2081_v12, %v2097_v26  ;;  %v2102_v60 = vadd.s32 127, %v2101_v25  ;;  %v2973_v50 = vsel %vm2972_vm10, %v2971_v4, 0 }
 0x2d2   : > { %4329 = vst [vmem:[%s5946_s6 + $0x80] sm:$0xff] %v3584_v22  ;;  %v3751_v16 = vshrl.u32 %v3750_v30, 30  ;;  %v2975_v43 = vand.u32 31, %v2973_v50  ;;  %v4520_v11 = vadd.s32 4294967169, %v3797_v7  ;;  %v6923_v55 = vand.u32 3, %v2118_v15 }
 0x2d3   : > { %v2100_v58 = vor.u32 %v2099_v1, %v2098_v34  ;;  %v2103_v20 = vshll.u32 %v2102_v60, 23  ;;  %vm6927_vm13 = vcmp.le.f32.partialorder %v3689_v13, 0.7853982  ;;  %vm3691_vm11 = vcmp.lt.s32.totalorder %v6463_v31, 0 }
 0x2d4   : > { %v3752_v27 = vshll.u32 %v3751_v16, 30  ;;  %v3775_v63 = vsub.s32 4, %v3751_v16  ;;  %v3745_v10 = vadd.s32 %v6884_v57, %v6882_v14  ;;  %v2976_v42 = vsub.s32 32, %v2975_v43 }
 0x2d5   : > { %v2104_v54 = vor.u32 4788187, %v2103_v20  ;;  %v3793_v37 = vand.u32 2147483647, %v6895_v9  ;;  %v2107_v38 = vcvt.s32.f32 %v2100_v58  ;;  %v2974_v0 = vshrl.u32 %v2973_v50, 5 }
 0x2d6   : > { %v6933_v44 = vsub.s32 %v3749_v21, %v3752_v27  ;;  %v6936_v32 = vshll.u32 %v2969_v28, 8  ;;  %v6941_v13 = vsel %vm3691_vm11, %v3775_v63, %v3751_v16  ;;  %v2979_v5 = vshrl.u32 %v5204_v41, %v2976_v42 }
 0x2d7   : > { %v2105_v59 = vand.u32 2147483647, %v2104_v54  ;;  %v3803_v2 = vadd.s32 1, %v4520_v11  ;;  %v2978_v57 = vshll.u32 %v5203_v33, %v2975_v43  ;;  %v2982_v21 = vshrl.u32 %v5205_v45, %v2976_v42 }
 0x2d8   : > { %v3755_v36 = vsub.s32 0, %v6933_v44  ;;  %v2985_v52 = vshrl.u32 %v5206_v49, %v2976_v42  ;;  %v2981_v12 = vshll.u32 %v5204_v41, %v2975_v43  ;;  %v2984_v18 = vshll.u32 %v5205_v45, %v2975_v43 }
 0x2d9   : > { %v2108_v14 = vmul.f32 %v2107_v38, %v2105_v59  ;;  %v2988_v15 = vshrl.u32 %v5207_v51, %v2976_v42  ;;  %v3778_v26 = vsel %vm6927_vm13, 0, %v6941_v13  ;;  %v2977_v25 = vshrl.u32 %v5203_v33, %v2976_v42  ;;  %v6970_v38 = vpop.f32.mrb[22].mxu1 }
 0x2da   : > { %v4517_v29 = vmin.u32 %v3755_v36, %v6933_v44  ;;  %v2987_v24 = vshll.u32 %v5206_v49, %v2975_v43  ;;  %v2980_v34 = vor.u32 %v2979_v5, %v2978_v57  ;;  %v2983_v30 = vor.u32 %v2982_v21, %v2981_v12 }
 0x2db   : > { %v2109_v62 = vxor.u32 2147483648, %v2108_v14  ;;  %v2986_v4 = vor.u32 %v2985_v52, %v2984_v18  ;;  %v2990_v60 = vshll.u32 %v5207_v51, %v2975_v43  ;;  %v2991_v7 = vshrl.u32 %v7679_v19, %v2976_v42 }
 0x2dc   : > { %v3757_v39 = vclz %v4517_v29  ;;  %v2989_v1 = vor.u32 %v2988_v15, %v2987_v24  ;;  %vm2993_vm14 = vcmp.lt.s32.totalorder %v2974_v0, 1  ;;  %vm2994_vm15 = vcmp.lt.s32.totalorder %v2974_v0, 2 }
 0x2dd   : > { %v2110_v22 = vsel %vm2027_vm12, %v2109_v62, %v2108_v14  ;;  %v2992_v20 = vor.u32 %v2991_v7, %v2990_v60  ;;  %vm2995_vm0 = vcmp.lt.s32.totalorder %v2974_v0, 3  ;;  %vm2996_vm1 = vcmp.lt.s32.totalorder %v2974_v0, 4 }
 0x2de   : > { %v2113_v16 = vsel %vm6900_vm5, %v6678_v53, %v2110_v22  ;;  %v4518_v58 = vadd.s32 4294967294, %v3757_v39  ;;  %v2997_v28 = vsel %vm2993_vm14, %v2977_v25, %v2980_v34  ;;  %v2998_v50 = vsel %vm2996_vm1, %v2986_v4, 2102212464 }
 0x2df   : > { %5061 = vcosq.f32 %v2113_v16  ;;  %v2999_v63 = vsel %vm2995_vm0, %v2983_v30, %v2998_v50  ;;  %v3001_v43 = vsel %vm2993_vm14, %v2980_v34, %v2983_v30  ;;  %v3002_v35 = vsel %vm2996_vm1, %v2989_v1, 920167782 }
 0x2e0   : > { %5063 = vsinq.f32 %v2113_v16  ;;  %vm4519_vm3 = vcmp.lt.s32.totalorder %v4518_v58, 0  ;;  %v3005_v59 = vsel %vm2993_vm14, %v2983_v30, %v2986_v4  ;;  %v3000_v36 = vsel %vm2994_vm15, %v2997_v28, %v2999_v63 }
 0x2e1   : > { %v3760_v27 = vsel %vm4519_vm3, 0, %v4518_v58  ;;  %v3003_v13 = vsel %vm2995_vm0, %v2986_v4, %v3002_v35  ;;  %v3006_v5 = vsel %vm2996_vm1, %v2992_v20, 1326507024  ;;  %vm3804_vm12 = vcmp.gt.s32.totalorder %v3803_v2, 0 }
 0x2e2   : > { %v3761_v11 = vsub.s32 32, %v3760_v27  ;;  %v3762_v54 = vshll.u32 %v6933_v44, %v3760_v27  ;;  %v3765_v42 = vsub.s32 4294967266, %v3760_v27  ;;  %v3004_v21 = vsel %vm2994_vm15, %v3001_v43, %v3003_v13 }
 0x2e3   : > { %v3007_v52 = vsel %vm2995_vm0, %v2989_v1, %v3006_v5  ;;  %v6979_v29 = vmul.u32.u64.low %v6936_v32, %v3004_v21  ;;  %v6980_v12 = vmul.u32.u64.high %v6936_v32, %v3004_v21, %v6979_v29  ;;  %v3805_v18 = vsel %vm3804_vm12, %v3803_v2, 0 }
 0x2e4   : > { %v3763_v14 = vshrl.u32 %v3745_v10, %v3761_v11  ;;  %v3766_v57 = vadd.s32 127, %v3765_v42  ;;  %v3008_v44 = vsel %vm2994_vm15, %v3005_v59, %v3007_v52  ;;  %vm2117_vm2 = vweird.f32 %v6678_v53 }
 0x2e5   : > { %v6984_v25 = vmul.u32.u64.low %v6936_v32, %v3008_v44  ;;  %v6985_v24 = vmul.u32.u64.high %v6936_v32, %v3008_v44, %v6984_v25  ;;  %vm2120_vm4 = vcmp.lt.s32.totalorder %v6923_v55, 2  ;;  %v3807_v10 = vand.u32 31, %v3805_v18 }
 0x2e6   : > { %v3764_v15 = vor.u32 %v3763_v14, %v3762_v54  ;;  %v3767_v62 = vshll.u32 %v3766_v57, 23  ;;  %v6991_v0 = vadd.f32 %v6534_v47, %v6492_v23  ;;  %vm2121_vm5 = vcmp.eq.s32.totalorder %v6923_v55, 0 }
 0x2e7   : > { %vm2124_vm6 = vcmp.eq.s32.totalorder %v6923_v55, 2  ;;  %v6997_v39 = vand.u32 8388607, %v3793_v37  ;;  %v3782_v30 = vadd.s32 3, %v3778_v26  ;;  %v3016_v4 = vmul.u32 %v6936_v32, %v3000_v36 }
 0x2e8   : > { %v3768_v2 = vor.u32 4788187, %v3767_v62  ;;  %v3019_v22 = vadd.s32 1, %v6980_v12  ;;  %v3808_v1 = vsub.s32 32, %v3807_v10  ;;  %v3771_v16 = vcvt.s32.f32 %v3764_v15 }
 0x2e9   : > { %v5062_v34 = vpop.eup %5061  ;;  %vm3018_vm9 = vc.u32 %v6985_v24, %v6979_v29  ;;  %v3810_v28 = vshll.u32 %v5203_v33, %v3807_v10  ;;  %v7011_v35 = vshrl.u32 %v3805_v18, 5  ;;  %v3813_v54 = vshll.u32 %v5204_v41, %v3807_v10 }
 0x2ea   : > { %v5064_v60 = vpop.eup %5063  ;;  %v2125_v7 = vxor.u32 2147483648, %v5062_v34  ;;  %v3769_v47 = vand.u32 2147483647, %v3768_v2  ;;  %v3020_v20 = vsel %vm3018_vm9, %v3019_v22, %v6980_v12  ;;  %v3811_v50 = vshrl.u32 %v5204_v41, %v3808_v1 }
 0x2eb   : > { %v2122_v58 = vxor.u32 2147483648, %v5064_v60  ;;  %v3021_v27 = vadd.s32 %v3020_v20, %v3016_v4  ;;  %v3814_v63 = vshrl.u32 %v5205_v45, %v3808_v1  ;;  %v3817_v13 = vshrl.u32 %v5206_v49, %v3808_v1 }
 0x2ec   : > { %v2126_v32 = vsel %vm2124_vm6, %v2125_v7, %v5064_v60  ;;  %v3772_v26 = vmul.f32 %v3771_v16, %v3769_v47  ;;  %v3812_v11 = vor.u32 %v3811_v50, %v3810_v28  ;;  %v3816_v14 = vshll.u32 %v5205_v45, %v3807_v10 }
 0x2ed   : > { %v2123_v43 = vsel %vm2121_vm5, %v5062_v34, %v2122_v58  ;;  %v3022_v36 = vadd.s32 536870912, %v3021_v27  ;;  %v3819_v57 = vshll.u32 %v5206_v49, %v3807_v10  ;;  %v3820_v21 = vshrl.u32 %v5207_v51, %v3808_v1 }
 0x2ee   : > { %v2127_v42 = vsel %vm2120_vm4, %v2123_v43, %v2126_v32  ;;  %v3773_v59 = vxor.u32 2147483648, %v3772_v26  ;;  %v3815_v55 = vor.u32 %v3814_v63, %v3813_v54  ;;  %v3823_v12 = vshrl.u32 %v7679_v19, %v3808_v1 }
 0x2ef   : > { %v2128_v5 = vsel %vm2117_vm2, nan, %v2127_v42  ;;  %v3023_v44 = vshrl.u32 %v3022_v36, 30  ;;  %v3821_v53 = vor.u32 %v3820_v21, %v3819_v57  ;;  %v3822_v15 = vshll.u32 %v5207_v51, %v3807_v10 }
 0x2f0   : > { %4315 = vst [vmem:[%s5946_s6 + $0x10] sm:$0xff] %v2128_v5  ;;  %v3774_v52 = vsel %vm3691_vm11, %v3773_v59, %v3772_v26  ;;  %vm2963_vm7 = vcmp.lt.s32.totalorder %v6879_v8, 0  ;;  %v3801_v25 = vor.u32 8388608, %v6997_v39  ;;  %v3818_v2 = vor.u32 %v3817_v13, %v3816_v14 }
 0x2f1   : > { %v3777_v18 = vsel %vm6927_vm13, %v6463_v31, %v3774_v52  ;;  %v3024_v62 = vshll.u32 %v3023_v44, 30  ;;  %v3783_v34 = vand.u32 3, %v3782_v30  ;;  %v3824_v4 = vor.u32 %v3823_v12, %v3822_v15 }
 0x2f2   : > { %5065 = vcosq.f32 %v3777_v18  ;;  %vm3825_vm8 = vcmp.lt.s32.totalorder %v7011_v35, 1  ;;  %vm3828_vm10 = vcmp.lt.s32.totalorder %v7011_v35, 4  ;;  %v2652_v10 = vand.u32 2139095040, %v6991_v0 }
 0x2f3   : > { %5067 = vsinq.f32 %v3777_v18  ;;  %v7033_v22 = vsub.s32 %v3021_v27, %v3024_v62  ;;  %v3833_v17 = vsel %vm3825_vm8, %v3812_v11, %v3815_v55  ;;  %v3809_v60 = vshrl.u32 %v5203_v33, %v3808_v1 }
 0x2f4   : > { %vm3826_vm13 = vcmp.lt.s32.totalorder %v7011_v35, 2  ;;  %vm3827_vm11 = vcmp.lt.s32.totalorder %v7011_v35, 3  ;;  %v3834_v39 = vsel %vm3828_vm10, %v3821_v53, 920167782  ;;  %v3830_v7 = vsel %vm3828_vm10, %v3818_v2, 2102212464 }
 0x2f5   : > { %v3027_v30 = vsub.s32 0, %v7033_v22  ;;  %v3835_v47 = vsel %vm3827_vm11, %v3818_v2, %v3834_v39  ;;  %v3837_v16 = vsel %vm3825_vm8, %v3815_v55, %v3818_v2  ;;  %v3047_v58 = vsub.s32 4, %v3023_v44 }
 0x2f6   : > { %v3836_v20 = vsel %vm3826_vm13, %v3833_v17, %v3835_v47  ;;  %v3838_v28 = vsel %vm3828_vm10, %v3824_v4, 1326507024  ;;  %v3841_v50 = vshll.u32 %v3801_v25, 8  ;;  %v3829_v32 = vsel %vm3825_vm8, %v3809_v60, %v3812_v11  ;;  %v7080_v25 = vpop.f32.mrb[23].mxu1 }
 0x2f7   : > { %v4489_v1 = vmin.u32 %v3027_v30, %v7033_v22  ;;  %v3839_v26 = vsel %vm3827_vm11, %v3821_v53, %v3838_v28  ;;  %v2653_v27 = vshrl.u32 %v2652_v10, 23  ;;  %vm3781_vm14 = vweird.f32 %v6463_v31 }
 0x2f8   : > { %v3831_v63 = vsel %vm3827_vm11, %v3815_v55, %v3830_v7  ;;  %v3840_v43 = vsel %vm3826_vm13, %v3837_v16, %v3839_v26  ;;  %v7053_v54 = vmul.u32.u64.low %v3841_v50, %v3836_v20  ;;  %v7054_v42 = vmul.u32.u64.high %v3841_v50, %v3836_v20, %v7053_v54 }
 0x2f9   : > { %vm3784_vm15 = vcmp.lt.s32.totalorder %v3783_v34, 2  ;;  %vm3785_vm0 = vcmp.eq.s32.totalorder %v3783_v34, 0  ;;  %vm7059_vm1 = vcmp.le.f32.partialorder %v2961_v61, 0.7853982  ;;  %v3029_v11 = vclz %v4489_v1 }
 0x2fa   : > { %v3048_v36 = vsel %vm2963_vm7, %v3047_v58, %v3023_v44  ;;  %v7065_v13 = vmul.u32.u64.low %v3841_v50, %v3840_v43  ;;  %v7066_v5 = vmul.u32.u64.high %v3841_v50, %v3840_v43, %v7065_v13  ;;  %v4476_v14 = vadd.s32 4294967169, %v2653_v27 }
 0x2fb   : > { %v4490_v21 = vadd.s32 4294967294, %v3029_v11  ;;  %v3832_v52 = vsel %vm3826_vm13, %v3829_v32, %v3831_v63  ;;  %v2649_v55 = vand.u32 2147483647, %v6991_v0  ;;  %v7073_v61 = vadd.f32 %v5635_v46, %v6643_v6 }
 0x2fc   : > { %v5066_v57 = vpop.eup %5065  ;;  %vm3788_vm3 = vcmp.eq.s32.totalorder %v3783_v34, 2  ;;  %v3851_v44 = vadd.s32 1, %v7054_v42  ;;  %v2659_v53 = vadd.s32 1, %v4476_v14  ;;  %v3017_v62 = vadd.s32 %v6979_v29, %v6985_v24 }
 0x2fd   : > { %v5068_v12 = vpop.eup %5067  ;;  %v3789_v18 = vxor.u32 2147483648, %v5066_v57  ;;  %vm4491_vm12 = vcmp.lt.s32.totalorder %v4490_v21, 0  ;;  %v3050_v35 = vsel %vm7059_vm1, 0, %v3048_v36  ;;  %v3848_v6 = vmul.u32 %v3841_v50, %v3832_v52 }
 0x2fe   : > { %v3786_v15 = vxor.u32 2147483648, %v5068_v12  ;;  %v3032_v46 = vsel %vm4491_vm12, 0, %v4490_v21  ;;  %vm3850_vm2 = vc.u32 %v7066_v5, %v7053_v54  ;;  %v2656_v29 = vand.u32 8388607, %v2649_v55 }
 0x2ff   : > { %v3790_v2 = vsel %vm3788_vm3, %v3789_v18, %v5068_v12  ;;  %v3033_v17 = vsub.s32 32, %v3032_v46  ;;  %v3037_v10 = vsub.s32 4294967266, %v3032_v46  ;;  %v3034_v60 = vshll.u32 %v7033_v22, %v3032_v46 }
 0x300   : > { %v3787_v4 = vsel %vm3785_vm0, %v5066_v57, %v3786_v15  ;;  %v3852_v39 = vsel %vm3850_vm2, %v3851_v44, %v7054_v42  ;;  %vm2660_vm4 = vcmp.gt.s32.totalorder %v2659_v53, 0  ;;  %v3054_v58 = vadd.s32 3, %v3050_v35 }
 0x301   : > { %v3791_v24 = vsel %vm3784_vm15, %v3787_v4, %v3790_v2  ;;  %v3035_v7 = vshrl.u32 %v3017_v62, %v3033_v17  ;;  %v3038_v47 = vadd.s32 127, %v3037_v10  ;;  %v3853_v16 = vadd.s32 %v3852_v39, %v3848_v6 }
 0x302   : > { %v3792_v30 = vsel %vm3781_vm14, nan, %v3791_v24  ;;  %v2661_v20 = vsel %vm2660_vm4, %v2659_v53, 0  ;;  %v2657_v32 = vor.u32 8388608, %v2656_v29  ;;  %v7095_v22 = vand.u32 3, %v3054_v58 }
 0x303   : > { %4331 = vst [vmem:[%s5946_s6 + $0x90] sm:$0xff] %v3792_v30  ;;  %v3036_v28 = vor.u32 %v3035_v7, %v3034_v60  ;;  %v3039_v50 = vshll.u32 %v3038_v47, 23  ;;  %v3854_v1 = vadd.s32 536870912, %v3853_v16  ;;  %v2663_v34 = vand.u32 31, %v2661_v20 }
 0x304   : > { %v7098_v11 = vshll.u32 %v2657_v32, 8  ;;  %v4004_v57 = vand.u32 2139095040, %v7073_v61  ;;  %v2662_v44 = vshrl.u32 %v2661_v20, 5  ;;  %v4001_v62 = vand.u32 2147483647, %v7073_v61 }
 0x305   : > { %v3040_v26 = vor.u32 4788187, %v3039_v50  ;;  %v7093_v27 = vshrl.u32 %v3854_v1, 30  ;;  %v2664_v63 = vsub.s32 32, %v2663_v34  ;;  %v3043_v31 = vcvt.s32.f32 %v3036_v28 }
 0x306   : > { %v2666_v12 = vshll.u32 %v5203_v33, %v2663_v34  ;;  %v2669_v53 = vshll.u32 %v5204_v41, %v2663_v34  ;;  %v2672_v15 = vshll.u32 %v5205_v45, %v2663_v34  ;;  %v2675_v6 = vshll.u32 %v5206_v49, %v2663_v34 }
 0x307   : > { %v3041_v43 = vand.u32 2147483647, %v3040_v26  ;;  %v3856_v42 = vshll.u32 %v7093_v27, 30  ;;  %v2667_v36 = vshrl.u32 %v5204_v41, %v2664_v63  ;;  %v2670_v13 = vshrl.u32 %v5205_v45, %v2664_v63 }
 0x308   : > { %v2673_v14 = vshrl.u32 %v5206_v49, %v2664_v63  ;;  %v2676_v18 = vshrl.u32 %v5207_v51, %v2664_v63  ;;  %v2678_v10 = vshll.u32 %v5207_v51, %v2663_v34  ;;  %v2679_v29 = vshrl.u32 %v7679_v19, %v2664_v63 }
 0x309   : > { %v3044_v21 = vmul.f32 %v3043_v31, %v3041_v43  ;;  %v7104_v52 = vsub.s32 %v3853_v16, %v3856_v42  ;;  %v2668_v46 = vor.u32 %v2667_v36, %v2666_v12  ;;  %v2671_v4 = vor.u32 %v2670_v13, %v2669_v53 }
 0x30a   : > { %v2674_v17 = vor.u32 %v2673_v14, %v2672_v15  ;;  %v2677_v39 = vor.u32 %v2676_v18, %v2675_v6  ;;  %v4005_v30 = vshrl.u32 %v4004_v57, 23  ;;  %v3879_v47 = vsub.s32 4, %v7093_v27 }
 0x30b   : > { %v3045_v35 = vxor.u32 2147483648, %v3044_v21  ;;  %v3859_v2 = vsub.s32 0, %v7104_v52  ;;  %v2680_v16 = vor.u32 %v2679_v29, %v2678_v10  ;;  %vm2681_vm5 = vcmp.lt.s32.totalorder %v2662_v44, 1 }
 0x30c   : > { %vm3795_vm6 = vcmp.lt.s32.totalorder %v6895_v9, 0  ;;  %v2665_v20 = vshrl.u32 %v5203_v33, %v2664_v63  ;;  %vm2684_vm9 = vcmp.lt.s32.totalorder %v2662_v44, 4  ;;  %v2689_v50 = vsel %vm2681_vm5, %v2668_v46, %v2671_v4 }
 0x30d   : > { %v3046_v24 = vsel %vm2963_vm7, %v3045_v35, %v3044_v21  ;;  %v4521_v60 = vmin.u32 %v3859_v2, %v7104_v52  ;;  %vm2682_vm7 = vcmp.lt.s32.totalorder %v2662_v44, 2  ;;  %v2686_v28 = vsel %vm2684_vm9, %v2674_v17, 2102212464 }
 0x30e   : > { %v3049_v7 = vsel %vm7059_vm1, %v6879_v8, %v3046_v24  ;;  %vm2683_vm8 = vcmp.lt.s32.totalorder %v2662_v44, 3  ;;  %v2690_v32 = vsel %vm2684_vm9, %v2677_v39, 920167782  ;;  %v2693_v59 = vsel %vm2681_vm5, %v2671_v4, %v2674_v17 }
 0x30f   : > { %5069 = vcosq.f32 %v3049_v7  ;;  %v3861_v58 = vclz %v4521_v60  ;;  %vm7126_vm10 = vcmp.le.f32.partialorder %v3793_v37, 0.7853982  ;;  %v2685_v26 = vsel %vm2681_vm5, %v2665_v20, %v2668_v46 }
 0x310   : > { %5071 = vsinq.f32 %v3049_v7  ;;  %v2691_v43 = vsel %vm2683_vm8, %v2674_v17, %v2690_v32  ;;  %v2694_v31 = vsel %vm2684_vm9, %v2680_v16, 1326507024  ;;  %v4528_v42 = vadd.s32 4294967169, %v4005_v30 }
 0x311   : > { %v4522_v1 = vadd.s32 4294967294, %v3861_v58  ;;  %v2687_v63 = vsel %vm2683_vm8, %v2671_v4, %v2686_v28  ;;  %v2692_v36 = vsel %vm2682_vm7, %v2689_v50, %v2691_v43  ;;  %v2695_v13 = vsel %vm2683_vm8, %v2677_v39, %v2694_v31 }
 0x312   : > { %v2696_v57 = vsel %vm2682_vm7, %v2693_v59, %v2695_v13  ;;  %v7133_v21 = vmul.u32.u64.low %v7098_v11, %v2692_v36  ;;  %v7134_v12 = vmul.u32.u64.high %v7098_v11, %v2692_v36, %v7133_v21  ;;  %v3849_v37 = vadd.s32 %v7053_v54, %v7066_v5 }
 0x313   : > { %vm4523_vm13 = vcmp.lt.s32.totalorder %v4522_v1, 0  ;;  %v4011_v15 = vadd.s32 1, %v4528_v42  ;;  %vm3053_vm11 = vweird.f32 %v6879_v8  ;;  %vm3056_vm14 = vcmp.lt.s32.totalorder %v7095_v22, 2 }
 0x314   : > { %v3864_v14 = vsel %vm4523_vm13, 0, %v4522_v1  ;;  %v2688_v35 = vsel %vm2682_vm7, %v2685_v26, %v2687_v63  ;;  %v7143_v2 = vmul.u32.u64.low %v7098_v11, %v2696_v57  ;;  %v7144_v46 = vmul.u32.u64.high %v7098_v11, %v2696_v57, %v7143_v2 }
 0x315   : > { %v3865_v18 = vsub.s32 32, %v3864_v14  ;;  %v3869_v53 = vsub.s32 4294967266, %v3864_v14  ;;  %v3866_v6 = vshll.u32 %v7104_v52, %v3864_v14  ;;  %vm4012_vm15 = vcmp.gt.s32.totalorder %v4011_v15, 0 }
 0x316   : > { %vm3060_vm0 = vcmp.eq.s32.totalorder %v7095_v22, 2  ;;  %v3880_v54 = vsel %vm3795_vm6, %v3879_v47, %v7093_v27  ;;  %v2707_v5 = vadd.s32 1, %v7134_v12  ;;  %v4013_v10 = vsel %vm4012_vm15, %v4011_v15, 0 }
 0x317   : > { %v3867_v4 = vshrl.u32 %v3849_v37, %v3865_v18  ;;  %v3870_v17 = vadd.s32 127, %v3869_v53  ;;  %v4008_v60 = vand.u32 8388607, %v4001_v62  ;;  %v4015_v39 = vand.u32 31, %v4013_v10 }
 0x318   : > { %v2704_v7 = vmul.u32 %v7098_v11, %v2688_v35  ;;  %vm2706_vm1 = vc.u32 %v7144_v46, %v7133_v21  ;;  %v7159_v27 = vadd.f32 %v6715_v3, %v6492_v23  ;;  %v3882_v58 = vsel %vm7126_vm10, 0, %v3880_v54 }
 0x319   : > { %v5070_v44 = vpop.eup %5069  ;;  %v3868_v29 = vor.u32 %v3867_v4, %v3866_v6  ;;  %v3871_v24 = vshll.u32 %v3870_v17, 23  ;;  %v2708_v20 = vsel %vm2706_vm1, %v2707_v5, %v7134_v12  ;;  %vm3057_vm3 = vcmp.eq.s32.totalorder %v7095_v22, 0 }
 0x31a   : > { %v5072_v52 = vpop.eup %5071  ;;  %v3061_v30 = vxor.u32 2147483648, %v5070_v44  ;;  %v2709_v28 = vadd.s32 %v2708_v20, %v2704_v7  ;;  %v4016_v50 = vsub.s32 32, %v4015_v39  ;;  %v4009_v3 = vor.u32 8388608, %v4008_v60 }
 0x31b   : > { %v3058_v47 = vxor.u32 2147483648, %v5072_v52  ;;  %v3872_v16 = vor.u32 4788187, %v3871_v24  ;;  %v3875_v59 = vcvt.s32.f32 %v3868_v29  ;;  %v3886_v43 = vadd.s32 3, %v3882_v58 }
 0x31c   : > { %v3062_v11 = vsel %vm3060_vm0, %v3061_v30, %v5072_v52  ;;  %v2710_v31 = vadd.s32 536870912, %v2709_v28  ;;  %v4019_v42 = vshrl.u32 %v5204_v41, %v4016_v50  ;;  %v4022_v13 = vshrl.u32 %v5205_v45, %v4016_v50 }
 0x31d   : > { %v3059_v1 = vsel %vm3057_vm3, %v5070_v44, %v3058_v47  ;;  %v3873_v32 = vand.u32 2147483647, %v3872_v16  ;;  %v3588_v14 = vand.u32 2139095040, %v7159_v27  ;;  %v4018_v12 = vshll.u32 %v5203_v33, %v4015_v39 }
 0x31e   : > { %v3063_v26 = vsel %vm3056_vm14, %v3059_v1, %v3062_v11  ;;  %v7175_v57 = vshrl.u32 %v2710_v31, 30  ;;  %v4025_v22 = vshrl.u32 %v5206_v49, %v4016_v50  ;;  %v4028_v37 = vshrl.u32 %v5207_v51, %v4016_v50 }
 0x31f   : > { %v3064_v63 = vsel %vm3053_vm11, nan, %v3063_v26  ;;  %v3876_v36 = vmul.f32 %v3875_v59, %v3873_v32  ;;  %v4014_v53 = vshrl.u32 %v4013_v10, 5  ;;  %v4021_v15 = vshll.u32 %v5204_v41, %v4015_v39 }
 0x320   : > { %4324 = vst [vmem:[%s5946_s6 + $0x58] sm:$0xff] %v3064_v63  ;;  %v4027_v8 = vshll.u32 %v5206_v49, %v4015_v39  ;;  %v2712_v35 = vshll.u32 %v7175_v57, 30  ;;  %v4020_v2 = vor.u32 %v4019_v42, %v4018_v12  ;;  %v4024_v6 = vshll.u32 %v5205_v45, %v4015_v39 }
 0x321   : > { %v3877_v18 = vxor.u32 2147483648, %v3876_v36  ;;  %v4031_v4 = vshrl.u32 %v7679_v19, %v4016_v50  ;;  %v4023_v54 = vor.u32 %v4022_v13, %v4021_v15  ;;  %v4030_v44 = vshll.u32 %v5207_v51, %v4015_v39 }
 0x322   : > { %v4029_v5 = vor.u32 %v4028_v37, %v4027_v8  ;;  %v7191_v29 = vand.u32 3, %v3886_v43  ;;  %v7193_v24 = vsub.s32 %v2709_v28, %v2712_v35  ;;  %v4026_v60 = vor.u32 %v4025_v22, %v4024_v6 }
 0x323   : > { %v3878_v17 = vsel %vm3795_vm6, %v3877_v18, %v3876_v36  ;;  %v4032_v52 = vor.u32 %v4031_v4, %v4030_v44  ;;  %v4049_v30 = vshll.u32 %v4009_v3, 8  ;;  %v3589_v7 = vshrl.u32 %v3588_v14, 23 }
 0x324   : > { %v3881_v10 = vsel %vm7126_vm10, %v6895_v9, %v3878_v17  ;;  %vm2651_vm12 = vcmp.lt.s32.totalorder %v6991_v0, 0  ;;  %v2715_v47 = vsub.s32 0, %v7193_v24  ;;  %vm4033_vm2 = vcmp.lt.s32.totalorder %v4014_v53, 1 }
 0x325   : > { %5073 = vcosq.f32 %v3881_v10  ;;  %vm4036_vm4 = vcmp.lt.s32.totalorder %v4014_v53, 4  ;;  %v4017_v39 = vshrl.u32 %v5203_v33, %v4016_v50  ;;  %vm4035_vm5 = vcmp.lt.s32.totalorder %v4014_v53, 3 }
 0x326   : > { %5075 = vsinq.f32 %v3881_v10  ;;  %v4041_v34 = vsel %vm4033_vm2, %v4020_v2, %v4023_v54  ;;  %v4042_v16 = vsel %vm4036_vm4, %v4029_v5, 920167782  ;;  %v4477_v58 = vmin.u32 %v2715_v47, %v7193_v24 }
 0x327   : > { %vm4034_vm6 = vcmp.lt.s32.totalorder %v4014_v53, 2  ;;  %v4038_v20 = vsel %vm4036_vm4, %v4026_v60, 2102212464  ;;  %v4043_v11 = vsel %vm4035_vm5, %v4026_v60, %v4042_v16  ;;  %v4045_v1 = vsel %vm4033_vm2, %v4023_v54, %v4026_v60 }
 0x328   : > { %v4044_v28 = vsel %vm4034_vm6, %v4041_v34, %v4043_v11  ;;  %v4046_v32 = vsel %vm4036_vm4, %v4032_v52, 1326507024  ;;  %v4512_v59 = vadd.s32 4294967169, %v3589_v7  ;;  %vm7205_vm9 = vcmp.le.f32.partialorder %v2649_v55, 0.7853982 }
 0x329   : > { %v2717_v3 = vclz %v4477_v58  ;;  %v2735_v26 = vsub.s32 4, %v7175_v57  ;;  %v4037_v43 = vsel %vm4033_vm2, %v4017_v39, %v4020_v2  ;;  %v3585_v31 = vand.u32 2147483647, %v7159_v27 }
 0x32a   : > { %v4039_v42 = vsel %vm4035_vm5, %v4023_v54, %v4038_v20  ;;  %v4047_v63 = vsel %vm4035_vm5, %v4029_v5, %v4046_v32  ;;  %v7214_v36 = vmul.u32.u64.low %v4049_v30, %v4044_v28  ;;  %v7215_v13 = vmul.u32.u64.high %v4049_v30, %v4044_v28, %v7214_v36 }
 0x32b   : > { %v4478_v14 = vadd.s32 4294967294, %v2717_v3  ;;  %v4048_v55 = vsel %vm4034_vm6, %v4045_v1, %v4047_v63  ;;  %v3595_v12 = vadd.s32 1, %v4512_v59  ;;  %v7221_v22 = vadd.f32 %v5637_v48, %v6793_v56 }
 0x32c   : > { %vm3888_vm7 = vcmp.lt.s32.totalorder %v7191_v29, 2  ;;  %vm3889_vm8 = vcmp.eq.s32.totalorder %v7191_v29, 0  ;;  %v7225_v37 = vmul.u32.u64.low %v4049_v30, %v4048_v55  ;;  %v7226_v18 = vmul.u32.u64.high %v4049_v30, %v4048_v55, %v7225_v37 }
 0x32d   : > { %vm3892_vm10 = vcmp.eq.s32.totalorder %v7191_v29, 2  ;;  %vm4479_vm13 = vcmp.lt.s32.totalorder %v4478_v14, 0  ;;  %v4040_v15 = vsel %vm4034_vm6, %v4037_v43, %v4039_v42  ;;  %vm3596_vm11 = vcmp.gt.s32.totalorder %v3595_v12, 0 }
 0x32e   : > { %v2705_v35 = vadd.s32 %v7133_v21, %v7144_v46  ;;  %v2720_v2 = vsel %vm4479_vm13, 0, %v4478_v14  ;;  %v2736_v48 = vsel %vm2651_vm12, %v2735_v26, %v7175_v57  ;;  %v4059_v56 = vadd.s32 1, %v7215_v13 }
 0x32f   : > { %v5074_v8 = vpop.eup %5073  ;;  %v2721_v17 = vsub.s32 32, %v2720_v2  ;;  %v2725_v54 = vsub.s32 4294967266, %v2720_v2  ;;  %v3597_v5 = vsel %vm3596_vm11, %v3595_v12, 0  ;;  %v2722_v53 = vshll.u32 %v7193_v24, %v2720_v2 }
 0x330   : > { %v5076_v6 = vpop.eup %5075  ;;  %v3893_v4 = vxor.u32 2147483648, %v5074_v8  ;;  %v4056_v10 = vmul.u32 %v4049_v30, %v4040_v15  ;;  %vm4058_vm14 = vc.u32 %v7226_v18, %v7214_v36  ;;  %v2738_v7 = vsel %vm7205_vm9, 0, %v2736_v48 }
 0x331   : > { %v3890_v44 = vxor.u32 2147483648, %v5076_v6  ;;  %v2723_v46 = vshrl.u32 %v2705_v35, %v2721_v17  ;;  %v2726_v57 = vadd.s32 127, %v2725_v54  ;;  %v4060_v60 = vsel %vm4058_vm14, %v4059_v56, %v7215_v13 }
 0x332   : > { %v3894_v21 = vsel %vm3892_vm10, %v3893_v4, %v5076_v6  ;;  %v4061_v47 = vadd.s32 %v4060_v60, %v4056_v10  ;;  %v3599_v24 = vand.u32 31, %v3597_v5  ;;  %vm3885_vm15 = vweird.f32 %v6895_v9 }
 0x333   : > { %v3891_v52 = vsel %vm3889_vm8, %v5074_v8, %v3890_v44  ;;  %v2724_v39 = vor.u32 %v2723_v46, %v2722_v53  ;;  %v2727_v34 = vshll.u32 %v2726_v57, 23  ;;  %v3592_v20 = vand.u32 8388607, %v3585_v31 }
 0x334   : > { %v3895_v30 = vsel %vm3888_vm7, %v3891_v52, %v3894_v21  ;;  %v4062_v58 = vadd.s32 536870912, %v4061_v47  ;;  %v3600_v11 = vsub.s32 32, %v3599_v24  ;;  %v2742_v32 = vadd.s32 3, %v2738_v7 }
 0x335   : > { %v3896_v16 = vsel %vm3885_vm15, nan, %v3895_v30  ;;  %v2728_v28 = vor.u32 4788187, %v2727_v34  ;;  %v2731_v1 = vcvt.s32.f32 %v2724_v39  ;;  %v3602_v59 = vshll.u32 %v5203_v33, %v3599_v24 }
 0x336   : > { %4332 = vst [vmem:[%s5946_s6 + $0x98] sm:$0xff] %v3896_v16  ;;  %v7253_v3 = vshrl.u32 %v4062_v58, 30  ;;  %v3603_v9 = vshrl.u32 %v5204_v41, %v3600_v11  ;;  %v3605_v29 = vshll.u32 %v5204_v41, %v3599_v24  ;;  %v3606_v26 = vshrl.u32 %v5205_v45, %v3600_v11 }
 0x337   : > { %v2729_v43 = vand.u32 2147483647, %v2728_v28  ;;  %v3609_v42 = vshrl.u32 %v5206_v49, %v3600_v11  ;;  %v3611_v63 = vshll.u32 %v5206_v49, %v3599_v24  ;;  %v3612_v13 = vshrl.u32 %v5207_v51, %v3600_v11 }
 0x338   : > { %v4064_v14 = vshll.u32 %v7253_v3, 30  ;;  %v3598_v55 = vshrl.u32 %v3597_v5, 5  ;;  %v3608_v12 = vshll.u32 %v5205_v45, %v3599_v24  ;;  %v3604_v15 = vor.u32 %v3603_v9, %v3602_v59 }
 0x339   : > { %v2732_v37 = vmul.f32 %v2731_v1, %v2729_v43  ;;  %v3607_v8 = vor.u32 %v3606_v26, %v3605_v29  ;;  %v3613_v35 = vor.u32 %v3612_v13, %v3611_v63  ;;  %v3614_v56 = vshll.u32 %v5207_v51, %v3599_v24 }
 0x33a   : > { %v7263_v2 = vsub.s32 %v4061_v47, %v4064_v14  ;;  %v3610_v48 = vor.u32 %v3609_v42, %v3608_v12  ;;  %v3615_v6 = vshrl.u32 %v7679_v19, %v3600_v11  ;;  %v7267_v17 = vand.u32 3, %v2742_v32 }
 0x33b   : > { %v2733_v4 = vxor.u32 2147483648, %v2732_v37  ;;  %v3593_v54 = vor.u32 8388608, %v3592_v20  ;;  %v4108_v44 = vand.u32 2139095040, %v7221_v22  ;;  %vm3617_vm0 = vcmp.lt.s32.totalorder %v3598_v55, 1 }
 0x33c   : > { %v4067_v5 = vsub.s32 0, %v7263_v2  ;;  %v3616_v53 = vor.u32 %v3615_v6, %v3614_v56  ;;  %vm3620_vm1 = vcmp.lt.s32.totalorder %v3598_v55, 4  ;;  %v3601_v21 = vshrl.u32 %v5203_v33, %v3600_v11 }
 0x33d   : > { %v2734_v10 = vsel %vm2651_vm12, %v2733_v4, %v2732_v37  ;;  %vm3619_vm3 = vcmp.lt.s32.totalorder %v3598_v55, 3  ;;  %v3626_v46 = vsel %vm3620_vm1, %v3613_v35, 920167782  ;;  %v3622_v52 = vsel %vm3620_vm1, %v3610_v48, 2102212464 }
 0x33e   : > { %v2737_v57 = vsel %vm7205_vm9, %v6991_v0, %v2734_v10  ;;  %v4529_v60 = vmin.u32 %v4067_v5, %v7263_v2  ;;  %v3625_v7 = vsel %vm3617_vm0, %v3604_v15, %v3607_v8  ;;  %v3627_v47 = vsel %vm3619_vm3, %v3610_v48, %v3626_v46 }
 0x33f   : > { %5077 = vcosq.f32 %v2737_v57  ;;  %v3629_v24 = vsel %vm3617_vm0, %v3607_v8, %v3610_v48  ;;  %v3630_v30 = vsel %vm3620_vm1, %v3616_v53, 1326507024  ;;  %vm3618_vm12 = vcmp.lt.s32.totalorder %v3598_v55, 2 }
 0x340   : > { %5079 = vsinq.f32 %v2737_v57  ;;  %v4069_v39 = vclz %v4529_v60  ;;  %v3633_v34 = vshll.u32 %v3593_v54, 8  ;;  %v3621_v16 = vsel %vm3617_vm0, %v3601_v21, %v3604_v15 }
 0x341   : > { %v3623_v50 = vsel %vm3619_vm3, %v3607_v8, %v3622_v52  ;;  %v3628_v58 = vsel %vm3618_vm12, %v3625_v7, %v3627_v47  ;;  %v3631_v20 = vsel %vm3619_vm3, %v3613_v35, %v3630_v30  ;;  %v4109_v29 = vshrl.u32 %v4108_v44, 23 }
 0x342   : > { %v4530_v11 = vadd.s32 4294967294, %v4069_v39  ;;  %v3632_v28 = vsel %vm3618_vm12, %v3629_v24, %v3631_v20  ;;  %v7284_v1 = vmul.u32.u64.low %v3633_v34, %v3628_v58  ;;  %v7285_v32 = vmul.u32.u64.high %v3633_v34, %v3628_v58, %v7284_v1 }
 0x343   : > { %v7288_v59 = vmul.u32.u64.low %v3633_v34, %v3632_v28  ;;  %v7289_v9 = vmul.u32.u64.high %v3633_v34, %v3632_v28, %v7288_v59  ;;  %vm7293_vm2 = vcmp.le.f32.partialorder %v4001_v62, 0.7853982  ;;  %vm4003_vm4 = vcmp.lt.s32.totalorder %v7073_v61, 0 }
 0x344   : > { %vm4531_vm5 = vcmp.lt.s32.totalorder %v4530_v11, 0  ;;  %v3624_v43 = vsel %vm3618_vm12, %v3621_v16, %v3623_v50  ;;  %vm2748_vm6 = vcmp.eq.s32.totalorder %v7267_v17, 2  ;;  %v4087_v63 = vsub.s32 4, %v7253_v3 }
 0x345   : > { %v4072_v42 = vsel %vm4531_vm5, 0, %v4530_v11  ;;  %v4532_v13 = vadd.s32 4294967169, %v4109_v29  ;;  %vm2741_vm9 = vweird.f32 %v6991_v0  ;;  %v4057_v14 = vadd.s32 %v7214_v36, %v7226_v18 }
 0x346   : > { %v4073_v55 = vsub.s32 32, %v4072_v42  ;;  %v4077_v62 = vsub.s32 4294967266, %v4072_v42  ;;  %v3643_v12 = vadd.s32 1, %v7285_v32  ;;  %v3640_v37 = vmul.u32 %v3633_v34, %v3624_v43 }
 0x347   : > { %vm3642_vm7 = vc.u32 %v7289_v9, %v7284_v1  ;;  %v4105_v15 = vand.u32 2147483647, %v7221_v22  ;;  %v4115_v8 = vadd.s32 1, %v4532_v13  ;;  %v4074_v35 = vshll.u32 %v7263_v2, %v4072_v42 }
 0x348   : > { %v4075_v48 = vshrl.u32 %v4057_v14, %v4073_v55  ;;  %v4078_v56 = vadd.s32 127, %v4077_v62  ;;  %v3644_v6 = vsel %vm3642_vm7, %v3643_v12, %v7285_v32  ;;  %v4088_v36 = vsel %vm4003_vm4, %v4087_v63, %v7253_v3 }
 0x349   : > { %v5078_v4 = vpop.eup %5077  ;;  %v3645_v18 = vadd.s32 %v3644_v6, %v3640_v37  ;;  %vm4116_vm8 = vcmp.gt.s32.totalorder %v4115_v8, 0  ;;  %v7314_v54 = vadd.f32 %v6904_v40, %v6492_v23  ;;  %v4112_v57 = vand.u32 8388607, %v4105_v15 }
 0x34a   : > { %v5080_v44 = vpop.eup %5079  ;;  %v2749_v5 = vxor.u32 2147483648, %v5078_v4  ;;  %v4076_v53 = vor.u32 %v4075_v48, %v4074_v35  ;;  %v4079_v10 = vshll.u32 %v4078_v56, 23  ;;  %v4117_v2 = vsel %vm4116_vm8, %v4115_v8, 0 }
 0x34b   : > { %v2746_v21 = vxor.u32 2147483648, %v5080_v44  ;;  %v3646_v46 = vadd.s32 536870912, %v3645_v18  ;;  %v4119_v60 = vand.u32 31, %v4117_v2  ;;  %vm2745_vm10 = vcmp.eq.s32.totalorder %v7267_v17, 0 }
 0x34c   : > { %v2750_v3 = vsel %vm2748_vm6, %v2749_v5, %v5080_v44  ;;  %v4080_v52 = vor.u32 4788187, %v4079_v10  ;;  %v4090_v40 = vsel %vm7293_vm2, 0, %v4088_v36  ;;  %vm2744_vm13 = vcmp.lt.s32.totalorder %v7267_v17, 2 }
 0x34d   : > { %v2747_v7 = vsel %vm2745_vm10, %v5078_v4, %v2746_v21  ;;  %v7324_v47 = vshrl.u32 %v3646_v46, 30  ;;  %v4120_v24 = vsub.s32 32, %v4119_v60  ;;  %v4083_v34 = vcvt.s32.f32 %v4076_v53 }
 0x34e   : > { %v2751_v30 = vsel %vm2744_vm13, %v2747_v7, %v2750_v3  ;;  %v4081_v39 = vand.u32 2147483647, %v4080_v52  ;;  %v3276_v16 = vand.u32 2139095040, %v7314_v54  ;;  %v4094_v58 = vadd.s32 3, %v4090_v40 }
 0x34f   : > { %v2752_v50 = vsel %vm2741_vm9, nan, %v2751_v30  ;;  %v3648_v20 = vshll.u32 %v7324_v47, 30  ;;  %v4113_v11 = vor.u32 8388608, %v4112_v57  ;;  %v4123_v17 = vshrl.u32 %v5204_v41, %v4120_v24 }
 0x350   : > { %4321 = vst [vmem:[%s5946_s6 + $0x40] sm:$0xff] %v2752_v50  ;;  %v4084_v28 = vmul.f32 %v4083_v34, %v4081_v39  ;;  %v4126_v32 = vshrl.u32 %v5205_v45, %v4120_v24  ;;  %v4129_v59 = vshrl.u32 %v5206_v49, %v4120_v24  ;;  %v4122_v43 = vshll.u32 %v5203_v33, %v4119_v60 }
 0x351   : > { %v7334_v29 = vsub.s32 %v3645_v18, %v3648_v20  ;;  %v4125_v42 = vshll.u32 %v5204_v41, %v4119_v60  ;;  %v4132_v0 = vshrl.u32 %v5207_v51, %v4120_v24  ;;  %v4118_v13 = vshrl.u32 %v4117_v2, 5 }
 0x352   : > { %v4085_v63 = vxor.u32 2147483648, %v4084_v28  ;;  %v4128_v14 = vshll.u32 %v5205_v45, %v4119_v60  ;;  %v3277_v55 = vshrl.u32 %v3276_v16, 23  ;;  %v4124_v12 = vor.u32 %v4123_v17, %v4122_v43 }
 0x353   : > { %v3651_v62 = vsub.s32 0, %v7334_v29  ;;  %v4127_v37 = vor.u32 %v4126_v32, %v4125_v42  ;;  %v4131_v8 = vshll.u32 %v5206_v49, %v4119_v60  ;;  %vm3587_vm11 = vcmp.lt.s32.totalorder %v7159_v27, 0 }
 0x354   : > { %v4086_v35 = vsel %vm4003_vm4, %v4085_v63, %v4084_v28  ;;  %v4130_v48 = vor.u32 %v4129_v59, %v4128_v14  ;;  %v4134_v56 = vshll.u32 %v5207_v51, %v4119_v60  ;;  %v4135_v6 = vshrl.u32 %v7679_v19, %v4120_v24 }
 0x355   : > { %v4089_v4 = vsel %vm7293_vm2, %v7073_v61, %v4086_v35  ;;  %v7350_v36 = vand.u32 3, %v4094_v58  ;;  %v4513_v18 = vmin.u32 %v3651_v62, %v7334_v29  ;;  %v4133_v44 = vor.u32 %v4132_v0, %v4131_v8 }
 0x356   : > { %5081 = vcosq.f32 %v4089_v4  ;;  %v4136_v5 = vor.u32 %v4135_v6, %v4134_v56  ;;  %v4153_v53 = vshll.u32 %v4113_v11, 8  ;;  %v4500_v10 = vadd.s32 4294967169, %v3277_v55 }
 0x357   : > { %5083 = vsinq.f32 %v4089_v4  ;;  %vm7355_vm14 = vcmp.le.f32.partialorder %v3585_v31, 0.7853982  ;;  %v3653_v21 = vclz %v4513_v18  ;;  %vm4137_vm15 = vcmp.lt.s32.totalorder %v4118_v13, 1 }
 0x358   : > { %vm4140_vm0 = vcmp.lt.s32.totalorder %v4118_v13, 4  ;;  %v3671_v26 = vsub.s32 4, %v7324_v47  ;;  %v4121_v46 = vshrl.u32 %v5203_v33, %v4120_v24  ;;  %v4145_v60 = vsel %vm4137_vm15, %v4124_v12, %v4127_v37 }
 0x359   : > { %v4142_v57 = vsel %vm4140_vm0, %v4130_v48, 2102212464  ;;  %v4514_v3 = vadd.s32 4294967294, %v3653_v21  ;;  %vm4139_vm1 = vcmp.lt.s32.totalorder %v4118_v13, 3  ;;  %v4146_v52 = vsel %vm4140_vm0, %v4133_v44, 920167782 }
 0x35a   : > { %v4149_v40 = vsel %vm4137_vm15, %v4127_v37, %v4130_v48  ;;  %vm4138_vm3 = vcmp.lt.s32.totalorder %v4118_v13, 2  ;;  %v4141_v7 = vsel %vm4137_vm15, %v4121_v46, %v4124_v12  ;;  %v4147_v30 = vsel %vm4139_vm1, %v4130_v48, %v4146_v52 }
 0x35b   : > { %v4150_v31 = vsel %vm4140_vm0, %v4136_v5, 1326507024  ;;  %vm4515_vm12 = vcmp.lt.s32.totalorder %v4514_v3, 0  ;;  %v4143_v39 = vsel %vm4139_vm1, %v4127_v37, %v4142_v57  ;;  %v4148_v34 = vsel %vm4138_vm3, %v4145_v60, %v4147_v30 }
 0x35c   : > { %v4151_v16 = vsel %vm4139_vm1, %v4133_v44, %v4150_v31  ;;  %v3656_v50 = vsel %vm4515_vm12, 0, %v4514_v3  ;;  %v7363_v20 = vmul.u32.u64.low %v4153_v53, %v4148_v34  ;;  %v7364_v24 = vmul.u32.u64.high %v4153_v53, %v4148_v34, %v7363_v20 }
 0x35d   : > { %v4152_v58 = vsel %vm4138_vm3, %v4149_v40, %v4151_v16  ;;  %vm4093_vm2 = vweird.f32 %v7073_v61  ;;  %v3641_v11 = vadd.s32 %v7284_v1, %v7289_v9  ;;  %v3657_v28 = vsub.s32 32, %v3656_v50 }
 0x35e   : > { %v3661_v17 = vsub.s32 4294967266, %v3656_v50  ;;  %v3672_v32 = vsel %vm3587_vm11, %v3671_v26, %v7324_v47  ;;  %v7373_v59 = vmul.u32.u64.low %v4153_v53, %v4152_v58  ;;  %v7374_v43 = vmul.u32.u64.high %v4153_v53, %v4152_v58, %v7373_v59 }
 0x35f   : > { %v3273_v42 = vand.u32 2147483647, %v7314_v54  ;;  %v3283_v0 = vadd.s32 1, %v4500_v10  ;;  %v3658_v63 = vshll.u32 %v7334_v29, %v3656_v50  ;;  %v3659_v14 = vshrl.u32 %v3641_v11, %v3657_v28 }
 0x360   : > { %v3662_v55 = vadd.s32 127, %v3661_v17  ;;  %v4144_v62 = vsel %vm4138_vm3, %v4141_v7, %v4143_v39  ;;  %v5082_v12 = vpop.eup %5081  ;;  %vm4100_vm4 = vcmp.eq.s32.totalorder %v7350_v36, 2  ;;  %v3674_v1 = vsel %vm7355_vm14, 0, %v3672_v32 }
 0x361   : > { %v4163_v9 = vadd.s32 1, %v7364_v24  ;;  %vm3284_vm5 = vcmp.gt.s32.totalorder %v3283_v0, 0  ;;  %v5084_v47 = vpop.eup %5083  ;;  %v4101_v37 = vxor.u32 2147483648, %v5082_v12  ;;  %v3660_v8 = vor.u32 %v3659_v14, %v3658_v63 }
 0x362   : > { %v3663_v35 = vshll.u32 %v3662_v55, 23  ;;  %v3285_v48 = vsel %vm3284_vm5, %v3283_v0, 0  ;;  %v4098_v56 = vxor.u32 2147483648, %v5084_v47  ;;  %v4160_v29 = vmul.u32 %v4153_v53, %v4144_v62 }
 0x363   : > { %vm4162_vm6 = vc.u32 %v7374_v43, %v7363_v20  ;;  %v3280_v13 = vand.u32 8388607, %v3273_v42  ;;  %vm4097_vm9 = vcmp.eq.s32.totalorder %v7350_v36, 0  ;;  %v4102_v6 = vsel %vm4100_vm4, %v4101_v37, %v5084_v47 }
 0x364   : > { %v3664_v4 = vor.u32 4788187, %v3663_v35  ;;  %v4164_v18 = vsel %vm4162_vm6, %v4163_v9, %v7364_v24  ;;  %vm4096_vm7 = vcmp.lt.s32.totalorder %v7350_v36, 2  ;;  %v4099_v44 = vsel %vm4097_vm9, %v5082_v12, %v4098_v56 }
 0x365   : > { %v4165_v5 = vadd.s32 %v4164_v18, %v4160_v29  ;;  %v3287_v10 = vand.u32 31, %v3285_v48  ;;  %v4103_v21 = vsel %vm4096_vm7, %v4099_v44, %v4102_v6  ;;  %v3667_v26 = vcvt.s32.f32 %v3660_v8 }
 0x366   : > { %v3665_v53 = vand.u32 2147483647, %v3664_v4  ;;  %v3678_v46 = vadd.s32 3, %v3674_v1  ;;  %v4104_v57 = vsel %vm4093_vm2, nan, %v4103_v21  ;;  %v3281_v3 = vor.u32 8388608, %v3280_v13 }
 0x367   : > { %v4166_v60 = vadd.s32 536870912, %v4165_v5  ;;  %v3288_v52 = vsub.s32 32, %v3287_v10  ;;  %4334 = vst [vmem:[%s5946_s6 + $0xa8] sm:$0xff] %v4104_v57  ;;  %v3286_v7 = vshrl.u32 %v3285_v48, 5  ;;  %v3290_v30 = vshll.u32 %v5203_v33, %v3287_v10 }
 0x368   : > { %v3668_v40 = vmul.f32 %v3667_v26, %v3665_v53  ;;  %v3293_v36 = vshll.u32 %v5204_v41, %v3287_v10  ;;  %v3296_v16 = vshll.u32 %v5205_v45, %v3287_v10  ;;  %v3299_v58 = vshll.u32 %v5206_v49, %v3287_v10 }
 0x369   : > { %v4167_v31 = vshrl.u32 %v4166_v60, 30  ;;  %v3291_v39 = vshrl.u32 %v5204_v41, %v3288_v52  ;;  %v3294_v34 = vshrl.u32 %v5205_v45, %v3288_v52  ;;  %v3297_v61 = vshrl.u32 %v5206_v49, %v3288_v52 }
 0x36a   : > { %v3669_v50 = vxor.u32 2147483648, %v3668_v40  ;;  %v3300_v24 = vshrl.u32 %v5207_v51, %v3288_v52  ;;  %v3302_v32 = vshll.u32 %v5207_v51, %v3287_v10  ;;  %v3303_v14 = vshrl.u32 %v7679_v19, %v3288_v52 }
 0x36b   : > { %v4168_v11 = vshll.u32 %v4167_v31, 30  ;;  %v3292_v28 = vor.u32 %v3291_v39, %v3290_v30  ;;  %v3295_v17 = vor.u32 %v3294_v34, %v3293_v36  ;;  %v3298_v0 = vor.u32 %v3297_v61, %v3296_v16 }
 0x36c   : > { %v3670_v59 = vsel %vm3587_vm11, %v3669_v50, %v3668_v40  ;;  %v3301_v63 = vor.u32 %v3300_v24, %v3299_v58  ;;  %v7408_v62 = vand.u32 3, %v3678_v46  ;;  %v3321_v1 = vshll.u32 %v3281_v3, 8 }
 0x36d   : > { %v3673_v55 = vsel %vm7355_vm14, %v7159_v27, %v3670_v59  ;;  %v7410_v12 = vsub.s32 %v4165_v5, %v4168_v11  ;;  %v3304_v9 = vor.u32 %v3303_v14, %v3302_v32  ;;  %vm3305_vm8 = vcmp.lt.s32.totalorder %v3286_v7, 1 }
 0x36e   : > { %5085 = vcosq.f32 %v3673_v55  ;;  %vm3308_vm10 = vcmp.lt.s32.totalorder %v3286_v7, 4  ;;  %v3289_v37 = vshrl.u32 %v5203_v33, %v3288_v52  ;;  %vm3307_vm13 = vcmp.lt.s32.totalorder %v3286_v7, 3 }
 0x36f   : > { %5087 = vsinq.f32 %v3673_v55  ;;  %v4171_v47 = vsub.s32 0, %v7410_v12  ;;  %v3310_v8 = vsel %vm3308_vm10, %v3298_v0, 2102212464  ;;  %v3313_v2 = vsel %vm3305_vm8, %v3292_v28, %v3295_v17 }
 0x370   : > { %v3314_v35 = vsel %vm3308_vm10, %v3301_v63, 920167782  ;;  %v7419_v48 = vadd.f32 %v6970_v38, %v6492_v23  ;;  %vm3306_vm11 = vcmp.lt.s32.totalorder %v3286_v7, 2  ;;  %v3309_v29 = vsel %vm3305_vm8, %v3289_v37, %v3292_v28 }
 0x371   : > { %v4533_v56 = vmin.u32 %v4171_v47, %v7410_v12  ;;  %v3315_v13 = vsel %vm3307_vm13, %v3298_v0, %v3314_v35  ;;  %v3311_v6 = vsel %vm3307_vm13, %v3295_v17, %v3310_v8  ;;  %v3317_v18 = vsel %vm3305_vm8, %v3295_v17, %v3298_v0 }
 0x372   : > { %v3316_v4 = vsel %vm3306_vm11, %v3313_v2, %v3315_v13  ;;  %v3318_v44 = vsel %vm3308_vm10, %v3304_v9, 1326507024  ;;  %vm7430_vm14 = vcmp.le.f32.partialorder %v4105_v15, 0.7853982  ;;  %vm4107_vm15 = vcmp.lt.s32.totalorder %v7221_v22, 0 }
 0x373   : > { %v4173_v5 = vclz %v4533_v56  ;;  %vm3680_vm0 = vcmp.lt.s32.totalorder %v7408_v62, 2  ;;  %v4191_v10 = vsub.s32 4, %v4167_v31  ;;  %v3319_v21 = vsel %vm3307_vm13, %v3301_v63, %v3318_v44 }
 0x374   : > { %v7437_v53 = vmul.u32.u64.low %v3321_v1, %v3316_v4  ;;  %v7438_v26 = vmul.u32.u64.high %v3321_v1, %v3316_v4, %v7437_v53  ;;  %v3312_v57 = vsel %vm3306_vm11, %v3309_v29, %v3311_v6  ;;  %v3320_v60 = vsel %vm3306_vm11, %v3317_v18, %v3319_v21 }
 0x375   : > { %v4534_v46 = vadd.s32 4294967294, %v4173_v5  ;;  %v4212_v15 = vand.u32 2139095040, %v7419_v48  ;;  %vm3681_vm1 = vcmp.eq.s32.totalorder %v7408_v62, 0  ;;  %vm3684_vm3 = vcmp.eq.s32.totalorder %v7408_v62, 2 }
 0x376   : > { %v7445_v3 = vmul.u32.u64.low %v3321_v1, %v3320_v60  ;;  %v7446_v52 = vmul.u32.u64.high %v3321_v1, %v3320_v60, %v7445_v3  ;;  %v4161_v40 = vadd.s32 %v7363_v20, %v7374_v43  ;;  %v7452_v36 = vadd.f32 %v7080_v25, %v6492_v23 }
 0x377   : > { %vm4535_vm12 = vcmp.lt.s32.totalorder %v4534_v46, 0  ;;  %v4213_v30 = vshrl.u32 %v4212_v15, 23  ;;  %v4192_v34 = vsel %vm4107_vm15, %v4191_v10, %v4167_v31  ;;  %v3328_v16 = vmul.u32 %v3321_v1, %v3312_v57 }
 0x378   : > { %v5086_v7 = vpop.eup %5085  ;;  %v4176_v39 = vsel %vm4535_vm12, 0, %v4534_v46  ;;  %v3331_v50 = vadd.s32 1, %v7438_v26  ;;  %v4209_v20 = vand.u32 2147483647, %v7419_v48  ;;  %vm3330_vm2 = vc.u32 %v7446_v52, %v7437_v53 }
 0x379   : > { %v5088_v61 = vpop.eup %5087  ;;  %v3685_v58 = vxor.u32 2147483648, %v5086_v7  ;;  %v4177_v24 = vsub.s32 32, %v4176_v39  ;;  %v4181_v11 = vsub.s32 4294967266, %v4176_v39  ;;  %v4178_v28 = vshll.u32 %v7410_v12, %v4176_v39 }
 0x37a   : > { %v3682_v43 = vxor.u32 2147483648, %v5088_v61  ;;  %v4536_v23 = vadd.s32 4294967169, %v4213_v30  ;;  %v3332_v32 = vsel %vm3330_vm2, %v3331_v50, %v7438_v26  ;;  %v4194_v0 = vsel %vm7430_vm14, 0, %v4192_v34 }
 0x37b   : > { %v3686_v25 = vsel %vm3684_vm3, %v3685_v58, %v5088_v61  ;;  %v4179_v31 = vshrl.u32 %v4161_v40, %v4177_v24  ;;  %v4182_v17 = vadd.s32 127, %v4181_v11  ;;  %v3333_v63 = vadd.s32 %v3332_v32, %v3328_v16 }
 0x37c   : > { %v3683_v59 = vsel %vm3681_vm1, %v5086_v7, %v3682_v43  ;;  %v4219_v14 = vadd.s32 1, %v4536_v23  ;;  %vm3677_vm4 = vweird.f32 %v7159_v27  ;;  %v4198_v8 = vadd.s32 3, %v4194_v0 }
 0x37d   : > { %v3687_v55 = vsel %vm3680_vm0, %v3683_v59, %v3686_v25  ;;  %v4180_v12 = vor.u32 %v4179_v31, %v4178_v28  ;;  %v4183_v1 = vshll.u32 %v4182_v17, 23  ;;  %v3334_v47 = vadd.s32 536870912, %v3333_v63 }
 0x37e   : > { %v3688_v9 = vsel %vm3677_vm4, nan, %v3687_v55  ;;  %vm4220_vm5 = vcmp.gt.s32.totalorder %v4219_v14, 0  ;;  %v4216_v2 = vand.u32 8388607, %v4209_v20  ;;  %v3900_v27 = vand.u32 2139095040, %v7452_v36 }
 0x37f   : > { %4330 = vst [vmem:[%s5946_s6 + $0x88] sm:$0xff] %v3688_v9  ;;  %v4184_v37 = vor.u32 4788187, %v4183_v1  ;;  %v4221_v35 = vsel %vm4220_vm5, %v4219_v14, 0  ;;  %v7473_v56 = vshrl.u32 %v3334_v47, 30  ;;  %v4187_v62 = vcvt.s32.f32 %v4180_v12 }
 0x380   : > { %v4223_v29 = vand.u32 31, %v4221_v35  ;;  %v7477_v44 = vand.u32 3, %v4198_v8  ;;  %v4217_v5 = vor.u32 8388608, %v4216_v2  ;;  %v3897_v10 = vand.u32 2147483647, %v7452_v36 }
 0x381   : > { %v4185_v13 = vand.u32 2147483647, %v4184_v37  ;;  %v3336_v6 = vshll.u32 %v7473_v56, 30  ;;  %v3329_v21 = vadd.s32 %v7437_v53, %v7446_v52  ;;  %v3901_v57 = vshrl.u32 %v3900_v27, 23 }
 0x382   : > { %v4224_v4 = vsub.s32 32, %v4223_v29  ;;  %v4226_v15 = vshll.u32 %v5203_v33, %v4223_v29  ;;  %v4229_v7 = vshll.u32 %v5204_v41, %v4223_v29  ;;  %v4232_v39 = vshll.u32 %v5205_v45, %v4223_v29 }
 0x383   : > { %v4188_v18 = vmul.f32 %v4187_v62, %v4185_v13  ;;  %v7481_v26 = vsub.s32 %v3333_v63, %v3336_v6  ;;  %v4222_v34 = vshrl.u32 %v4221_v35, 5  ;;  %v4235_v50 = vshll.u32 %v5206_v49, %v4223_v29 }
 0x384   : > { %v4227_v46 = vshrl.u32 %v5204_v41, %v4224_v4  ;;  %v4230_v3 = vshrl.u32 %v5205_v45, %v4224_v4  ;;  %v4233_v40 = vshrl.u32 %v5206_v49, %v4224_v4  ;;  %v4236_v53 = vshrl.u32 %v5207_v51, %v4224_v4 }
 0x385   : > { %v4189_v60 = vxor.u32 2147483648, %v4188_v18  ;;  %v3339_v30 = vsub.s32 0, %v7481_v26  ;;  %v4238_v28 = vshll.u32 %v5207_v51, %v4223_v29  ;;  %v4239_v23 = vshrl.u32 %v7679_v19, %v4224_v4 }
 0x386   : > { %v4228_v16 = vor.u32 %v4227_v46, %v4226_v15  ;;  %v4231_v24 = vor.u32 %v4230_v3, %v4229_v7  ;;  %v4234_v11 = vor.u32 %v4233_v40, %v4232_v39  ;;  %v4237_v43 = vor.u32 %v4236_v53, %v4235_v50 }
 0x387   : > { %v4190_v52 = vsel %vm4107_vm15, %v4189_v60, %v4188_v18  ;;  %v4501_v58 = vmin.u32 %v3339_v30, %v7481_v26  ;;  %v4257_v31 = vshll.u32 %v4217_v5, 8  ;;  %v4524_v17 = vadd.s32 4294967169, %v3901_v57 }
 0x388   : > { %v4193_v61 = vsel %vm7430_vm14, %v7221_v22, %v4190_v52  ;;  %v3359_v32 = vsub.s32 4, %v7473_v56  ;;  %v4225_v59 = vshrl.u32 %v5203_v33, %v4224_v4  ;;  %v4240_v38 = vor.u32 %v4239_v23, %v4238_v28 }
 0x389   : > { %5089 = vcosq.f32 %v4193_v61  ;;  %v3341_v25 = vclz %v4501_v58  ;;  %vm4241_vm6 = vcmp.lt.s32.totalorder %v4222_v34, 1  ;;  %vm3275_vm9 = vcmp.lt.s32.totalorder %v7314_v54, 0 }
 0x38a   : > { %5091 = vsinq.f32 %v4193_v61  ;;  %vm4243_vm7 = vcmp.lt.s32.totalorder %v4222_v34, 3  ;;  %vm4244_vm8 = vcmp.lt.s32.totalorder %v4222_v34, 4  ;;  %v4249_v63 = vsel %vm4241_vm6, %v4228_v16, %v4231_v24 }
 0x38b   : > { %v4502_v0 = vadd.s32 4294967294, %v3341_v25  ;;  %v4246_v14 = vsel %vm4244_vm8, %v4234_v11, 2102212464  ;;  %v4250_v55 = vsel %vm4244_vm8, %v4237_v43, 920167782  ;;  %v4253_v12 = vsel %vm4241_vm6, %v4231_v24, %v4234_v11 }
 0x38c   : > { %v4254_v1 = vsel %vm4244_vm8, %v4240_v38, 1326507024  ;;  %vm4242_vm13 = vcmp.lt.s32.totalorder %v4222_v34, 2  ;;  %v4251_v9 = vsel %vm4243_vm7, %v4234_v11, %v4250_v55  ;;  %v4245_v8 = vsel %vm4241_vm6, %v4225_v59, %v4228_v16 }
 0x38d   : > { %vm4503_vm10 = vcmp.lt.s32.totalorder %v4502_v0, 0  ;;  %v4255_v47 = vsel %vm4243_vm7, %v4237_v43, %v4254_v1  ;;  %v4252_v2 = vsel %vm4242_vm13, %v4249_v63, %v4251_v9  ;;  %vm4197_vm11 = vweird.f32 %v7221_v22 }
 0x38e   : > { %v3344_v37 = vsel %vm4503_vm10, 0, %v4502_v0  ;;  %v4256_v35 = vsel %vm4242_vm13, %v4253_v12, %v4255_v47  ;;  %vm7510_vm14 = vcmp.le.f32.partialorder %v3273_v42, 0.7853982  ;;  %v4247_v62 = vsel %vm4243_vm7, %v4231_v24, %v4246_v14 }
 0x38f   : > { %v3345_v27 = vsub.s32 32, %v3344_v37  ;;  %v3349_v13 = vsub.s32 4294967266, %v3344_v37  ;;  %v3907_v6 = vadd.s32 1, %v4524_v17  ;;  %v3346_v57 = vshll.u32 %v7481_v26, %v3344_v37 }
 0x390   : > { %v7515_v4 = vmul.u32.u64.low %v4257_v31, %v4256_v35  ;;  %v7516_v18 = vmul.u32.u64.high %v4257_v31, %v4256_v35, %v7515_v4  ;;  %v7518_v5 = vmul.u32.u64.low %v4257_v31, %v4252_v2  ;;  %v7519_v46 = vmul.u32.u64.high %v4257_v31, %v4252_v2, %v7518_v5 }
 0x391   : > { %v3347_v60 = vshrl.u32 %v3329_v21, %v3345_v27  ;;  %v3350_v15 = vadd.s32 127, %v3349_v13  ;;  %vm3908_vm15 = vcmp.gt.s32.totalorder %v3907_v6, 0  ;;  %vm4201_vm0 = vcmp.eq.s32.totalorder %v7477_v44, 0 }
 0x392   : > { %vm4204_vm1 = vcmp.eq.s32.totalorder %v7477_v44, 2  ;;  %v4248_v3 = vsel %vm4242_vm13, %v4245_v8, %v4247_v62  ;;  %v3909_v40 = vsel %vm3908_vm15, %v3907_v6, 0  ;;  %v3904_v52 = vand.u32 8388607, %v3897_v10 }
 0x393   : > { %v5090_v42 = vpop.eup %5089  ;;  %v3348_v39 = vor.u32 %v3347_v60, %v3346_v57  ;;  %v3351_v53 = vshll.u32 %v3350_v15, 23  ;;  %v3360_v21 = vsel %vm3275_vm9, %v3359_v32, %v7473_v56  ;;  %vm4266_vm3 = vc.u32 %v7516_v18, %v7518_v5 }
 0x394   : > { %v5092_v30 = vpop.eup %5091  ;;  %v4205_v7 = vxor.u32 2147483648, %v5090_v42  ;;  %v4267_v26 = vadd.s32 1, %v7519_v46  ;;  %v4264_v61 = vmul.u32 %v4257_v31, %v4248_v3  ;;  %v3911_v58 = vand.u32 31, %v3909_v40 }
 0x395   : > { %v4202_v16 = vxor.u32 2147483648, %v5092_v30  ;;  %v3352_v50 = vor.u32 4788187, %v3351_v53  ;;  %vm4200_vm12 = vcmp.lt.s32.totalorder %v7477_v44, 2  ;;  %v3355_v11 = vcvt.s32.f32 %v3348_v39 }
 0x396   : > { %v4206_v34 = vsel %vm4204_vm1, %v4205_v7, %v5092_v30  ;;  %v4268_v43 = vsel %vm4266_vm3, %v4267_v26, %v7519_v46  ;;  %v3912_v25 = vsub.s32 32, %v3911_v58  ;;  %v3362_v32 = vsel %vm7510_vm14, 0, %v3360_v21 }
 0x397   : > { %v4203_v24 = vsel %vm4201_vm0, %v5090_v42, %v4202_v16  ;;  %v3353_v56 = vand.u32 2147483647, %v3352_v50  ;;  %v4269_v23 = vadd.s32 %v4268_v43, %v4264_v61  ;;  %v3905_v31 = vor.u32 8388608, %v3904_v52 }
 0x398   : > { %v4207_v28 = vsel %vm4200_vm12, %v4203_v24, %v4206_v34  ;;  %v3910_v59 = vshrl.u32 %v3909_v40, 5  ;;  %v3914_v44 = vshll.u32 %v5203_v33, %v3911_v58  ;;  %v3915_v63 = vshrl.u32 %v5204_v41, %v3912_v25 }
 0x399   : > { %v4208_v17 = vsel %vm4197_vm11, nan, %v4207_v28  ;;  %v3356_v38 = vmul.f32 %v3355_v11, %v3353_v56  ;;  %v4270_v0 = vadd.s32 536870912, %v4269_v23  ;;  %v3917_v14 = vshll.u32 %v5204_v41, %v3911_v58 }
 0x39a   : > { %4335 = vst [vmem:[%s5946_s6 + $0xb0] sm:$0xff] %v4208_v17  ;;  %v3918_v55 = vshrl.u32 %v5205_v45, %v3912_v25  ;;  %v3921_v12 = vshrl.u32 %v5206_v49, %v3912_v25  ;;  %v3924_v22 = vshrl.u32 %v5207_v51, %v3912_v25  ;;  %v3920_v47 = vshll.u32 %v5205_v45, %v3911_v58 }
 0x39b   : > { %v3357_v1 = vxor.u32 2147483648, %v3356_v38  ;;  %v7549_v9 = vshrl.u32 %v4270_v0, 30  ;;  %v3923_v37 = vshll.u32 %v5206_v49, %v3911_v58  ;;  %v3916_v8 = vor.u32 %v3915_v63, %v3914_v44 }
 0x39c   : > { %v3919_v2 = vor.u32 %v3918_v55, %v3917_v14  ;;  %v3926_v35 = vshll.u32 %v5207_v51, %v3911_v58  ;;  %v3927_v27 = vshrl.u32 %v7679_v19, %v3912_v25  ;;  %v3922_v4 = vor.u32 %v3921_v12, %v3920_v47 }
 0x39d   : > { %v3358_v41 = vsel %vm3275_vm9, %v3357_v1, %v3356_v38  ;;  %v4272_v13 = vshll.u32 %v7549_v9, 30  ;;  %v3925_v62 = vor.u32 %v3924_v22, %v3923_v37  ;;  %v3366_v49 = vadd.s32 3, %v3362_v32 }
 0x39e   : > { %v3361_v6 = vsel %vm7510_vm14, %v7314_v54, %v3358_v41  ;;  %v3928_v45 = vor.u32 %v3927_v27, %v3926_v35  ;;  %vm3929_vm2 = vcmp.lt.s32.totalorder %v3910_v59, 1  ;;  %vm3932_vm4 = vcmp.lt.s32.totalorder %v3910_v59, 4 }
 0x39f   : > { %5093 = vcosq.f32 %v3361_v6  ;;  %v4273_v46 = vsub.s32 %v4269_v23, %v4272_v13  ;;  %v3937_v51 = vsel %vm3929_vm2, %v3916_v8, %v3919_v2  ;;  %v3945_v19 = vshll.u32 %v3905_v31, 8 }
 0x3a0   : > { %5095 = vsinq.f32 %v3361_v6  ;;  %vm3930_vm5 = vcmp.lt.s32.totalorder %v3910_v59, 2  ;;  %vm3931_vm6 = vcmp.lt.s32.totalorder %v3910_v59, 3  ;;  %v3938_v60 = vsel %vm3932_vm4, %v3925_v62, 920167782 }
 0x3a1   : > { %v4275_v57 = vsub.s32 0, %v4273_v46  ;;  %v3934_v15 = vsel %vm3932_vm4, %v3922_v4, 2102212464  ;;  %v3939_v42 = vsel %vm3931_vm6, %v3922_v4, %v3938_v60  ;;  %v3941_v29 = vsel %vm3929_vm2, %v3919_v2, %v3922_v4 }
 0x3a2   : > { %v3942_v3 = vsel %vm3932_vm4, %v3928_v45, 1326507024  ;;  %v3913_v30 = vshrl.u32 %v5203_v33, %v3912_v25  ;;  %v3940_v7 = vsel %vm3930_vm5, %v3937_v51, %v3939_v42  ;;  %v3367_v21 = vand.u32 3, %v3366_v49 }
 0x3a3   : > { %v4537_v40 = vmin.u32 %v4275_v57, %v4273_v46  ;;  %v3943_v39 = vsel %vm3931_vm6, %v3925_v62, %v3942_v3  ;;  %v7566_v52 = vmul.u32.u64.low %v3945_v19, %v3940_v7  ;;  %v7567_v16 = vmul.u32.u64.high %v3945_v19, %v3940_v7, %v7566_v52 }
 0x3a4   : > { %v3944_v53 = vsel %vm3930_vm5, %v3941_v29, %v3943_v39  ;;  %v3933_v34 = vsel %vm3929_vm2, %v3913_v30, %v3916_v8  ;;  %v3935_v50 = vsel %vm3931_vm6, %v3919_v2, %v3934_v15  ;;  %vm3368_vm9 = vcmp.lt.s32.totalorder %v3367_v21, 2 }
 0x3a5   : > { %v4277_v26 = vclz %v4537_v40  ;;  %v7571_v61 = vmul.u32.u64.low %v3945_v19, %v3944_v53  ;;  %v7572_v58 = vmul.u32.u64.high %v3945_v19, %v3944_v53, %v7571_v61  ;;  %v3936_v33 = vsel %vm3930_vm5, %v3933_v34, %v3935_v50 }
 0x3a6   : > { %v3955_v11 = vadd.s32 1, %v7567_v16  ;;  %vm3372_vm7 = vcmp.eq.s32.totalorder %v3367_v21, 2  ;;  %v4265_v23 = vadd.s32 %v7518_v5, %v7516_v18  ;;  %v3952_v59 = vmul.u32 %v3945_v19, %v3936_v33 }
 0x3a7   : > { %v4538_v24 = vadd.s32 4294967294, %v4277_v26  ;;  %vm3954_vm10 = vc.u32 %v7572_v58, %v7566_v52  ;;  %vm3369_vm13 = vcmp.eq.s32.totalorder %v3367_v21, 0  ;;  %vm3365_vm11 = vweird.f32 %v7314_v54 }
 0x3a8   : > { %v3956_v44 = vsel %vm3954_vm10, %v3955_v11, %v7567_v16  ;;  %v4295_v13 = vsub.s32 4, %v7549_v9  ;;  %vm4211_vm14 = vcmp.lt.s32.totalorder %v7419_v48, 0  ;;  %vm4210_vm15 = vcmp.le.f32.partialorder %v4209_v20, 0.7853982 }
 0x3a9   : > { %v5094_v43 = vpop.eup %5093  ;;  %vm4539_vm8 = vcmp.lt.s32.totalorder %v4538_v24, 0  ;;  %v3957_v12 = vadd.s32 %v3956_v44, %v3952_v59  ;;  %v3953_v42 = vadd.s32 %v7566_v52, %v7572_v58  ;;  %vm4301_vm2 = vweird.f32 %v7419_v48 }
 0x3aa   : > { %v5096_v28 = vpop.eup %5095  ;;  %v3373_v56 = vxor.u32 2147483648, %v5094_v43  ;;  %v4280_v25 = vsel %vm4539_vm8, 0, %v4538_v24  ;;  %v4296_v45 = vsel %vm4211_vm14, %v4295_v13, %v7549_v9  ;;  %vm3899_vm4 = vcmp.lt.s32.totalorder %v7452_v36, 0 }
 0x3ab   : > { %v3370_v17 = vxor.u32 2147483648, %v5096_v28  ;;  %v4281_v32 = vsub.s32 32, %v4280_v25  ;;  %v4285_v31 = vsub.s32 4294967266, %v4280_v25  ;;  %v4282_v0 = vshll.u32 %v4273_v46, %v4280_v25 }
 0x3ac   : > { %v3374_v38 = vsel %vm3372_vm7, %v3373_v56, %v5096_v28  ;;  %v3958_v47 = vadd.s32 536870912, %v3957_v12  ;;  %v4298_v19 = vsel %vm4210_vm15, 0, %v4296_v45  ;;  %vm3898_vm5 = vcmp.le.f32.partialorder %v3897_v10, 0.7853982 }
 0x3ad   : > { %v3371_v63 = vsel %vm3369_vm13, %v5094_v43, %v3370_v17  ;;  %v4283_v14 = vshrl.u32 %v4265_v23, %v4281_v32  ;;  %v4286_v55 = vadd.s32 127, %v4285_v31  ;;  %v4302_v60 = vadd.s32 3, %v4298_v19 }
 0x3ae   : > { %v3375_v18 = vsel %vm3368_vm9, %v3371_v63, %v3374_v38  ;;  %v3959_v8 = vshrl.u32 %v3958_v47, 30  ;;  %vm3989_vm8 = vweird.f32 %v7452_v36 }
 0x3af   : > { %v3376_v5 = vsel %vm3365_vm11, nan, %v3375_v18  ;;  %v4284_v22 = vor.u32 %v4283_v14, %v4282_v0  ;;  %v4287_v1 = vshll.u32 %v4286_v55, 23  ;;  %v4303_v20 = vand.u32 3, %v4302_v60 }
 0x3b0   : > { %4327 = vst [vmem:[%s5946_s6 + $0x70] sm:$0xff] %v3376_v5  ;;  %v3960_v27 = vshll.u32 %v3959_v8, 30  ;;  %v3983_v43 = vsub.s32 4, %v3959_v8 }
 0x3b1   : > { %v4288_v37 = vor.u32 4788187, %v4287_v1  ;;  %v4291_v35 = vcvt.s32.f32 %v4284_v22  ;;  %vm4308_vm1 = vcmp.eq.s32.totalorder %v4303_v20, 2  ;;  %vm4305_vm3 = vcmp.eq.s32.totalorder %v4303_v20, 0 }
 0x3b2   : > { %v3961_v62 = vsub.s32 %v3957_v12, %v3960_v27  ;;  %vm4304_vm12 = vcmp.lt.s32.totalorder %v4303_v20, 2  ;;  %v3984_v23 = vsel %vm3899_vm4, %v3983_v43, %v3959_v8 }
 0x3b3   : > { %v4289_v2 = vand.u32 2147483647, %v4288_v37  ;;  %v3986_v17 = vsel %vm3898_vm5, 0, %v3984_v23 }
 0x3b4   : > { %v3963_v4 = vsub.s32 0, %v3961_v62 }
 0x3b5   : > { %v4292_v41 = vmul.f32 %v4291_v35, %v4289_v2 }
 0x3b6   : > { %v4525_v49 = vmin.u32 %v3963_v4, %v3961_v62 }
 0x3b7   : > { %v4293_v6 = vxor.u32 2147483648, %v4292_v41 }
 0x3b8   : > { %v3965_v51 = vclz %v4525_v49 }
 0x3b9   : > { %v4294_v54 = vsel %vm4211_vm14, %v4293_v6, %v4292_v41 }
 0x3ba   : > { %v4297_v46 = vsel %vm4210_vm15, %v7419_v48, %v4294_v54  ;;  %v4526_v57 = vadd.s32 4294967294, %v3965_v51  ;;  %v3990_v48 = vadd.s32 3, %v3986_v17 }
 0x3bb   : > { %5097 = vcosq.f32 %v4297_v46 }
 0x3bc   : > { %5099 = vsinq.f32 %v4297_v46  ;;  %vm4527_vm0 = vcmp.lt.s32.totalorder %v4526_v57, 0  ;;  %v3991_v32 = vand.u32 3, %v3990_v48 }
 0x3bd   : > { %v3968_v15 = vsel %vm4527_vm0, 0, %v4526_v57 }
 0x3be   : > { %v3969_v29 = vsub.s32 32, %v3968_v15  ;;  %v3973_v3 = vsub.s32 4294967266, %v3968_v15  ;;  %v3970_v40 = vshll.u32 %v3961_v62, %v3968_v15  ;;  %vm3996_vm6 = vcmp.eq.s32.totalorder %v3991_v32, 2 }
 0x3bf   : > { %vm3993_vm9 = vcmp.eq.s32.totalorder %v3991_v32, 0  ;;  %vm3992_vm7 = vcmp.lt.s32.totalorder %v3991_v32, 2 }
 0x3c0   : > { %v3971_v30 = vshrl.u32 %v3953_v42, %v3969_v29  ;;  %v3974_v9 = vadd.s32 127, %v3973_v3 }
 0x3c2   : > { %v3972_v39 = vor.u32 %v3971_v30, %v3970_v40  ;;  %v3975_v53 = vshll.u32 %v3974_v9, 23 }
 0x3c4   : > { %v3976_v34 = vor.u32 4788187, %v3975_v53  ;;  %v3979_v58 = vcvt.s32.f32 %v3972_v39 }
 0x3c5   : > { %v5098_v7 = vpop.eup %5097 }
 0x3c6   : > { %v5100_v16 = vpop.eup %5099  ;;  %v4309_v21 = vxor.u32 2147483648, %v5098_v7  ;;  %v3977_v52 = vand.u32 2147483647, %v3976_v34 }
 0x3c7   : > { %v4306_v26 = vxor.u32 2147483648, %v5100_v16 }
 0x3c8   : > { %v4310_v50 = vsel %vm4308_vm1, %v4309_v21, %v5100_v16  ;;  %v3980_v11 = vmul.f32 %v3979_v58, %v3977_v52 }
 0x3c9   : > { %v4307_v61 = vsel %vm4305_vm3, %v5098_v7, %v4306_v26 }
 0x3ca   : > { %v4311_v24 = vsel %vm4304_vm12, %v4307_v61, %v4310_v50  ;;  %v3981_v28 = vxor.u32 2147483648, %v3980_v11 }
 0x3cb   : > { %v4312_v33 = vsel %vm4301_vm2, nan, %v4311_v24 }
 0x3cc   : > { %4336 = vst [vmem:[%s5946_s6 + $0xb8] sm:$0xff] %v4312_v33  ;;  %v3982_v56 = vsel %vm3899_vm4, %v3981_v28, %v3980_v11 }
 0x3cd   : > { %v3985_v25 = vsel %vm3898_vm5, %v7452_v36, %v3982_v56 }
 0x3ce   : > { %5101 = vcosq.f32 %v3985_v25 }
 0x3cf   : > { %5103 = vsinq.f32 %v3985_v25 }
 0x3d8   : > { %v5102_v31 = vpop.eup %5101 }
 0x3d9   : > { %v5104_v59 = vpop.eup %5103  ;;  %v3997_v38 = vxor.u32 2147483648, %v5102_v31 }
 0x3da   : > { %v3994_v10 = vxor.u32 2147483648, %v5104_v59 }
 0x3db   : > { %v3998_v0 = vsel %vm3996_vm6, %v3997_v38, %v5104_v59 }
 0x3dc   : > { %v3995_v44 = vsel %vm3993_vm9, %v5102_v31, %v3994_v10 }
 0x3dd   : > { %v3999_v63 = vsel %vm3992_vm7, %v3995_v44, %v3998_v0 }
 0x3de   : > { %v4000_v14 = vsel %vm3989_vm8, nan, %v3999_v63 }
 0x3df   : > { %4333 = vst [vmem:[%s5946_s6 + $0xa0] sm:$0xff] %v4000_v14 }
 0x3e0   : > { %5119 = shalt.err (!%p5116_p7)
}
 0x3e1   : > { %s5120_s4 = scalar_lea.hbm %s7604_s16, 3072  ;;  %s5124_s9 = scalar_lea.hbm %s7667_s3, 24576 }
 0x3e2   : > { %p5121_p9 = scmp.ne.s32.totalorder %s7604_s16, %s5120_s4  ;;  %p5125_p12 = scmp.lt.u32.totalorder %s7604_s16, %s7667_s3 }
 0x3e3   : > { %p5126_p13 = scmp.lt.u32.totalorder %s5124_s9, %s5120_s4  ;;  %p5128_p1 = scmp.lt.u32.totalorder %s5120_s4, %s7604_s16 }
 0x3e4   : > { %p5122_p10 = pnand %p5121_p9, %p5283_p3 }
 0x3e5   : > { %p5127_p0 = por %p5126_p13, %p5125_p12 }
 0x3e6   : > { %p5123_p11 = pneg %p5122_p10 }
 0x3e7   : > { %p5129_p2 = por %p5128_p1, %p5127_p0 }
 0x3e9   : > { %p5130_p4 = pnand %p5129_p2, %p5123_p11 }
 0x3eb   : > { %5133 = shalt.err (!%p5130_p4)
}
 0x3ec   : > { %s5210_s20 = smov 384   ;;  %s5211_s24 = smov 24  }
 0x3ed   : > { %4928 = dma.vmem_to_hbm [thread:$0]  (%p5283_p3), %s7606_s21, 3072, %s7604_s16, %s7612_s27, %s5210_s20, %s5210_s20, %s5211_s24  }
 0x3ee PF: > { %p4934_p5 = scmp.ge.s32.totalorder %s5200_s19, 2  ;;  %s4369_s15 = sand.u32 1, %s5172_s12  }
 0x3ef   : > { %s4370_s28 = scalar_lea.sflag [#allocation3], %s4369_s15 }
 0x3f0   : > { %p4931_p6 = pnand %p4934_p5, %p5292_p8 }
 0x3f2   : > { %5167 = dma.done.wait (!%p4931_p6), %s4370_s28, 3072  }
 0x3f3   : > { %5169 = vsyncadd (!%p4931_p6), %s4370_s28, 4294964224  ;;  %s16_s19 = sadd.s32 1, %s5200_s19   ;;  %s7719_s12 = smov %s5176_s13 }
 0x3f4   : > { %p13_p7 = scmp.ge.s32.totalorder %s16_s19, 10   ;;  %s7720_s13 = smov %s5180_s14 }
 0x3f5   : > { %s7721_s14 = smov %s5301_s30  ;;  %s7722_s15 = smov %s5192_s17 }
 0x3f6   : > { %s7723_s16 = smov %s5196_s18  ;;  %s7724_s17 = smov %s7727_s22 }
 0x3f7   : > { %s7725_s18 = smov %s7731_s23  ;;  %15 = sbr.rel (!%p13_p7) target bundleno = 5 (0x5), region = 67 }
 0x3fe   :  { %4375 = vsyncpa [#allocation3], 1 }
 0x3ff   :  { %4377 = vsyncpa [#allocation3 + $0x1], 1 }

</bundles_post_ra>
